<compile_context>
chip_gen: v7x
topology: tpu7x:2x2x1
jax: 0.10.0
libtpu: 0.0.40
codegen_flags: <defaults>
</compile_context>

<pallas_src>
import functools

import jax
import jax.numpy as jnp
from jax.experimental import pallas as pl
from jax.experimental.pallas import tpu as pltpu


def _round_up(x, m):
    return ((x + m - 1) // m) * m


# ---------------------------------------------------------------------------
# Generic fused matmul kernel:  out = act( maybe_LN(x) @ w + b ) [+ residual]
# ---------------------------------------------------------------------------

def fused_matmul(x, w, b, *, ln=None, residual=None, act="none",
                 out_dtype=None, eps=1e-12, tm=256, tn=512, tk=1024):
    """x:(M,K), w:(K,N), b:(N,).  ln=(gamma,beta) applies row-wise LayerNorm to
    x inside the kernel (requires K untiled).  residual:(M,N) is added in the
    epilogue.  MXU inputs are bf16, accumulation/LN/epilogue math is f32."""
    M, K = x.shape
    Kw, N = w.shape
    assert Kw == K
    out_dtype = out_dtype or x.dtype
    has_ln = ln is not None
    has_res = residual is not None

    # ---- tile selection (fits v5e/v6e 128 MiB and v7x 64 MiB VMEM) ----
    tm = min(tm, _round_up(M, 8))
    Mp = _round_up(M, tm)
    if N % 128 == 0 and N > 128:
        tn = min(tn, N)
        while N % tn:            # largest 128-multiple tile that divides N
            tn -= 128
    else:
        tn = N                   # small / unaligned N -> single full-N tile
    if (not has_ln) and K % 128 == 0 and K > tk:
        while K % tk:
            tk -= 128
    else:
        tk = K                   # LN fusion needs the whole row in one tile
    nk = K // tk
    k_tiled = nk > 1

    xp = x if Mp == M else jnp.pad(x, ((0, Mp - M), (0, 0)))

    if k_tiled:
        x_map = lambda i, j, k: (i, k)
        w_map = lambda i, j, k: (k, j)
        col_map = lambda i, j, k: (0, j)
        row_map = lambda i, j, k: (0, 0)
        out_map = lambda i, j, k: (i, j)
        grid = (Mp // tm, N // tn, nk)
        dims = ("parallel", "parallel", "arbitrary")
        scratch = [pltpu.VMEM((tm, tn), jnp.float32)]
    else:
        x_map = lambda i, j: (i, 0)
        w_map = lambda i, j: (0, j)
        col_map = lambda i, j: (0, j)
        row_map = lambda i, j: (0, 0)
        out_map = lambda i, j: (i, j)
        grid = (Mp // tm, N // tn)
        dims = ("parallel", "parallel")
        scratch = []

    inputs = [xp, w, b.reshape(1, N)]
    in_specs = [
        pl.BlockSpec((tm, tk), x_map),
        pl.BlockSpec((tk, tn), w_map),
        pl.BlockSpec((1, tn), col_map),
    ]
    if has_ln:
        g, beta = ln
        inputs += [g.reshape(1, K), beta.reshape(1, K)]
        in_specs += [pl.BlockSpec((1, K), row_map),
                     pl.BlockSpec((1, K), row_map)]
    if has_res:
        r = residual if Mp == M else jnp.pad(residual, ((0, Mp - M), (0, 0)))
        inputs.append(r)
        in_specs.append(pl.BlockSpec((tm, tn), out_map))

    def kernel(*refs):
        x_ref, w_ref, b_ref = refs[0], refs[1], refs[2]
        pos = 3
        g_ref = be_ref = r_ref = None
        if has_ln:
            g_ref, be_ref = refs[pos], refs[pos + 1]
            pos += 2
        if has_res:
            r_ref = refs[pos]
            pos += 1
        o_ref = refs[pos]

        def maybe_ln(xv):                # fused pre-LayerNorm (f32 math)
            if not has_ln:
                return xv
            xf = xv.astype(jnp.float32)
            mu = jnp.mean(xf, axis=-1, keepdims=True)
            var = jnp.mean(jnp.square(xf - mu), axis=-1, keepdims=True)
            xn = (xf - mu) * jax.lax.rsqrt(var + eps)
            return (xn * g_ref[...].astype(jnp.float32)
                    + be_ref[...].astype(jnp.float32))

        def epilogue(out):               # bias + activation + residual (f32)
            out = out + b_ref[...].astype(jnp.float32)
            if act == "gelu":
                # tanh-approx GELU (EUP-friendly); approximate=False for exact-erf parity
                out = jax.nn.gelu(out, approximate=True)
            elif act == "tanh":
                out = jnp.tanh(out)
            if has_res:
                out = out + r_ref[...].astype(jnp.float32)
            return out

        if k_tiled:
            acc_ref = refs[pos + 1]
            kk = pl.program_id(2)

            @pl.when(kk == 0)
            def _init():
                acc_ref[...] = jnp.zeros_like(acc_ref)

            xv = maybe_ln(x_ref[...])
            acc_ref[...] += jnp.dot(xv.astype(jnp.bfloat16),
                                    w_ref[...].astype(jnp.bfloat16),
                                    preferred_element_type=jnp.float32)

            @pl.when(kk == nk - 1)
            def _finalize():
                o_ref[...] = epilogue(acc_ref[...]).astype(o_ref.dtype)
        else:
            # single K tile: no scratch accumulator, single lane-dense store
            xv = maybe_ln(x_ref[...])
            out = jnp.dot(xv.astype(jnp.bfloat16),
                          w_ref[...].astype(jnp.bfloat16),
                          preferred_element_type=jnp.float32)
            o_ref[...] = epilogue(out).astype(o_ref.dtype)

    out = pl.pallas_call(
        kernel,
        out_shape=jax.ShapeDtypeStruct((Mp, N), out_dtype),
        grid=grid,
        in_specs=in_specs,
        out_specs=pl.BlockSpec((tm, tn), out_map),
        scratch_shapes=scratch,
        compiler_params=pltpu.CompilerParams(
            dimension_semantics=dims,
            vmem_limit_bytes=64 * 1024 * 1024),
    )(*inputs)
    return out if Mp == M else out[:M]


# ---------------------------------------------------------------------------
# Attention: one batch element per grid step, all heads in-kernel, masked pad
# ---------------------------------------------------------------------------

def _attn_kernel(qkv_ref, o_ref, *, nh, hd, hid, scale, s_real):
    s_pad = qkv_ref.shape[1]
    # mask padded key positions via a single (1, S_pad) row (broadcast over rows);
    # padded query rows are discarded by the caller.
    key_valid = jax.lax.broadcasted_iota(jnp.int32, (1, s_pad), 1) < s_real
    scale_c = jnp.asarray(scale, qkv_ref.dtype)
    parts = []
    for h in range(nh):                      # static unroll: all heads per step
        # fold 1/sqrt(d) into Q (cheaper than scaling the (S,S) score matrix)
        q = qkv_ref[0, :, h * hd:(h + 1) * hd] * scale_c              # (S_pad, hd)
        k = qkv_ref[0, :, hid + h * hd: hid + (h + 1) * hd]
        v = qkv_ref[0, :, 2 * hid + h * hd: 2 * hid + (h + 1) * hd]
        # contract on head_dim directly -- no in-kernel k.T relayout
        s = jax.lax.dot_general(q, k, (((1,), (1,)), ((), ())),
                                preferred_element_type=jnp.float32)
        s = jnp.where(key_valid, s, -1e30)
        m = jnp.max(s, axis=-1, keepdims=True)
        p = jnp.exp(s - m)
        denom = jnp.sum(p, axis=-1, keepdims=True)
        p = p * pl.reciprocal(denom, approx=True)        # EUP slot, ~free
        parts.append(jnp.dot(p.astype(v.dtype), v,
                             preferred_element_type=jnp.float32))
    # one full-width lane-dense store instead of nh narrow per-head stores
    o_ref[0, :, :] = jnp.concatenate(parts, axis=-1).astype(o_ref.dtype)


def attention(qkv, *, nh, s_real):
    """qkv: (B, S_pad, 3*hid) with columns [Q | K | V]; returns (B, S_pad, hid)."""
    B, S_pad, three_hid = qkv.shape
    hid = three_hid // 3
    hd = hid // nh
    scale = 1.0 / float(hd) ** 0.5
    return pl.pallas_call(
        functools.partial(_attn_kernel, nh=nh, hd=hd, hid=hid,
                          scale=scale, s_real=s_real),
        out_shape=jax.ShapeDtypeStruct((B, S_pad, hid), qkv.dtype),
        grid=(B,),
        in_specs=[pl.BlockSpec((1, S_pad, three_hid), lambda b: (b, 0, 0))],
        out_specs=pl.BlockSpec((1, S_pad, hid), lambda b: (b, 0, 0)),
        compiler_params=pltpu.CompilerParams(
            dimension_semantics=("parallel",),
            vmem_limit_bytes=64 * 1024 * 1024),
    )(qkv)


# ---------------------------------------------------------------------------
# Parameter init (deterministic, synthetic — frozen ViT weights)
# ---------------------------------------------------------------------------

def init_params(key, cfg, in_ch):
    P, hid, mlp, n_layers = cfg["patch"], cfg["hidden"], cfg["mlp"], cfg["layers"]
    num_patches = (cfg["img"] // P) ** 2
    S = num_patches + 1
    keys = iter(jax.random.split(key, 4 + n_layers * 6))

    def nrm(k, shape, dtype=jnp.bfloat16):
        # matmul weights stored in bf16 (MXU inputs / half HBM traffic)
        return (0.02 * jax.random.normal(k, shape, jnp.float32)).astype(dtype)

    ones = lambda n: jnp.ones((n,), jnp.float32)
    zeros = lambda n: jnp.zeros((n,), jnp.float32)

    params = {
        "patch_w": nrm(next(keys), (in_ch * P * P, hid)),
        "patch_b": zeros(hid),
        "cls": nrm(next(keys), (1, 1, hid), jnp.float32),
        "pos": nrm(next(keys), (1, S, hid), jnp.float32),
        "lnf_g": ones(hid), "lnf_b": zeros(hid),
        "pool_w": nrm(next(keys), (hid, hid)),
        "pool_b": zeros(hid),
        "layers": [],
    }
    for _ in range(n_layers):
        kq, kk, kv, ko, k1, k2 = (next(keys) for _ in range(6))
        wq, wk, wv = nrm(kq, (hid, hid)), nrm(kk, (hid, hid)), nrm(kv, (hid, hid))
        params["layers"].append({
            "ln1_g": ones(hid), "ln1_b": zeros(hid),
            # Q/K/V fused into one (hid, 3*hid) weight -> single projection matmul
            "w_qkv": jnp.concatenate([wq, wk, wv], axis=1),
            "b_qkv": zeros(3 * hid),
            "wo": nrm(ko, (hid, hid)), "bo": zeros(hid),
            "ln2_g": ones(hid), "ln2_b": zeros(hid),
            "w1": nrm(k1, (hid, mlp)), "b1": zeros(mlp),
            "w2": nrm(k2, (mlp, hid)), "b2": zeros(hid),
        })
    return params


# ---------------------------------------------------------------------------
# Forward: ViT encoder (pre-LN) -> pooler_output = tanh(dense(final_LN(seq)[:,0]))
# ---------------------------------------------------------------------------

def image_model_forward(pixel, params, *, cfg):
    B, C, H, W = pixel.shape
    P, hid, nh = cfg["patch"], cfg["hidden"], cfg["heads"]
    n_patch = (H // P) * (W // P)
    S = n_patch + 1
    S_pad = _round_up(S, 8)          # pad sequence; padded keys masked in attention

    # patchify NCHW -> (B*n_patch, C*P*P); the patch-embed conv == matmul (glue)
    x = pixel.reshape(B, C, H // P, P, W // P, P)
    x = x.transpose(0, 2, 4, 1, 3, 5).reshape(B * n_patch, C * P * P)

    emb = fused_matmul(x.astype(jnp.bfloat16), params["patch_w"], params["patch_b"])
    emb = emb.reshape(B, n_patch, hid)
    cls = jnp.broadcast_to(params["cls"], (B, 1, hid))
    h = jnp.concatenate([cls, emb], axis=1) + params["pos"]          # (B, S, hid)
    h = jnp.pad(h, ((0, 0), (0, S_pad - S), (0, 0)))
    h = h.astype(jnp.bfloat16).reshape(B * S_pad, hid)               # residual stream

    for layer in params["layers"]:
        # ---- attention block: fused LN + QKV projection (one kernel) ----
        qkv = fused_matmul(h, layer["w_qkv"], layer["b_qkv"],
                           ln=(layer["ln1_g"], layer["ln1_b"]))
        ctx = attention(qkv.reshape(B, S_pad, 3 * hid), nh=nh, s_real=S)
        # output projection + bias + residual add fused
        h = fused_matmul(ctx.reshape(B * S_pad, hid), layer["wo"], layer["bo"],
                         residual=h)
        # ---- MLP block: fused LN + up-proj (GELU), then down-proj + residual ----
        m = fused_matmul(h, layer["w1"], layer["b1"],
                         ln=(layer["ln2_g"], layer["ln2_b"]), act="gelu")
        h = fused_matmul(m, layer["w2"], layer["b2"], residual=h)

    # pooler_output = tanh(dense(final_LN(sequence)[:, 0]))
    # LN is row-wise, so only the CLS rows that feed the pooler are normalized.
    cls_rows = h.reshape(B, S_pad, hid)[:, 0, :]
    pooled = fused_matmul(cls_rows, params["pool_w"], params["pool_b"],
                          ln=(params["lnf_g"], params["lnf_b"]),
                          act="tanh", out_dtype=jnp.float32)
    return pooled


# ---------------------------------------------------------------------------

if __name__ == "__main__":
    cfg = dict(img=16, patch=4, hidden=32, heads=4, mlp=64, layers=2)
    B, C = 2, 3

    key = jax.random.PRNGKey(0)
    k_pix, k_par = jax.random.split(key)
    pixel = jax.random.normal(k_pix, (B, C, cfg["img"], cfg["img"]), jnp.float32)
    params = init_params(k_par, cfg, C)

    fwd = jax.jit(functools.partial(image_model_forward, cfg=cfg))
    out = jax.block_until_ready(fwd(pixel, params))

    assert out.shape == (B, cfg["hidden"]), out.shape
    assert bool(jnp.all(jnp.isfinite(out)))
    print("KERNEL_OK")
</pallas_src>

<mosaic_0001>
module attributes {stable_mosaic.version = 11 : i64} {
  func.func @kernel(%arg0: i32, %arg1: i32, %arg2: memref<48x32xbf16, #tpu.memory_space<vmem>>, %arg3: memref<32x96xbf16, #tpu.memory_space<vmem>>, %arg4: memref<1x96xf32, #tpu.memory_space<vmem>>, %arg5: memref<1x32xf32, #tpu.memory_space<vmem>>, %arg6: memref<1x32xf32, #tpu.memory_space<vmem>>, %arg7: memref<48x96xbf16, #tpu.memory_space<vmem>>) attributes {dimension_semantics = [#tpu.dimension_semantics<parallel>, #tpu.dimension_semantics<parallel>], iteration_bounds = array<i64: 1, 1>, scalar_prefetch = 0 : i64, scratch_operands = 0 : i64, tpu.core_type = #tpu.core_type<tc>, window_params = [{transform_indices = @transform_0, window_bounds = array<i64: 48, 32>}, {transform_indices = @transform_1, window_bounds = array<i64: 32, 96>}, {transform_indices = @transform_2, window_bounds = array<i64: 1, 96>}, {pipeline_mode = #tpu.pipeline_mode<synchronous>, transform_indices = @transform_3, window_bounds = array<i64: 1, 32>}, {pipeline_mode = #tpu.pipeline_mode<synchronous>, transform_indices = @transform_4, window_bounds = array<i64: 1, 32>}, {transform_indices = @transform_5, window_bounds = array<i64: 48, 96>}]} {
    %c0 = arith.constant 0 : index
    %c0_0 = arith.constant 0 : index
    %0 = vector.load %arg2[%c0, %c0_0] : memref<48x32xbf16, #tpu.memory_space<vmem>>, vector<48x32xbf16>
    %1 = arith.extf %0 : vector<48x32xbf16> to vector<48x32xf32>
    %cst = arith.constant dense<0.000000e+00> : vector<48xf32>
    %2 = vector.multi_reduction <add>, %1, %cst [1] : vector<48x32xf32> to vector<48xf32>
    %3 = vector.shape_cast %2 : vector<48xf32> to vector<48x1xf32>
    %cst_1 = arith.constant 3.200000e+01 : f32
    %4 = vector.broadcast %cst_1 : f32 to vector<48x1xf32>
    %5 = arith.divf %3, %4 : vector<48x1xf32>
    %6 = vector.broadcast %5 : vector<48x1xf32> to vector<48x32xf32>
    %7 = arith.subf %1, %6 : vector<48x32xf32>
    %8 = arith.mulf %7, %7 : vector<48x32xf32>
    %cst_2 = arith.constant dense<0.000000e+00> : vector<48xf32>
    %9 = vector.multi_reduction <add>, %8, %cst_2 [1] : vector<48x32xf32> to vector<48xf32>
    %10 = vector.shape_cast %9 : vector<48xf32> to vector<48x1xf32>
    %cst_3 = arith.constant 3.200000e+01 : f32
    %11 = vector.broadcast %cst_3 : f32 to vector<48x1xf32>
    %12 = arith.divf %10, %11 : vector<48x1xf32>
    %13 = vector.broadcast %5 : vector<48x1xf32> to vector<48x32xf32>
    %14 = arith.subf %1, %13 : vector<48x32xf32>
    %cst_4 = arith.constant 9.99999996E-13 : f32
    %15 = vector.broadcast %cst_4 : f32 to vector<48x1xf32>
    %16 = arith.addf %12, %15 : vector<48x1xf32>
    %17 = math.rsqrt %16 : vector<48x1xf32>
    %18 = vector.broadcast %17 : vector<48x1xf32> to vector<48x32xf32>
    %19 = arith.mulf %14, %18 : vector<48x32xf32>
    %c0_5 = arith.constant 0 : index
    %c0_6 = arith.constant 0 : index
    %20 = vector.load %arg5[%c0_5, %c0_6] : memref<1x32xf32, #tpu.memory_space<vmem>>, vector<1x32xf32>
    %21 = vector.broadcast %20 : vector<1x32xf32> to vector<48x32xf32>
    %22 = arith.mulf %19, %21 : vector<48x32xf32>
    %c0_7 = arith.constant 0 : index
    %c0_8 = arith.constant 0 : index
    %23 = vector.load %arg6[%c0_7, %c0_8] : memref<1x32xf32, #tpu.memory_space<vmem>>, vector<1x32xf32>
    %24 = vector.broadcast %23 : vector<1x32xf32> to vector<48x32xf32>
    %25 = arith.addf %22, %24 : vector<48x32xf32>
    %26 = arith.truncf %25 : vector<48x32xf32> to vector<48x32xbf16>
    %c0_9 = arith.constant 0 : index
    %c0_10 = arith.constant 0 : index
    %27 = vector.load %arg3[%c0_9, %c0_10] : memref<32x96xbf16, #tpu.memory_space<vmem>>, vector<32x96xbf16>
    %cst_11 = arith.constant dense<0.000000e+00> : vector<48x96xf32>
    %28 = tpu.matmul %26, %27, %cst_11 {dimension_numbers = #tpu.dot_dimension_numbers<[1], [0], [0], [1], [0, 0, 1, 1], [], []>} : vector<48x32xbf16>, vector<32x96xbf16>, vector<48x96xf32> -> vector<48x96xf32>
    %c0_12 = arith.constant 0 : index
    %c0_13 = arith.constant 0 : index
    %29 = vector.load %arg4[%c0_12, %c0_13] : memref<1x96xf32, #tpu.memory_space<vmem>>, vector<1x96xf32>
    %30 = vector.broadcast %29 : vector<1x96xf32> to vector<48x96xf32>
    %31 = arith.addf %28, %30 : vector<48x96xf32>
    %32 = arith.truncf %31 : vector<48x96xf32> to vector<48x96xbf16>
    %c0_14 = arith.constant 0 : index
    %c0_15 = arith.constant 0 : index
    %33 = vector.load %arg7[%c0_14, %c0_15] : memref<48x96xbf16, #tpu.memory_space<vmem>>, vector<48x96xbf16>
    tpu.vector_store %arg7[%c0_14, %c0_15], %32 {strides = array<i32>} : memref<48x96xbf16, #tpu.memory_space<vmem>>, vector<48x96xbf16>,
    return
  }
  func.func @transform_0(%arg0: i32, %arg1: i32) -> (i32, i32) {
    %c0_i32 = arith.constant 0 : i32
    %c0_i32_0 = arith.constant 0 : i32
    return %arg0, %c0_i32 : i32, i32
  }
  func.func @transform_1(%arg0: i32, %arg1: i32) -> (i32, i32) {
    %c0_i32 = arith.constant 0 : i32
    %c0_i32_0 = arith.constant 0 : i32
    return %c0_i32, %arg1 : i32, i32
  }
  func.func @transform_2(%arg0: i32, %arg1: i32) -> (i32, i32) {
    %c0_i32 = arith.constant 0 : i32
    %c0_i32_0 = arith.constant 0 : i32
    return %c0_i32, %arg1 : i32, i32
  }
  func.func @transform_3(%arg0: i32, %arg1: i32) -> (i32, i32) {
    %c0_i32 = arith.constant 0 : i32
    %c0_i32_0 = arith.constant 0 : i32
    %c0_i32_1 = arith.constant 0 : i32
    return %c0_i32, %c0_i32_0 : i32, i32
  }
  func.func @transform_4(%arg0: i32, %arg1: i32) -> (i32, i32) {
    %c0_i32 = arith.constant 0 : i32
    %c0_i32_0 = arith.constant 0 : i32
    %c0_i32_1 = arith.constant 0 : i32
    return %c0_i32, %c0_i32_0 : i32, i32
  }
  func.func @transform_5(%arg0: i32, %arg1: i32) -> (i32, i32) {
    %c0_i32 = arith.constant 0 : i32
    return %arg0, %arg1 : i32, i32
  }
}

module attributes {stable_mosaic.version = 11 : i64} {
  func.func @kernel(%arg0: i32, %arg1: i32, %arg2: memref<32x48xbf16, #tpu.memory_space<vmem>>, %arg3: memref<48x32xbf16, #tpu.memory_space<vmem>>, %arg4: memref<1x32xf32, #tpu.memory_space<vmem>>, %arg5: memref<32x32xbf16, #tpu.memory_space<vmem>>) attributes {dimension_semantics = [#tpu.dimension_semantics<parallel>, #tpu.dimension_semantics<parallel>], iteration_bounds = array<i64: 1, 1>, scalar_prefetch = 0 : i64, scratch_operands = 0 : i64, tpu.core_type = #tpu.core_type<tc>, window_params = [{transform_indices = @transform_0, window_bounds = array<i64: 32, 48>}, {transform_indices = @transform_1, window_bounds = array<i64: 48, 32>}, {transform_indices = @transform_2, window_bounds = array<i64: 1, 32>}, {transform_indices = @transform_3, window_bounds = array<i64: 32, 32>}]} {
    %c0 = arith.constant 0 : index
    %c0_0 = arith.constant 0 : index
    %0 = vector.load %arg2[%c0, %c0_0] : memref<32x48xbf16, #tpu.memory_space<vmem>>, vector<32x48xbf16>
    %c0_1 = arith.constant 0 : index
    %c0_2 = arith.constant 0 : index
    %1 = vector.load %arg3[%c0_1, %c0_2] : memref<48x32xbf16, #tpu.memory_space<vmem>>, vector<48x32xbf16>
    %cst = arith.constant dense<0.000000e+00> : vector<32x32xf32>
    %2 = tpu.matmul %0, %1, %cst {dimension_numbers = #tpu.dot_dimension_numbers<[1], [0], [0], [1], [0, 0, 1, 1], [], []>} : vector<32x48xbf16>, vector<48x32xbf16>, vector<32x32xf32> -> vector<32x32xf32>
    %c0_3 = arith.constant 0 : index
    %c0_4 = arith.constant 0 : index
    %3 = vector.load %arg4[%c0_3, %c0_4] : memref<1x32xf32, #tpu.memory_space<vmem>>, vector<1x32xf32>
    %4 = vector.broadcast %3 : vector<1x32xf32> to vector<32x32xf32>
    %5 = arith.addf %2, %4 : vector<32x32xf32>
    %6 = arith.truncf %5 : vector<32x32xf32> to vector<32x32xbf16>
    %c0_5 = arith.constant 0 : index
    %c0_6 = arith.constant 0 : index
    %7 = vector.load %arg5[%c0_5, %c0_6] : memref<32x32xbf16, #tpu.memory_space<vmem>>, vector<32x32xbf16>
    tpu.vector_store %arg5[%c0_5, %c0_6], %6 {strides = array<i32>} : memref<32x32xbf16, #tpu.memory_space<vmem>>, vector<32x32xbf16>,
    return
  }
  func.func @transform_0(%arg0: i32, %arg1: i32) -> (i32, i32) {
    %c0_i32 = arith.constant 0 : i32
    %c0_i32_0 = arith.constant 0 : i32
    return %arg0, %c0_i32 : i32, i32
  }
  func.func @transform_1(%arg0: i32, %arg1: i32) -> (i32, i32) {
    %c0_i32 = arith.constant 0 : i32
    %c0_i32_0 = arith.constant 0 : i32
    return %c0_i32, %arg1 : i32, i32
  }
  func.func @transform_2(%arg0: i32, %arg1: i32) -> (i32, i32) {
    %c0_i32 = arith.constant 0 : i32
    %c0_i32_0 = arith.constant 0 : i32
    return %c0_i32, %arg1 : i32, i32
  }
  func.func @transform_3(%arg0: i32, %arg1: i32) -> (i32, i32) {
    %c0_i32 = arith.constant 0 : i32
    return %arg0, %arg1 : i32, i32
  }
}

module attributes {stable_mosaic.version = 11 : i64} {
  func.func @kernel(%arg0: i32, %arg1: i32, %arg2: memref<48x32xbf16, #tpu.memory_space<vmem>>, %arg3: memref<32x32xbf16, #tpu.memory_space<vmem>>, %arg4: memref<1x32xf32, #tpu.memory_space<vmem>>, %arg5: memref<48x32xbf16, #tpu.memory_space<vmem>>, %arg6: memref<48x32xbf16, #tpu.memory_space<vmem>>) attributes {dimension_semantics = [#tpu.dimension_semantics<parallel>, #tpu.dimension_semantics<parallel>], iteration_bounds = array<i64: 1, 1>, scalar_prefetch = 0 : i64, scratch_operands = 0 : i64, tpu.core_type = #tpu.core_type<tc>, window_params = [{transform_indices = @transform_0, window_bounds = array<i64: 48, 32>}, {transform_indices = @transform_1, window_bounds = array<i64: 32, 32>}, {transform_indices = @transform_2, window_bounds = array<i64: 1, 32>}, {transform_indices = @transform_3, window_bounds = array<i64: 48, 32>}, {transform_indices = @transform_4, window_bounds = array<i64: 48, 32>}]} {
    %c0 = arith.constant 0 : index
    %c0_0 = arith.constant 0 : index
    %0 = vector.load %arg2[%c0, %c0_0] : memref<48x32xbf16, #tpu.memory_space<vmem>>, vector<48x32xbf16>
    %c0_1 = arith.constant 0 : index
    %c0_2 = arith.constant 0 : index
    %1 = vector.load %arg3[%c0_1, %c0_2] : memref<32x32xbf16, #tpu.memory_space<vmem>>, vector<32x32xbf16>
    %cst = arith.constant dense<0.000000e+00> : vector<48x32xf32>
    %2 = tpu.matmul %0, %1, %cst {dimension_numbers = #tpu.dot_dimension_numbers<[1], [0], [0], [1], [0, 0, 1, 1], [], []>} : vector<48x32xbf16>, vector<32x32xbf16>, vector<48x32xf32> -> vector<48x32xf32>
    %c0_3 = arith.constant 0 : index
    %c0_4 = arith.constant 0 : index
    %3 = vector.load %arg4[%c0_3, %c0_4] : memref<1x32xf32, #tpu.memory_space<vmem>>, vector<1x32xf32>
    %4 = vector.broadcast %3 : vector<1x32xf32> to vector<48x32xf32>
    %5 = arith.addf %2, %4 : vector<48x32xf32>
    %c0_5 = arith.constant 0 : index
    %c0_6 = arith.constant 0 : index
    %6 = vector.load %arg5[%c0_5, %c0_6] : memref<48x32xbf16, #tpu.memory_space<vmem>>, vector<48x32xbf16>
    %7 = arith.extf %6 : vector<48x32xbf16> to vector<48x32xf32>
    %8 = arith.addf %5, %7 : vector<48x32xf32>
    %9 = arith.truncf %8 : vector<48x32xf32> to vector<48x32xbf16>
    %c0_7 = arith.constant 0 : index
    %c0_8 = arith.constant 0 : index
    %10 = vector.load %arg6[%c0_7, %c0_8] : memref<48x32xbf16, #tpu.memory_space<vmem>>, vector<48x32xbf16>
    tpu.vector_store %arg6[%c0_7, %c0_8], %9 {strides = array<i32>} : memref<48x32xbf16, #tpu.memory_space<vmem>>, vector<48x32xbf16>,
    return
  }
  func.func @transform_0(%arg0: i32, %arg1: i32) -> (i32, i32) {
    %c0_i32 = arith.constant 0 : i32
    %c0_i32_0 = arith.constant 0 : i32
    return %arg0, %c0_i32 : i32, i32
  }
  func.func @transform_1(%arg0: i32, %arg1: i32) -> (i32, i32) {
    %c0_i32 = arith.constant 0 : i32
    %c0_i32_0 = arith.constant 0 : i32
    return %c0_i32, %arg1 : i32, i32
  }
  func.func @transform_2(%arg0: i32, %arg1: i32) -> (i32, i32) {
    %c0_i32 = arith.constant 0 : i32
    %c0_i32_0 = arith.constant 0 : i32
    return %c0_i32, %arg1 : i32, i32
  }
  func.func @transform_3(%arg0: i32, %arg1: i32) -> (i32, i32) {
    %c0_i32 = arith.constant 0 : i32
    return %arg0, %arg1 : i32, i32
  }
  func.func @transform_4(%arg0: i32, %arg1: i32) -> (i32, i32) {
    %c0_i32 = arith.constant 0 : i32
    return %arg0, %arg1 : i32, i32
  }
}

module attributes {stable_mosaic.version = 11 : i64} {
  func.func @_attn_kernel(%arg0: i32, %arg1: memref<1x24x96xbf16, #tpu.memory_space<vmem>>, %arg2: memref<1x24x32xbf16, #tpu.memory_space<vmem>>) attributes {dimension_semantics = [#tpu.dimension_semantics<parallel>], iteration_bounds = array<i64: 2>, scalar_prefetch = 0 : i64, scratch_operands = 0 : i64, tpu.core_type = #tpu.core_type<tc>, window_params = [{transform_indices = @transform_0, window_bounds = array<i64: 1, 24, 96>}, {transform_indices = @transform_1, window_bounds = array<i64: 1, 24, 32>}]} {
    %0 = tpu.iota {dimensions = array<i32: 1>} : vector<1x24xi32>
    %c17_i32 = arith.constant 17 : i32
    %1 = vector.broadcast %c17_i32 : i32 to vector<1x24xi32>
    %2 = arith.cmpi slt, %0, %1 : vector<1x24xi32>
    %c0 = arith.constant 0 : index
    %c0_0 = arith.constant 0 : index
    %c0_1 = arith.constant 0 : index
    %3 = vector.load %arg1[%c0, %c0_0, %c0_1] : memref<1x24x96xbf16, #tpu.memory_space<vmem>>, vector<1x24x8xbf16>
    %4 = vector.shape_cast %3 : vector<1x24x8xbf16> to vector<24x8xbf16>
    %cst = arith.constant 3.535160e-01 : bf16
    %5 = vector.broadcast %cst : bf16 to vector<24x8xbf16>
    %6 = arith.mulf %4, %5 : vector<24x8xbf16>
    %c0_2 = arith.constant 0 : index
    %c0_3 = arith.constant 0 : index
    %c32 = arith.constant 32 : index
    %7 = vector.load %arg1[%c0_2, %c0_3, %c32] : memref<1x24x96xbf16, #tpu.memory_space<vmem>>, vector<1x24x8xbf16>
    %8 = vector.shape_cast %7 : vector<1x24x8xbf16> to vector<24x8xbf16>
    %c0_4 = arith.constant 0 : index
    %c0_5 = arith.constant 0 : index
    %c64 = arith.constant 64 : index
    %9 = vector.load %arg1[%c0_4, %c0_5, %c64] : memref<1x24x96xbf16, #tpu.memory_space<vmem>>, vector<1x24x8xbf16>
    %10 = vector.shape_cast %9 : vector<1x24x8xbf16> to vector<24x8xbf16>
    %cst_6 = arith.constant dense<0.000000e+00> : vector<24x24xf32>
    %11 = tpu.matmul %6, %8, %cst_6 {dimension_numbers = #tpu.dot_dimension_numbers<[1], [1], [0], [0], [0, 0, 1, 0], [], []>} : vector<24x8xbf16>, vector<24x8xbf16>, vector<24x24xf32> -> vector<24x24xf32>
    %cst_7 = arith.constant -1.000000e+30 : f32
    %12 = vector.shape_cast %2 : vector<1x24xi1> to vector<1x24xi1>
    %13 = vector.broadcast %12 : vector<1x24xi1> to vector<24x24xi1>
    %14 = vector.broadcast %cst_7 : f32 to vector<24x24xf32>
    %15 = arith.select %13, %11, %14 : vector<24x24xi1>, vector<24x24xf32>
    %cst_8 = arith.constant dense<0xFF800000> : vector<24xf32>
    %16 = vector.multi_reduction <maximumf>, %15, %cst_8 [1] : vector<24x24xf32> to vector<24xf32>
    %17 = vector.shape_cast %16 : vector<24xf32> to vector<24x1xf32>
    %18 = vector.broadcast %17 : vector<24x1xf32> to vector<24x24xf32>
    %19 = arith.subf %15, %18 : vector<24x24xf32>
    %20 = math.exp %19 : vector<24x24xf32>
    %cst_9 = arith.constant dense<0.000000e+00> : vector<24xf32>
    %21 = vector.multi_reduction <add>, %20, %cst_9 [1] : vector<24x24xf32> to vector<24xf32>
    %22 = vector.shape_cast %21 : vector<24xf32> to vector<24x1xf32>
    %23 = tpu.reciprocal %22 {approx = true} : vector<24x1xf32> -> vector<24x1xf32>
    %24 = vector.broadcast %23 : vector<24x1xf32> to vector<24x24xf32>
    %25 = arith.mulf %20, %24 : vector<24x24xf32>
    %26 = arith.truncf %25 : vector<24x24xf32> to vector<24x24xbf16>
    %cst_10 = arith.constant dense<0.000000e+00> : vector<24x8xf32>
    %27 = tpu.matmul %26, %10, %cst_10 {dimension_numbers = #tpu.dot_dimension_numbers<[1], [0], [0], [1], [0, 0, 1, 1], [], []>} : vector<24x24xbf16>, vector<24x8xbf16>, vector<24x8xf32> -> vector<24x8xf32>
    %c0_11 = arith.constant 0 : index
    %c0_12 = arith.constant 0 : index
    %c8 = arith.constant 8 : index
    %28 = vector.load %arg1[%c0_11, %c0_12, %c8] : memref<1x24x96xbf16, #tpu.memory_space<vmem>>, vector<1x24x8xbf16>
    %29 = vector.shape_cast %28 : vector<1x24x8xbf16> to vector<24x8xbf16>
    %cst_13 = arith.constant 3.535160e-01 : bf16
    %30 = vector.broadcast %cst_13 : bf16 to vector<24x8xbf16>
    %31 = arith.mulf %29, %30 : vector<24x8xbf16>
    %c0_14 = arith.constant 0 : index
    %c0_15 = arith.constant 0 : index
    %c40 = arith.constant 40 : index
    %32 = vector.load %arg1[%c0_14, %c0_15, %c40] : memref<1x24x96xbf16, #tpu.memory_space<vmem>>, vector<1x24x8xbf16>
    %33 = vector.shape_cast %32 : vector<1x24x8xbf16> to vector<24x8xbf16>
    %c0_16 = arith.constant 0 : index
    %c0_17 = arith.constant 0 : index
    %c72 = arith.constant 72 : index
    %34 = vector.load %arg1[%c0_16, %c0_17, %c72] : memref<1x24x96xbf16, #tpu.memory_space<vmem>>, vector<1x24x8xbf16>
    %35 = vector.shape_cast %34 : vector<1x24x8xbf16> to vector<24x8xbf16>
    %cst_18 = arith.constant dense<0.000000e+00> : vector<24x24xf32>
    %36 = tpu.matmul %31, %33, %cst_18 {dimension_numbers = #tpu.dot_dimension_numbers<[1], [1], [0], [0], [0, 0, 1, 0], [], []>} : vector<24x8xbf16>, vector<24x8xbf16>, vector<24x24xf32> -> vector<24x24xf32>
    %cst_19 = arith.constant -1.000000e+30 : f32
    %37 = vector.shape_cast %2 : vector<1x24xi1> to vector<1x24xi1>
    %38 = vector.broadcast %37 : vector<1x24xi1> to vector<24x24xi1>
    %39 = vector.broadcast %cst_19 : f32 to vector<24x24xf32>
    %40 = arith.select %38, %36, %39 : vector<24x24xi1>, vector<24x24xf32>
    %cst_20 = arith.constant dense<0xFF800000> : vector<24xf32>
    %41 = vector.multi_reduction <maximumf>, %40, %cst_20 [1] : vector<24x24xf32> to vector<24xf32>
    %42 = vector.shape_cast %41 : vector<24xf32> to vector<24x1xf32>
    %43 = vector.broadcast %42 : vector<24x1xf32> to vector<24x24xf32>
    %44 = arith.subf %40, %43 : vector<24x24xf32>
    %45 = math.exp %44 : vector<24x24xf32>
    %cst_21 = arith.constant dense<0.000000e+00> : vector<24xf32>
    %46 = vector.multi_reduction <add>, %45, %cst_21 [1] : vector<24x24xf32> to vector<24xf32>
    %47 = vector.shape_cast %46 : vector<24xf32> to vector<24x1xf32>
    %48 = tpu.reciprocal %47 {approx = true} : vector<24x1xf32> -> vector<24x1xf32>
    %49 = vector.broadcast %48 : vector<24x1xf32> to vector<24x24xf32>
    %50 = arith.mulf %45, %49 : vector<24x24xf32>
    %51 = arith.truncf %50 : vector<24x24xf32> to vector<24x24xbf16>
    %cst_22 = arith.constant dense<0.000000e+00> : vector<24x8xf32>
    %52 = tpu.matmul %51, %35, %cst_22 {dimension_numbers = #tpu.dot_dimension_numbers<[1], [0], [0], [1], [0, 0, 1, 1], [], []>} : vector<24x24xbf16>, vector<24x8xbf16>, vector<24x8xf32> -> vector<24x8xf32>
    %c0_23 = arith.constant 0 : index
    %c0_24 = arith.constant 0 : index
    %c16 = arith.constant 16 : index
    %53 = vector.load %arg1[%c0_23, %c0_24, %c16] : memref<1x24x96xbf16, #tpu.memory_space<vmem>>, vector<1x24x8xbf16>
    %54 = vector.shape_cast %53 : vector<1x24x8xbf16> to vector<24x8xbf16>
    %cst_25 = arith.constant 3.535160e-01 : bf16
    %55 = vector.broadcast %cst_25 : bf16 to vector<24x8xbf16>
    %56 = arith.mulf %54, %55 : vector<24x8xbf16>
    %c0_26 = arith.constant 0 : index
    %c0_27 = arith.constant 0 : index
    %c48 = arith.constant 48 : index
    %57 = vector.load %arg1[%c0_26, %c0_27, %c48] : memref<1x24x96xbf16, #tpu.memory_space<vmem>>, vector<1x24x8xbf16>
    %58 = vector.shape_cast %57 : vector<1x24x8xbf16> to vector<24x8xbf16>
    %c0_28 = arith.constant 0 : index
    %c0_29 = arith.constant 0 : index
    %c80 = arith.constant 80 : index
    %59 = vector.load %arg1[%c0_28, %c0_29, %c80] : memref<1x24x96xbf16, #tpu.memory_space<vmem>>, vector<1x24x8xbf16>
    %60 = vector.shape_cast %59 : vector<1x24x8xbf16> to vector<24x8xbf16>
    %cst_30 = arith.constant dense<0.000000e+00> : vector<24x24xf32>
    %61 = tpu.matmul %56, %58, %cst_30 {dimension_numbers = #tpu.dot_dimension_numbers<[1], [1], [0], [0], [0, 0, 1, 0], [], []>} : vector<24x8xbf16>, vector<24x8xbf16>, vector<24x24xf32> -> vector<24x24xf32>
    %cst_31 = arith.constant -1.000000e+30 : f32
    %62 = vector.shape_cast %2 : vector<1x24xi1> to vector<1x24xi1>
    %63 = vector.broadcast %62 : vector<1x24xi1> to vector<24x24xi1>
    %64 = vector.broadcast %cst_31 : f32 to vector<24x24xf32>
    %65 = arith.select %63, %61, %64 : vector<24x24xi1>, vector<24x24xf32>
    %cst_32 = arith.constant dense<0xFF800000> : vector<24xf32>
    %66 = vector.multi_reduction <maximumf>, %65, %cst_32 [1] : vector<24x24xf32> to vector<24xf32>
    %67 = vector.shape_cast %66 : vector<24xf32> to vector<24x1xf32>
    %68 = vector.broadcast %67 : vector<24x1xf32> to vector<24x24xf32>
    %69 = arith.subf %65, %68 : vector<24x24xf32>
    %70 = math.exp %69 : vector<24x24xf32>
    %cst_33 = arith.constant dense<0.000000e+00> : vector<24xf32>
    %71 = vector.multi_reduction <add>, %70, %cst_33 [1] : vector<24x24xf32> to vector<24xf32>
    %72 = vector.shape_cast %71 : vector<24xf32> to vector<24x1xf32>
    %73 = tpu.reciprocal %72 {approx = true} : vector<24x1xf32> -> vector<24x1xf32>
    %74 = vector.broadcast %73 : vector<24x1xf32> to vector<24x24xf32>
    %75 = arith.mulf %70, %74 : vector<24x24xf32>
    %76 = arith.truncf %75 : vector<24x24xf32> to vector<24x24xbf16>
    %cst_34 = arith.constant dense<0.000000e+00> : vector<24x8xf32>
    %77 = tpu.matmul %76, %60, %cst_34 {dimension_numbers = #tpu.dot_dimension_numbers<[1], [0], [0], [1], [0, 0, 1, 1], [], []>} : vector<24x24xbf16>, vector<24x8xbf16>, vector<24x8xf32> -> vector<24x8xf32>
    %c0_35 = arith.constant 0 : index
    %c0_36 = arith.constant 0 : index
    %c24 = arith.constant 24 : index
    %78 = vector.load %arg1[%c0_35, %c0_36, %c24] : memref<1x24x96xbf16, #tpu.memory_space<vmem>>, vector<1x24x8xbf16>
    %79 = vector.shape_cast %78 : vector<1x24x8xbf16> to vector<24x8xbf16>
    %cst_37 = arith.constant 3.535160e-01 : bf16
    %80 = vector.broadcast %cst_37 : bf16 to vector<24x8xbf16>
    %81 = arith.mulf %79, %80 : vector<24x8xbf16>
    %c0_38 = arith.constant 0 : index
    %c0_39 = arith.constant 0 : index
    %c56 = arith.constant 56 : index
    %82 = vector.load %arg1[%c0_38, %c0_39, %c56] : memref<1x24x96xbf16, #tpu.memory_space<vmem>>, vector<1x24x8xbf16>
    %83 = vector.shape_cast %82 : vector<1x24x8xbf16> to vector<24x8xbf16>
    %c0_40 = arith.constant 0 : index
    %c0_41 = arith.constant 0 : index
    %c88 = arith.constant 88 : index
    %84 = vector.load %arg1[%c0_40, %c0_41, %c88] : memref<1x24x96xbf16, #tpu.memory_space<vmem>>, vector<1x24x8xbf16>
    %85 = vector.shape_cast %84 : vector<1x24x8xbf16> to vector<24x8xbf16>
    %cst_42 = arith.constant dense<0.000000e+00> : vector<24x24xf32>
    %86 = tpu.matmul %81, %83, %cst_42 {dimension_numbers = #tpu.dot_dimension_numbers<[1], [1], [0], [0], [0, 0, 1, 0], [], []>} : vector<24x8xbf16>, vector<24x8xbf16>, vector<24x24xf32> -> vector<24x24xf32>
    %cst_43 = arith.constant -1.000000e+30 : f32
    %87 = vector.shape_cast %2 : vector<1x24xi1> to vector<1x24xi1>
    %88 = vector.broadcast %87 : vector<1x24xi1> to vector<24x24xi1>
    %89 = vector.broadcast %cst_43 : f32 to vector<24x24xf32>
    %90 = arith.select %88, %86, %89 : vector<24x24xi1>, vector<24x24xf32>
    %cst_44 = arith.constant dense<0xFF800000> : vector<24xf32>
    %91 = vector.multi_reduction <maximumf>, %90, %cst_44 [1] : vector<24x24xf32> to vector<24xf32>
    %92 = vector.shape_cast %91 : vector<24xf32> to vector<24x1xf32>
    %93 = vector.broadcast %92 : vector<24x1xf32> to vector<24x24xf32>
    %94 = arith.subf %90, %93 : vector<24x24xf32>
    %95 = math.exp %94 : vector<24x24xf32>
    %cst_45 = arith.constant dense<0.000000e+00> : vector<24xf32>
    %96 = vector.multi_reduction <add>, %95, %cst_45 [1] : vector<24x24xf32> to vector<24xf32>
    %97 = vector.shape_cast %96 : vector<24xf32> to vector<24x1xf32>
    %98 = tpu.reciprocal %97 {approx = true} : vector<24x1xf32> -> vector<24x1xf32>
    %99 = vector.broadcast %98 : vector<24x1xf32> to vector<24x24xf32>
    %100 = arith.mulf %95, %99 : vector<24x24xf32>
    %101 = arith.truncf %100 : vector<24x24xf32> to vector<24x24xbf16>
    %cst_46 = arith.constant dense<0.000000e+00> : vector<24x8xf32>
    %102 = tpu.matmul %101, %85, %cst_46 {dimension_numbers = #tpu.dot_dimension_numbers<[1], [0], [0], [1], [0, 0, 1, 1], [], []>} : vector<24x24xbf16>, vector<24x8xbf16>, vector<24x8xf32> -> vector<24x8xf32>
    %103 = tpu.concatenate %27, %52, %77, %102 in 1 : vector<24x8xf32>, vector<24x8xf32>, vector<24x8xf32>, vector<24x8xf32> -> vector<24x32xf32>
    %104 = arith.truncf %103 : vector<24x32xf32> to vector<24x32xbf16>
    %c0_47 = arith.constant 0 : index
    %c0_48 = arith.constant 0 : index
    %c0_49 = arith.constant 0 : index
    %105 = vector.load %arg2[%c0_47, %c0_48, %c0_49] : memref<1x24x32xbf16, #tpu.memory_space<vmem>>, vector<1x24x32xbf16>
    %106 = vector.shape_cast %105 : vector<1x24x32xbf16> to vector<24x32xbf16>
    %107 = vector.shape_cast %104 : vector<24x32xbf16> to vector<1x24x32xbf16>
    tpu.vector_store %arg2[%c0_47, %c0_48, %c0_49], %107 {strides = array<i32>} : memref<1x24x32xbf16, #tpu.memory_space<vmem>>, vector<1x24x32xbf16>,
    return
  }
  func.func @transform_0(%arg0: i32) -> (i32, i32, i32) {
    %c0_i32 = arith.constant 0 : i32
    %c0_i32_0 = arith.constant 0 : i32
    %c0_i32_1 = arith.constant 0 : i32
    return %arg0, %c0_i32, %c0_i32_0 : i32, i32, i32
  }
  func.func @transform_1(%arg0: i32) -> (i32, i32, i32) {
    %c0_i32 = arith.constant 0 : i32
    %c0_i32_0 = arith.constant 0 : i32
    %c0_i32_1 = arith.constant 0 : i32
    return %arg0, %c0_i32, %c0_i32_0 : i32, i32, i32
  }
}

module attributes {stable_mosaic.version = 11 : i64} {
  func.func @kernel(%arg0: i32, %arg1: i32, %arg2: memref<48x64xbf16, #tpu.memory_space<vmem>>, %arg3: memref<64x32xbf16, #tpu.memory_space<vmem>>, %arg4: memref<1x32xf32, #tpu.memory_space<vmem>>, %arg5: memref<48x32xbf16, #tpu.memory_space<vmem>>, %arg6: memref<48x32xbf16, #tpu.memory_space<vmem>>) attributes {dimension_semantics = [#tpu.dimension_semantics<parallel>, #tpu.dimension_semantics<parallel>], iteration_bounds = array<i64: 1, 1>, scalar_prefetch = 0 : i64, scratch_operands = 0 : i64, tpu.core_type = #tpu.core_type<tc>, window_params = [{transform_indices = @transform_0, window_bounds = array<i64: 48, 64>}, {transform_indices = @transform_1, window_bounds = array<i64: 64, 32>}, {transform_indices = @transform_2, window_bounds = array<i64: 1, 32>}, {transform_indices = @transform_3, window_bounds = array<i64: 48, 32>}, {transform_indices = @transform_4, window_bounds = array<i64: 48, 32>}]} {
    %c0 = arith.constant 0 : index
    %c0_0 = arith.constant 0 : index
    %0 = vector.load %arg2[%c0, %c0_0] : memref<48x64xbf16, #tpu.memory_space<vmem>>, vector<48x64xbf16>
    %c0_1 = arith.constant 0 : index
    %c0_2 = arith.constant 0 : index
    %1 = vector.load %arg3[%c0_1, %c0_2] : memref<64x32xbf16, #tpu.memory_space<vmem>>, vector<64x32xbf16>
    %cst = arith.constant dense<0.000000e+00> : vector<48x32xf32>
    %2 = tpu.matmul %0, %1, %cst {dimension_numbers = #tpu.dot_dimension_numbers<[1], [0], [0], [1], [0, 0, 1, 1], [], []>} : vector<48x64xbf16>, vector<64x32xbf16>, vector<48x32xf32> -> vector<48x32xf32>
    %c0_3 = arith.constant 0 : index
    %c0_4 = arith.constant 0 : index
    %3 = vector.load %arg4[%c0_3, %c0_4] : memref<1x32xf32, #tpu.memory_space<vmem>>, vector<1x32xf32>
    %4 = vector.broadcast %3 : vector<1x32xf32> to vector<48x32xf32>
    %5 = arith.addf %2, %4 : vector<48x32xf32>
    %c0_5 = arith.constant 0 : index
    %c0_6 = arith.constant 0 : index
    %6 = vector.load %arg5[%c0_5, %c0_6] : memref<48x32xbf16, #tpu.memory_space<vmem>>, vector<48x32xbf16>
    %7 = arith.extf %6 : vector<48x32xbf16> to vector<48x32xf32>
    %8 = arith.addf %5, %7 : vector<48x32xf32>
    %9 = arith.truncf %8 : vector<48x32xf32> to vector<48x32xbf16>
    %c0_7 = arith.constant 0 : index
    %c0_8 = arith.constant 0 : index
    %10 = vector.load %arg6[%c0_7, %c0_8] : memref<48x32xbf16, #tpu.memory_space<vmem>>, vector<48x32xbf16>
    tpu.vector_store %arg6[%c0_7, %c0_8], %9 {strides = array<i32>} : memref<48x32xbf16, #tpu.memory_space<vmem>>, vector<48x32xbf16>,
    return
  }
  func.func @transform_0(%arg0: i32, %arg1: i32) -> (i32, i32) {
    %c0_i32 = arith.constant 0 : i32
    %c0_i32_0 = arith.constant 0 : i32
    return %arg0, %c0_i32 : i32, i32
  }
  func.func @transform_1(%arg0: i32, %arg1: i32) -> (i32, i32) {
    %c0_i32 = arith.constant 0 : i32
    %c0_i32_0 = arith.constant 0 : i32
    return %c0_i32, %arg1 : i32, i32
  }
  func.func @transform_2(%arg0: i32, %arg1: i32) -> (i32, i32) {
    %c0_i32 = arith.constant 0 : i32
    %c0_i32_0 = arith.constant 0 : i32
    return %c0_i32, %arg1 : i32, i32
  }
  func.func @transform_3(%arg0: i32, %arg1: i32) -> (i32, i32) {
    %c0_i32 = arith.constant 0 : i32
    return %arg0, %arg1 : i32, i32
  }
  func.func @transform_4(%arg0: i32, %arg1: i32) -> (i32, i32) {
    %c0_i32 = arith.constant 0 : i32
    return %arg0, %arg1 : i32, i32
  }
}

module attributes {stable_mosaic.version = 11 : i64} {
  func.func @kernel(%arg0: i32, %arg1: i32, %arg2: memref<48x32xbf16, #tpu.memory_space<vmem>>, %arg3: memref<32x64xbf16, #tpu.memory_space<vmem>>, %arg4: memref<1x64xf32, #tpu.memory_space<vmem>>, %arg5: memref<1x32xf32, #tpu.memory_space<vmem>>, %arg6: memref<1x32xf32, #tpu.memory_space<vmem>>, %arg7: memref<48x64xbf16, #tpu.memory_space<vmem>>) attributes {dimension_semantics = [#tpu.dimension_semantics<parallel>, #tpu.dimension_semantics<parallel>], iteration_bounds = array<i64: 1, 1>, scalar_prefetch = 0 : i64, scratch_operands = 0 : i64, tpu.core_type = #tpu.core_type<tc>, window_params = [{transform_indices = @transform_0, window_bounds = array<i64: 48, 32>}, {transform_indices = @transform_1, window_bounds = array<i64: 32, 64>}, {transform_indices = @transform_2, window_bounds = array<i64: 1, 64>}, {pipeline_mode = #tpu.pipeline_mode<synchronous>, transform_indices = @transform_3, window_bounds = array<i64: 1, 32>}, {pipeline_mode = #tpu.pipeline_mode<synchronous>, transform_indices = @transform_4, window_bounds = array<i64: 1, 32>}, {transform_indices = @transform_5, window_bounds = array<i64: 48, 64>}]} {
    %c0 = arith.constant 0 : index
    %c0_0 = arith.constant 0 : index
    %0 = vector.load %arg2[%c0, %c0_0] : memref<48x32xbf16, #tpu.memory_space<vmem>>, vector<48x32xbf16>
    %1 = arith.extf %0 : vector<48x32xbf16> to vector<48x32xf32>
    %cst = arith.constant dense<0.000000e+00> : vector<48xf32>
    %2 = vector.multi_reduction <add>, %1, %cst [1] : vector<48x32xf32> to vector<48xf32>
    %3 = vector.shape_cast %2 : vector<48xf32> to vector<48x1xf32>
    %cst_1 = arith.constant 3.200000e+01 : f32
    %4 = vector.broadcast %cst_1 : f32 to vector<48x1xf32>
    %5 = arith.divf %3, %4 : vector<48x1xf32>
    %6 = vector.broadcast %5 : vector<48x1xf32> to vector<48x32xf32>
    %7 = arith.subf %1, %6 : vector<48x32xf32>
    %8 = arith.mulf %7, %7 : vector<48x32xf32>
    %cst_2 = arith.constant dense<0.000000e+00> : vector<48xf32>
    %9 = vector.multi_reduction <add>, %8, %cst_2 [1] : vector<48x32xf32> to vector<48xf32>
    %10 = vector.shape_cast %9 : vector<48xf32> to vector<48x1xf32>
    %cst_3 = arith.constant 3.200000e+01 : f32
    %11 = vector.broadcast %cst_3 : f32 to vector<48x1xf32>
    %12 = arith.divf %10, %11 : vector<48x1xf32>
    %13 = vector.broadcast %5 : vector<48x1xf32> to vector<48x32xf32>
    %14 = arith.subf %1, %13 : vector<48x32xf32>
    %cst_4 = arith.constant 9.99999996E-13 : f32
    %15 = vector.broadcast %cst_4 : f32 to vector<48x1xf32>
    %16 = arith.addf %12, %15 : vector<48x1xf32>
    %17 = math.rsqrt %16 : vector<48x1xf32>
    %18 = vector.broadcast %17 : vector<48x1xf32> to vector<48x32xf32>
    %19 = arith.mulf %14, %18 : vector<48x32xf32>
    %c0_5 = arith.constant 0 : index
    %c0_6 = arith.constant 0 : index
    %20 = vector.load %arg5[%c0_5, %c0_6] : memref<1x32xf32, #tpu.memory_space<vmem>>, vector<1x32xf32>
    %21 = vector.broadcast %20 : vector<1x32xf32> to vector<48x32xf32>
    %22 = arith.mulf %19, %21 : vector<48x32xf32>
    %c0_7 = arith.constant 0 : index
    %c0_8 = arith.constant 0 : index
    %23 = vector.load %arg6[%c0_7, %c0_8] : memref<1x32xf32, #tpu.memory_space<vmem>>, vector<1x32xf32>
    %24 = vector.broadcast %23 : vector<1x32xf32> to vector<48x32xf32>
    %25 = arith.addf %22, %24 : vector<48x32xf32>
    %26 = arith.truncf %25 : vector<48x32xf32> to vector<48x32xbf16>
    %c0_9 = arith.constant 0 : index
    %c0_10 = arith.constant 0 : index
    %27 = vector.load %arg3[%c0_9, %c0_10] : memref<32x64xbf16, #tpu.memory_space<vmem>>, vector<32x64xbf16>
    %cst_11 = arith.constant dense<0.000000e+00> : vector<48x64xf32>
    %28 = tpu.matmul %26, %27, %cst_11 {dimension_numbers = #tpu.dot_dimension_numbers<[1], [0], [0], [1], [0, 0, 1, 1], [], []>} : vector<48x32xbf16>, vector<32x64xbf16>, vector<48x64xf32> -> vector<48x64xf32>
    %c0_12 = arith.constant 0 : index
    %c0_13 = arith.constant 0 : index
    %29 = vector.load %arg4[%c0_12, %c0_13] : memref<1x64xf32, #tpu.memory_space<vmem>>, vector<1x64xf32>
    %30 = vector.broadcast %29 : vector<1x64xf32> to vector<48x64xf32>
    %31 = arith.addf %28, %30 : vector<48x64xf32>
    %32 = arith.mulf %31, %31 : vector<48x64xf32>
    %33 = arith.mulf %31, %32 : vector<48x64xf32>
    %cst_14 = arith.constant 4.471500e-02 : f32
    %34 = vector.broadcast %cst_14 : f32 to vector<48x64xf32>
    %35 = arith.mulf %34, %33 : vector<48x64xf32>
    %36 = arith.addf %31, %35 : vector<48x64xf32>
    %cst_15 = arith.constant 0.797884583 : f32
    %37 = vector.broadcast %cst_15 : f32 to vector<48x64xf32>
    %38 = arith.mulf %37, %36 : vector<48x64xf32>
    %39 = math.tanh %38 : vector<48x64xf32>
    %cst_16 = arith.constant 1.000000e+00 : f32
    %40 = vector.broadcast %cst_16 : f32 to vector<48x64xf32>
    %41 = arith.addf %40, %39 : vector<48x64xf32>
    %cst_17 = arith.constant 5.000000e-01 : f32
    %42 = vector.broadcast %cst_17 : f32 to vector<48x64xf32>
    %43 = arith.mulf %42, %41 : vector<48x64xf32>
    %44 = arith.mulf %31, %43 : vector<48x64xf32>
    %45 = arith.truncf %44 : vector<48x64xf32> to vector<48x64xbf16>
    %c0_18 = arith.constant 0 : index
    %c0_19 = arith.constant 0 : index
    %46 = vector.load %arg7[%c0_18, %c0_19] : memref<48x64xbf16, #tpu.memory_space<vmem>>, vector<48x64xbf16>
    tpu.vector_store %arg7[%c0_18, %c0_19], %45 {strides = array<i32>} : memref<48x64xbf16, #tpu.memory_space<vmem>>, vector<48x64xbf16>,
    return
  }
  func.func @transform_0(%arg0: i32, %arg1: i32) -> (i32, i32) {
    %c0_i32 = arith.constant 0 : i32
    %c0_i32_0 = arith.constant 0 : i32
    return %arg0, %c0_i32 : i32, i32
  }
  func.func @transform_1(%arg0: i32, %arg1: i32) -> (i32, i32) {
    %c0_i32 = arith.constant 0 : i32
    %c0_i32_0 = arith.constant 0 : i32
    return %c0_i32, %arg1 : i32, i32
  }
  func.func @transform_2(%arg0: i32, %arg1: i32) -> (i32, i32) {
    %c0_i32 = arith.constant 0 : i32
    %c0_i32_0 = arith.constant 0 : i32
    return %c0_i32, %arg1 : i32, i32
  }
  func.func @transform_3(%arg0: i32, %arg1: i32) -> (i32, i32) {
    %c0_i32 = arith.constant 0 : i32
    %c0_i32_0 = arith.constant 0 : i32
    %c0_i32_1 = arith.constant 0 : i32
    return %c0_i32, %c0_i32_0 : i32, i32
  }
  func.func @transform_4(%arg0: i32, %arg1: i32) -> (i32, i32) {
    %c0_i32 = arith.constant 0 : i32
    %c0_i32_0 = arith.constant 0 : i32
    %c0_i32_1 = arith.constant 0 : i32
    return %c0_i32, %c0_i32_0 : i32, i32
  }
  func.func @transform_5(%arg0: i32, %arg1: i32) -> (i32, i32) {
    %c0_i32 = arith.constant 0 : i32
    return %arg0, %arg1 : i32, i32
  }
}

module attributes {stable_mosaic.version = 11 : i64} {
  func.func @kernel(%arg0: i32, %arg1: i32, %arg2: memref<8x32xbf16, #tpu.memory_space<vmem>>, %arg3: memref<32x32xbf16, #tpu.memory_space<vmem>>, %arg4: memref<1x32xf32, #tpu.memory_space<vmem>>, %arg5: memref<1x32xf32, #tpu.memory_space<vmem>>, %arg6: memref<1x32xf32, #tpu.memory_space<vmem>>, %arg7: memref<8x32xf32, #tpu.memory_space<vmem>>) attributes {dimension_semantics = [#tpu.dimension_semantics<parallel>, #tpu.dimension_semantics<parallel>], iteration_bounds = array<i64: 1, 1>, scalar_prefetch = 0 : i64, scratch_operands = 0 : i64, tpu.core_type = #tpu.core_type<tc>, window_params = [{transform_indices = @transform_0, window_bounds = array<i64: 8, 32>}, {transform_indices = @transform_1, window_bounds = array<i64: 32, 32>}, {transform_indices = @transform_2, window_bounds = array<i64: 1, 32>}, {pipeline_mode = #tpu.pipeline_mode<synchronous>, transform_indices = @transform_3, window_bounds = array<i64: 1, 32>}, {pipeline_mode = #tpu.pipeline_mode<synchronous>, transform_indices = @transform_4, window_bounds = array<i64: 1, 32>}, {transform_indices = @transform_5, window_bounds = array<i64: 8, 32>}]} {
    %c0 = arith.constant 0 : index
    %c0_0 = arith.constant 0 : index
    %0 = vector.load %arg2[%c0, %c0_0] : memref<8x32xbf16, #tpu.memory_space<vmem>>, vector<8x32xbf16>
    %1 = arith.extf %0 : vector<8x32xbf16> to vector<8x32xf32>
    %cst = arith.constant dense<0.000000e+00> : vector<8xf32>
    %2 = vector.multi_reduction <add>, %1, %cst [1] : vector<8x32xf32> to vector<8xf32>
    %3 = vector.shape_cast %2 : vector<8xf32> to vector<8x1xf32>
    %cst_1 = arith.constant 3.200000e+01 : f32
    %4 = vector.broadcast %cst_1 : f32 to vector<8x1xf32>
    %5 = arith.divf %3, %4 : vector<8x1xf32>
    %6 = vector.broadcast %5 : vector<8x1xf32> to vector<8x32xf32>
    %7 = arith.subf %1, %6 : vector<8x32xf32>
    %8 = arith.mulf %7, %7 : vector<8x32xf32>
    %cst_2 = arith.constant dense<0.000000e+00> : vector<8xf32>
    %9 = vector.multi_reduction <add>, %8, %cst_2 [1] : vector<8x32xf32> to vector<8xf32>
    %10 = vector.shape_cast %9 : vector<8xf32> to vector<8x1xf32>
    %cst_3 = arith.constant 3.200000e+01 : f32
    %11 = vector.broadcast %cst_3 : f32 to vector<8x1xf32>
    %12 = arith.divf %10, %11 : vector<8x1xf32>
    %13 = vector.broadcast %5 : vector<8x1xf32> to vector<8x32xf32>
    %14 = arith.subf %1, %13 : vector<8x32xf32>
    %cst_4 = arith.constant 9.99999996E-13 : f32
    %15 = vector.broadcast %cst_4 : f32 to vector<8x1xf32>
    %16 = arith.addf %12, %15 : vector<8x1xf32>
    %17 = math.rsqrt %16 : vector<8x1xf32>
    %18 = vector.broadcast %17 : vector<8x1xf32> to vector<8x32xf32>
    %19 = arith.mulf %14, %18 : vector<8x32xf32>
    %c0_5 = arith.constant 0 : index
    %c0_6 = arith.constant 0 : index
    %20 = vector.load %arg5[%c0_5, %c0_6] : memref<1x32xf32, #tpu.memory_space<vmem>>, vector<1x32xf32>
    %21 = vector.broadcast %20 : vector<1x32xf32> to vector<8x32xf32>
    %22 = arith.mulf %19, %21 : vector<8x32xf32>
    %c0_7 = arith.constant 0 : index
    %c0_8 = arith.constant 0 : index
    %23 = vector.load %arg6[%c0_7, %c0_8] : memref<1x32xf32, #tpu.memory_space<vmem>>, vector<1x32xf32>
    %24 = vector.broadcast %23 : vector<1x32xf32> to vector<8x32xf32>
    %25 = arith.addf %22, %24 : vector<8x32xf32>
    %26 = arith.truncf %25 : vector<8x32xf32> to vector<8x32xbf16>
    %c0_9 = arith.constant 0 : index
    %c0_10 = arith.constant 0 : index
    %27 = vector.load %arg3[%c0_9, %c0_10] : memref<32x32xbf16, #tpu.memory_space<vmem>>, vector<32x32xbf16>
    %cst_11 = arith.constant dense<0.000000e+00> : vector<8x32xf32>
    %28 = tpu.matmul %26, %27, %cst_11 {dimension_numbers = #tpu.dot_dimension_numbers<[1], [0], [0], [1], [0, 0, 1, 1], [], []>} : vector<8x32xbf16>, vector<32x32xbf16>, vector<8x32xf32> -> vector<8x32xf32>
    %c0_12 = arith.constant 0 : index
    %c0_13 = arith.constant 0 : index
    %29 = vector.load %arg4[%c0_12, %c0_13] : memref<1x32xf32, #tpu.memory_space<vmem>>, vector<1x32xf32>
    %30 = vector.broadcast %29 : vector<1x32xf32> to vector<8x32xf32>
    %31 = arith.addf %28, %30 : vector<8x32xf32>
    %32 = math.tanh %31 : vector<8x32xf32>
    %c0_14 = arith.constant 0 : index
    %c0_15 = arith.constant 0 : index
    %33 = vector.load %arg7[%c0_14, %c0_15] : memref<8x32xf32, #tpu.memory_space<vmem>>, vector<8x32xf32>
    tpu.vector_store %arg7[%c0_14, %c0_15], %32 {strides = array<i32>} : memref<8x32xf32, #tpu.memory_space<vmem>>, vector<8x32xf32>,
    return
  }
  func.func @transform_0(%arg0: i32, %arg1: i32) -> (i32, i32) {
    %c0_i32 = arith.constant 0 : i32
    %c0_i32_0 = arith.constant 0 : i32
    return %arg0, %c0_i32 : i32, i32
  }
  func.func @transform_1(%arg0: i32, %arg1: i32) -> (i32, i32) {
    %c0_i32 = arith.constant 0 : i32
    %c0_i32_0 = arith.constant 0 : i32
    return %c0_i32, %arg1 : i32, i32
  }
  func.func @transform_2(%arg0: i32, %arg1: i32) -> (i32, i32) {
    %c0_i32 = arith.constant 0 : i32
    %c0_i32_0 = arith.constant 0 : i32
    return %c0_i32, %arg1 : i32, i32
  }
  func.func @transform_3(%arg0: i32, %arg1: i32) -> (i32, i32) {
    %c0_i32 = arith.constant 0 : i32
    %c0_i32_0 = arith.constant 0 : i32
    %c0_i32_1 = arith.constant 0 : i32
    return %c0_i32, %c0_i32_0 : i32, i32
  }
  func.func @transform_4(%arg0: i32, %arg1: i32) -> (i32, i32) {
    %c0_i32 = arith.constant 0 : i32
    %c0_i32_0 = arith.constant 0 : i32
    %c0_i32_1 = arith.constant 0 : i32
    return %c0_i32, %c0_i32_0 : i32, i32
  }
  func.func @transform_5(%arg0: i32, %arg1: i32) -> (i32, i32) {
    %c0_i32 = arith.constant 0 : i32
    return %arg0, %arg1 : i32, i32
  }
}

</mosaic_0001>

<bundles_post_ra>
// kernel: image_model_forward.13
= control target key start
LH: loop header
LB: loop body
LE: loop exit
PB: predicated region body
PF: predicated region fallthrough
CT: control target
= control target key end

     0   :  { %10 = vsyncpa [#allocation3], 0  ;;  %s750_s0 = inlined_call_operand.hbm [shape: bf16[48,32], index: 0, kind: input, shape index: {}]   ;;  %s751_s1 = inlined_call_operand.hbm [shape: bf16[32,96], index: 1, kind: input, shape index: {}]   ;;  %s752_s2 = inlined_call_operand.hbm [shape: f32[1,96], index: 2, kind: input, shape index: {}]   ;;  %s753_s3 = inlined_call_operand.hbm [shape: f32[1,32], index: 3, kind: input, shape index: {}]   ;;  %s754_s4 = inlined_call_operand.hbm [shape: f32[1,32], index: 4, kind: input, shape index: {}]   ;;  %s755_s5 = inlined_call_operand.hbm [shape: bf16[48,96], index: 5, kind: output, shape index: {}]  }
   0x1   :  { %11 = vsyncpa [#allocation6], 0 }
   0x2   :  { %12 = vsyncpa [#allocation9], 0 }
   0x3   :  { %13 = vsyncpa [#allocation4], 0  ;;  %s567_s18 = smov [#allocation5]   ;;  %s568_s20 = smov [#allocation8]  }
   0x4   :  { %s31_s19 = sshll.u32 %s567_s18, 4  ;;  %s54_s21 = sshll.u32 %s568_s20, 4  ;;  %s32_s19 = int_to_ptr.vmem [resolvable:$true] %s31_s19  ;;  %s607_s21 = int_to_ptr.vmem [resolvable:$true] %s54_s21 }
   0x5   :  { %s427_s24 = scalar_lea.hbm %s751_s1, 256 }
   0x6   :  { %p428_p0 = scmp.ne.s32.totalorder %s751_s1, %s427_s24  ;;  %p431_p1 = scmp.lt.u32.totalorder %s427_s24, %s751_s1 }
   0x8   :  { %p433_p2 = pnand %p431_p1, %p428_p0 }
   0xa   :  { %436 = shalt.err (!%p433_p2)
}
   0xb   :  { %s437_s29 = scalar_lea.vmem %s32_s19, 256  ;;  %p442_p4 = scmp.lt.s32.totalorder %s32_s19, %s32_s19 }
   0xc   :  { %p438_p3 = scmp.ne.s32.totalorder %s32_s19, %s437_s29  ;;  %p443_p5 = scmp.lt.s32.totalorder %s437_s29, %s437_s29 }
   0xe   :  { %p444_p6 = por %p443_p5, %p442_p4 }
  0x10   :  { %p445_p7 = pnand %p444_p6, %p438_p3 }
  0x12   :  { %448 = shalt.err (!%p445_p7)
}
  0x13   :  { %s569_s30 = smov 64   ;;  %s570_s6 = smov 4  }
  0x14   :  { %37 = dma.hbm_to_vmem [thread:$0]  %s751_s1, 256, %s32_s19, [#allocation6], %s569_s30, %s569_s30, %s570_s6  }
  0x15   :  { %s449_s11 = scalar_lea.hbm %s753_s3, 16 }
  0x16   :  { %p450_p8 = scmp.ne.s32.totalorder %s753_s3, %s449_s11  ;;  %p453_p9 = scmp.lt.u32.totalorder %s449_s11, %s753_s3 }
  0x18   :  { %p455_p10 = pnand %p453_p9, %p450_p8 }
  0x1a   :  { %458 = shalt.err (!%p455_p10)
}
  0x1b   :  { %s459_s16 = scalar_lea.vmem %s607_s21, 16  ;;  %s463_s1 = scalar_lea.vmem %s607_s21, 32 }
  0x1c   :  { %p460_p11 = scmp.ne.s32.totalorder %s607_s21, %s459_s16  ;;  %p464_p12 = scmp.lt.s32.totalorder %s607_s21, %s607_s21 }
  0x1d   :  { %p465_p13 = scmp.lt.s32.totalorder %s463_s1, %s459_s16 }
  0x1f   :  { %p466_p0 = por %p465_p13, %p464_p12 }
  0x21   :  { %p467_p1 = pnand %p466_p0, %p460_p11 }
  0x23   :  { %470 = shalt.err (!%p467_p1)
}
  0x24   :  { %57 = dma.hbm_to_vmem [thread:$0]  %s753_s3, 16, %s607_s21, [#allocation9]  }
  0x25   :  { %s571_s19 = smov [#allocation2]   ;;  %s572_s22 = smov [#allocation7]  }
  0x26   :  { %s19_s20 = sshll.u32 %s571_s19, 4  ;;  %s44_s23 = sshll.u32 %s572_s22, 4  ;;  %s20_s20 = int_to_ptr.vmem [resolvable:$true] %s19_s20  ;;  %s45_s23 = int_to_ptr.vmem [resolvable:$true] %s44_s23 }
  0x27   :  { %s471_s26 = scalar_lea.hbm %s750_s0, 384 }
  0x28   :  { %p472_p2 = scmp.ne.s32.totalorder %s750_s0, %s471_s26  ;;  %p475_p3 = scmp.lt.u32.totalorder %s471_s26, %s750_s0 }
  0x2a   :  { %p477_p4 = pnand %p475_p3, %p472_p2 }
  0x2c   :  { %480 = shalt.err (!%p477_p4)
}
  0x2d   :  { %s481_s3 = scalar_lea.vmem %s20_s20, 384  ;;  %p486_p6 = scmp.lt.s32.totalorder %s20_s20, %s20_s20 }
  0x2e   :  { %p482_p5 = scmp.ne.s32.totalorder %s20_s20, %s481_s3  ;;  %p487_p7 = scmp.lt.s32.totalorder %s481_s3, %s481_s3 }
  0x30   :  { %p488_p8 = por %p487_p7, %p486_p6 }
  0x32   :  { %p489_p9 = pnand %p488_p8, %p482_p5 }
  0x34   :  { %492 = shalt.err (!%p489_p9)
}
  0x35   :  { %25 = dma.hbm_to_vmem [thread:$0]  %s750_s0, 384, %s20_s20, [#allocation3], %s569_s30, %s569_s30, %s570_s6  }
  0x36   :  { %s493_s11 = scalar_lea.hbm %s752_s2, 16 }
  0x37   :  { %p494_p10 = scmp.ne.s32.totalorder %s752_s2, %s493_s11  ;;  %p497_p11 = scmp.lt.u32.totalorder %s493_s11, %s752_s2 }
  0x39   :  { %p499_p12 = pnand %p497_p11, %p494_p10 }
  0x3b   :  { %502 = shalt.err (!%p499_p12)
}
  0x3c   :  { %s503_s16 = scalar_lea.vmem %s45_s23, 16  ;;  %s507_s1 = scalar_lea.vmem %s45_s23, 32 }
  0x3d   :  { %p504_p13 = scmp.ne.s32.totalorder %s45_s23, %s503_s16  ;;  %p508_p0 = scmp.lt.s32.totalorder %s45_s23, %s45_s23 }
  0x3e   :  { %p509_p1 = scmp.lt.s32.totalorder %s507_s1, %s503_s16 }
  0x40   :  { %p510_p2 = por %p509_p1, %p508_p0 }
  0x42   :  { %p511_p3 = pnand %p510_p2, %p504_p13 }
  0x44   :  { %514 = shalt.err (!%p511_p3)
}
  0x45   :  { %47 = dma.hbm_to_vmem [thread:$0]  %s752_s2, 16, %s45_s23, [#allocation6]  }
  0x46   :  { %s573_s18 = smov [#allocation10]   ;;  %s515_s24 = scalar_lea.hbm %s754_s4, 16 }
  0x47   :  { %s64_s19 = sshll.u32 %s573_s18, 4  ;;  %p516_p4 = scmp.ne.s32.totalorder %s754_s4, %s515_s24  ;;  %s65_s19 = int_to_ptr.vmem [resolvable:$true] %s64_s19 }
  0x48   :  { %p519_p5 = scmp.lt.u32.totalorder %s515_s24, %s754_s4 }
  0x4a   :  { %p521_p6 = pnand %p519_p5, %p516_p4 }
  0x4c   :  { %524 = shalt.err (!%p521_p6)
}
  0x4d   :  { %s525_s29 = scalar_lea.vmem %s65_s19, 16  ;;  %s529_s2 = scalar_lea.vmem %s65_s19, 32 }
  0x4e   :  { %p526_p7 = scmp.ne.s32.totalorder %s65_s19, %s525_s29  ;;  %p530_p8 = scmp.lt.s32.totalorder %s65_s19, %s65_s19 }
  0x4f   :  { %p531_p9 = scmp.lt.s32.totalorder %s529_s2, %s525_s29 }
  0x51   :  { %p532_p10 = por %p531_p9, %p530_p8 }
  0x53   :  { %p533_p11 = pnand %p532_p10, %p526_p7 }
  0x55   :  { %536 = shalt.err (!%p533_p11)
}
  0x56   :  { %67 = dma.hbm_to_vmem [thread:$0]  %s754_s4, 16, %s65_s19, [#allocation9]  }
  0x57   :  { %559 = dma.done.wait [#allocation3], 384  }
  0x58   :  { %560 = vsyncadd [#allocation3], 4294966912 }
  0x59   :  { %561 = dma.done.wait [#allocation6], 272  }
  0x5a   :  { %562 = vsyncadd [#allocation6], 4294967024 }
  0x5b   :  { %563 = dma.done.wait [#allocation9], 32  }
  0x5c   :  { %564 = vsyncadd [#allocation9], 4294967264  ;;  %v376_v0 = vld [vmem:[#allocation2 + $0x8] sm:$0xff]   ;;  %vm96_vm0 = vcmask 261120   ;;  %v365_v1 = vld [vmem:[#allocation2] sm:$0xff]   ;;  %v574_v46 = vmov 0.0  }
  0x5d   :  { %v370_v2 = vunpack.c.l.bf16 %v376_v0  ;;  %v371_v3 = vunpack.c.h.bf16 %v376_v0  ;;  %v366_v4 = vunpack.c.l.bf16 %v365_v1  ;;  %v377_v5 = vld [vmem:[#allocation2 + $0x10] sm:$0xff]   ;;  %v367_v6 = vunpack.c.h.bf16 %v365_v1  ;;  %v413_v45 = vld [vmem:[#allocation5] sm:$0xff]   ;;  %399 = vmatprep.subr.bf16.mxu1 %v574_v46  ;;  %383 = vmatprep.subr.bf16.mxu0 %v574_v46  ;;  %v414_v47 = vld [vmem:[#allocation5 + $0x8] sm:$0xff]   ;;  %s576_s4 = smov [#allocation11]  }
  0x5e   :  { %v374_v10 = vunpack.c.l.bf16 %v377_v5  ;;  %v375_v12 = vunpack.c.h.bf16 %v377_v5  ;;  %401 = vmatpush3.bf16.msra.mxu1 %v413_v45  ;;  %384 = vmatpush3.bf16.msra.mxu0 %v413_v45  ;;  %vm575_vm1 = vmmov 0   ;;  %vm318_vm2 = vcmask 781312   ;;  %s330_s3 = sshll.u32 %s576_s4, 4  ;;  %s331_s3 = int_to_ptr.vmem [resolvable:$true] %s330_s3 }
  0x5f   :  { %v103_v7 = vsel %vm96_vm0, %v370_v2, 0.0  ;;  %v97_v8 = vsel %vm96_vm0, %v366_v4, 0.0  ;;  %v106_v9 = vsel %vm96_vm0, %v371_v3, 0.0  ;;  %v100_v11 = vsel %vm96_vm0, %v367_v6, 0.0  ;;  %400 = vmatprep.subr.bf16.mxu1 %v574_v46  ;;  %385 = vmatprep.subr.bf16.mxu0 %v574_v46  ;;  %s537_s21 = scalar_lea.vmem %s331_s3, 384  ;;  %p542_p13 = scmp.lt.s32.totalorder %s331_s3, %s331_s3 }
  0x60   :  { %104 = vadd.xlane.f32.xlu0 %v103_v7  ;;  %98 = vadd.xlane.f32.xlu1 %v97_v8  ;;  %v109_v13 = vsel %vm96_vm0, %v374_v10, 0.0  ;;  %v112_v14 = vsel %vm96_vm0, %v375_v12, 0.0  ;;  %p538_p12 = scmp.ne.s32.totalorder %s331_s3, %s537_s21  ;;  %p543_p0 = scmp.lt.s32.totalorder %s537_s21, %s537_s21 }
  0x61   :  { %391 = vmatprep.mubr.msk.bf16.mxu1 %vm575_vm1, %v574_v46  ;;  %387 = vmatprep.mubr.msk.bf16.mxu0 %vm575_vm1, %v574_v46 }
  0x62   :  { %402 = vmatpush3.bf16.msra.mxu1 %v414_v47  ;;  %386 = vmatpush3.bf16.msra.mxu0 %v414_v47  ;;  %p544_p1 = por %p543_p0, %p542_p13 }
  0x64   :  { %107 = vadd.xlane.f32.xlu0 %v106_v9  ;;  %101 = vadd.xlane.f32.xlu1 %v100_v11  ;;  %p545_p2 = pnand %p544_p1, %p538_p12 }
  0x68   :  { %110 = vadd.xlane.f32.xlu0 %v109_v13  ;;  %113 = vadd.xlane.f32.xlu1 %v112_v14 }
  0xed   :  { %v105_v15 = vpop.xlane.xlu0 %104  ;;  %v99_v16 = vpop.xlane.xlu1 %98 }
  0xee   :  { %v118_v17 = vmul.f32 0.03125, %v105_v15  ;;  %v116_v18 = vmul.f32 0.03125, %v99_v16 }
  0xf0   :  { %v687_v19 = vsub.f32 %v370_v2, %v118_v17  ;;  %v689_v20 = vsub.f32 %v366_v4, %v116_v18  ;;  %v344_v4 = vld [vmem:[#allocation8] ss:$0 sm:$0xff] }
  0xf1   :  { %v108_v21 = vpop.xlane.xlu0 %107  ;;  %v102_v22 = vpop.xlane.xlu1 %101 }
  0xf2   :  { %v119_v23 = vmul.f32 0.03125, %v108_v21  ;;  %v130_v24 = vmul.f32 %v687_v19, %v687_v19  ;;  %v117_v25 = vmul.f32 0.03125, %v102_v22  ;;  %v128_v26 = vmul.f32 %v689_v20, %v689_v20 }
  0xf4   :  { %v695_v27 = vsub.f32 %v371_v3, %v119_v23  ;;  %v140_v28 = vsel %vm96_vm0, %v130_v24, 0.0  ;;  %v698_v29 = vsub.f32 %v367_v6, %v117_v25  ;;  %v134_v31 = vsel %vm96_vm0, %v128_v26, 0.0 }
  0xf5   :  { %141 = vadd.xlane.f32.xlu0 %v140_v28  ;;  %v111_v30 = vpop.xlane.xlu0 %110  ;;  %v114_v32 = vpop.xlane.xlu1 %113 }
  0xf6   :  { %v120_v33 = vmul.f32 0.03125, %v111_v30  ;;  %v131_v34 = vmul.f32 %v695_v27, %v695_v27  ;;  %v121_v35 = vmul.f32 0.03125, %v114_v32  ;;  %v129_v36 = vmul.f32 %v698_v29, %v698_v29 }
  0xf8   :  { %v705_v37 = vsub.f32 %v374_v10, %v120_v33  ;;  %v143_v38 = vsel %vm96_vm0, %v131_v34, 0.0  ;;  %v708_v39 = vsub.f32 %v375_v12, %v121_v35  ;;  %v137_v41 = vsel %vm96_vm0, %v129_v36, 0.0  ;;  %v345_v10 = vld [vmem:[#allocation10] ss:$0 sm:$0xff] }
  0xf9   :  { %144 = vadd.xlane.f32.xlu1 %v143_v38  ;;  %135 = vadd.xlane.f32.xlu0 %v134_v31  ;;  %v346_v31 = vld [vmem:[#allocation7] ss:$0 sm:$0xff] }
  0xfa   :  { %v132_v40 = vmul.f32 %v705_v37, %v705_v37  ;;  %v133_v42 = vmul.f32 %v708_v39, %v708_v39 }
  0xfc   :  { %v146_v43 = vsel %vm96_vm0, %v132_v40, 0.0  ;;  %v149_v44 = vsel %vm96_vm0, %v133_v42, 0.0 }
  0xfd   :  { %147 = vadd.xlane.f32.xlu0 %v146_v43  ;;  %138 = vadd.xlane.f32.xlu1 %v137_v41 }
 0x101   :  { %150 = vadd.xlane.f32.xlu1 %v149_v44 }
 0x182   :  { %v142_v48 = vpop.xlane.xlu0 %141 }
 0x183   :  { %v154_v49 = vmul.f32 0.03125, %v142_v48 }
 0x185   :  { %v160_v50 = vadd.f32 1e-12, %v154_v49 }
 0x186   :  { %v136_v51 = vpop.xlane.xlu0 %135  ;;  %v145_v52 = vpop.xlane.xlu1 %144 }
 0x187   :  { %415 = vrsqrt.f32 %v160_v50  ;;  %v152_v53 = vmul.f32 0.03125, %v136_v51  ;;  %v155_v54 = vmul.f32 0.03125, %v145_v52 }
 0x189   :  { %v158_v55 = vadd.f32 1e-12, %v152_v53  ;;  %v161_v56 = vadd.f32 1e-12, %v155_v54 }
 0x18a   :  { %v148_v57 = vpop.xlane.xlu0 %147  ;;  %v139_v58 = vpop.xlane.xlu1 %138 }
 0x18b   :  { %417 = vrsqrt.f32 %v158_v55  ;;  %v156_v59 = vmul.f32 0.03125, %v148_v57  ;;  %v153_v60 = vmul.f32 0.03125, %v139_v58 }
 0x18c   :  { %419 = vrsqrt.f32 %v161_v56 }
 0x18d   :  { %v162_v61 = vadd.f32 1e-12, %v156_v59  ;;  %v159_v62 = vadd.f32 1e-12, %v153_v60 }
 0x18e   :  { %v151_v63 = vpop.xlane.xlu1 %150 }
 0x18f   :  { %421 = vrsqrt.f32 %v162_v61  ;;  %v157_v0 = vmul.f32 0.03125, %v151_v63 }
 0x190   :  { %423 = vrsqrt.f32 %v159_v62 }
 0x191   :  { %v416_v1 = vpop.eup %415  ;;  %v163_v2 = vadd.f32 1e-12, %v157_v0 }
 0x192   :  { %v172_v3 = vmul.f32 %v416_v1, %v687_v19 }
 0x193   :  { %425 = vrsqrt.f32 %v163_v2 }
 0x194   :  { %v185_v9 = vmul.f32 %v344_v4, %v172_v3 }
 0x195   :  { %v418_v5 = vpop.eup %417 }
 0x196   :  { %v420_v6 = vpop.eup %419  ;;  %v170_v7 = vmul.f32 %v418_v5, %v689_v20  ;;  %v198_v16 = vadd.f32 %v345_v10, %v185_v9 }
 0x197   :  { %v173_v8 = vmul.f32 %v420_v6, %v695_v27 }
 0x198   :  { %v183_v18 = vmul.f32 %v344_v4, %v170_v7 }
 0x199   :  { %v422_v11 = vpop.eup %421  ;;  %v186_v12 = vmul.f32 %v344_v4, %v173_v8 }
 0x19a   :  { %v424_v13 = vpop.eup %423  ;;  %v174_v14 = vmul.f32 %v422_v11, %v705_v37  ;;  %v196_v24 = vadd.f32 %v345_v10, %v183_v18 }
 0x19b   :  { %v171_v15 = vmul.f32 %v424_v13, %v698_v29  ;;  %v199_v17 = vadd.f32 %v345_v10, %v186_v12 }
 0x19c   :  { %v187_v20 = vmul.f32 %v344_v4, %v174_v14 }
 0x19d   :  { %v426_v19 = vpop.eup %425  ;;  %v203_v21 = vpack.c.bf16 %v199_v17, %v198_v16  ;;  %v184_v22 = vmul.f32 %v344_v4, %v171_v15 }
 0x19e   :  { %v175_v23 = vmul.f32 %v426_v19, %v708_v39  ;;  %v200_v28 = vadd.f32 %v345_v10, %v187_v20 }
 0x19f   :  { %392 = vmatmul.mubr.msk.bf16.vlgmr.msra.gmra.mrb[0].mxu1 %vm96_vm0, %v203_v21  ;;  %v197_v25 = vadd.f32 %v345_v10, %v184_v22 }
 0x1a0   :  { %395 = vmatprep.mubr.msk.bf16.mxu1 %vm575_vm1, %v574_v46  ;;  %v188_v26 = vmul.f32 %v344_v4, %v175_v23 }
 0x1a1   :  { %v202_v27 = vpack.c.bf16 %v197_v25, %v196_v24 }
 0x1a2   :  { %v201_v30 = vadd.f32 %v345_v10, %v188_v26 }
 0x1a3   :  { %388 = vmatmul.mubr.msk.bf16.vlgmr.msra.gmra.mrb[0].mxu0 %vm96_vm0, %v202_v27 }
 0x1a4   :  { %v204_v29 = vpack.c.bf16 %v201_v30, %v200_v28 }
 0x1a7   :  { %396 = vmatmul.mubr.msk.bf16.gmra.mrb[4].mxu1 %vm96_vm0, %v204_v29 }
 0x272   :  { %v279_v32 = vpop.f32.mrb[0].mxu1 }
 0x273   :  { %v280_v33 = vadd.f32 %v346_v31, %v279_v32  ;;  %v393_v34 = vpop.f32.mrb[1].mxu1 }
 0x274   :  { %v282_v35 = vpop.f32.mrb[2].mxu1 }
 0x275   :  { %v360_v36 = vpack.c.bf16 %v280_v33, %v280_v33  ;;  %v283_v37 = vadd.f32 %v346_v31, %v282_v35  ;;  %v394_v38 = vpop.f32.mrb[3].mxu1 }
 0x276   :  { %v271_v39 = vpop.f32.mrb[0].mxu0 }
 0x277   :  { %321 = vst.msk [vmem:[#allocation11 + $0x8] sm:$0xf] %vm318_vm2, %v360_v36  ;;  %v361_v40 = vpack.c.bf16 %v283_v37, %v283_v37  ;;  %v272_v41 = vadd.f32 %v346_v31, %v271_v39  ;;  %v389_v42 = vpop.f32.mrb[1].mxu0 }
 0x278   :  { %v274_v43 = vpop.f32.mrb[2].mxu0 }
 0x279   :  { %322 = vst.msk [vmem:[#allocation11 + $0xc] sm:$0xf] %vm318_vm2, %v361_v40  ;;  %v358_v44 = vpack.c.bf16 %v272_v41, %v272_v41  ;;  %v275_v45 = vadd.f32 %v346_v31, %v274_v43  ;;  %v390_v46 = vpop.f32.mrb[3].mxu0 }
 0x27a   :  { %v287_v47 = vpop.f32.mrb[4].mxu1 }
 0x27b   :  { %319 = vst.msk [vmem:[#allocation11] sm:$0xf] %vm318_vm2, %v358_v44  ;;  %v359_v48 = vpack.c.bf16 %v275_v45, %v275_v45  ;;  %v288_v49 = vadd.f32 %v346_v31, %v287_v47  ;;  %v397_v50 = vpop.f32.mrb[5].mxu1 }
 0x27c   :  { %v290_v51 = vpop.f32.mrb[6].mxu1 }
 0x27d   :  { %320 = vst.msk [vmem:[#allocation11 + $0x4] sm:$0xf] %vm318_vm2, %v359_v48  ;;  %v362_v52 = vpack.c.bf16 %v288_v49, %v288_v49  ;;  %v291_v53 = vadd.f32 %v346_v31, %v290_v51  ;;  %v398_v54 = vpop.f32.mrb[7].mxu1 }
 0x27f   :  { %323 = vst.msk [vmem:[#allocation11 + $0x10] sm:$0xf] %vm318_vm2, %v362_v52  ;;  %v363_v55 = vpack.c.bf16 %v291_v53, %v291_v53 }
 0x281   :  { %324 = vst.msk [vmem:[#allocation11 + $0x14] sm:$0xf] %vm318_vm2, %v363_v55 }
 0x282   :  { %548 = shalt.err (!%p545_p2)
}
 0x283   :  { %s549_s10 = scalar_lea.hbm %s755_s5, 384 }
 0x284   :  { %p550_p3 = scmp.ne.s32.totalorder %s755_s5, %s549_s10  ;;  %p553_p4 = scmp.lt.u32.totalorder %s549_s10, %s755_s5 }
 0x286   :  { %p555_p5 = pnand %p553_p4, %p550_p3 }
 0x288   :  { %558 = shalt.err (!%p555_p5)
}
 0x289   :  { %336 = dma.vmem_to_hbm [thread:$0]  %s331_s3, 384, %s755_s5, [#allocation4], %s569_s30, %s569_s30, %s570_s6  }
 0x28a   :  { %565 = dma.done.wait [#allocation4], 384  }
 0x28b   :  { %566 = vsyncadd [#allocation4], 4294966912 }
 0x28c   :  { %340 = vsyncpa [#allocation3], 1 }
 0x28d   :  { %341 = vsyncpa [#allocation6], 1 }
 0x28e   :  { %342 = vsyncpa [#allocation9], 1 }
 0x28f   :  { %343 = vsyncpa [#allocation4], 1 }

// kernel: image_model_forward.12
= control target key start
LH: loop header
LB: loop body
LE: loop exit
PB: predicated region body
PF: predicated region fallthrough
CT: control target
= control target key end

     0   :  { %8 = vsyncpa [#allocation3], 0  ;;  %s425_s0 = inlined_call_operand.hbm [shape: bf16[32,48], index: 0, kind: input, shape index: {}]   ;;  %s426_s1 = inlined_call_operand.hbm [shape: bf16[48,32], index: 1, kind: input, shape index: {}]   ;;  %s427_s2 = inlined_call_operand.hbm [shape: f32[1,32], index: 2, kind: input, shape index: {}]   ;;  %s428_s3 = inlined_call_operand.hbm [shape: bf16[32,32], index: 3, kind: output, shape index: {}]  }
   0x1   :  { %9 = vsyncpa [#allocation6], 0 }
   0x2   :  { %10 = vsyncpa [#allocation4], 0  ;;  %s331_s12 = smov [#allocation5]   ;;  %s332_s14 = smov [#allocation2]  }
   0x3   :  { %s28_s13 = sshll.u32 %s331_s12, 4  ;;  %s16_s15 = sshll.u32 %s332_s14, 4  ;;  %s29_s13 = int_to_ptr.vmem [resolvable:$true] %s28_s13  ;;  %s357_s15 = int_to_ptr.vmem [resolvable:$true] %s16_s15 }
   0x4   :  { %s237_s18 = scalar_lea.hbm %s426_s1, 384 }
   0x5   :  { %p238_p0 = scmp.ne.s32.totalorder %s426_s1, %s237_s18  ;;  %p241_p1 = scmp.lt.u32.totalorder %s237_s18, %s426_s1 }
   0x7   :  { %p243_p2 = pnand %p241_p1, %p238_p0 }
   0x9   :  { %246 = shalt.err (!%p243_p2)
}
   0xa   :  { %s247_s23 = scalar_lea.vmem %s29_s13, 384  ;;  %p252_p4 = scmp.lt.s32.totalorder %s29_s13, %s29_s13 }
   0xb   :  { %p248_p3 = scmp.ne.s32.totalorder %s29_s13, %s247_s23  ;;  %p253_p5 = scmp.lt.s32.totalorder %s247_s23, %s247_s23 }
   0xd   :  { %p254_p6 = por %p253_p5, %p252_p4 }
   0xf   :  { %p255_p7 = pnand %p254_p6, %p248_p3 }
  0x11   :  { %258 = shalt.err (!%p255_p7)
}
  0x12   :  { %s333_s24 = smov 64   ;;  %s334_s25 = smov 4  }
  0x13   :  { %34 = dma.hbm_to_vmem [thread:$0]  %s426_s1, 384, %s29_s13, [#allocation6], %s333_s24, %s333_s24, %s334_s25  }
  0x14   :  { %s259_s30 = scalar_lea.hbm %s425_s0, 256 }
  0x15   :  { %p260_p8 = scmp.ne.s32.totalorder %s425_s0, %s259_s30  ;;  %p263_p9 = scmp.lt.u32.totalorder %s259_s30, %s425_s0 }
  0x17   :  { %p265_p10 = pnand %p263_p9, %p260_p8 }
  0x19   :  { %268 = shalt.err (!%p265_p10)
}
  0x1a   :  { %s269_s8 = scalar_lea.vmem %s357_s15, 256  ;;  %p274_p12 = scmp.lt.s32.totalorder %s357_s15, %s357_s15 }
  0x1b   :  { %p270_p11 = scmp.ne.s32.totalorder %s357_s15, %s269_s8  ;;  %p275_p13 = scmp.lt.s32.totalorder %s269_s8, %s269_s8 }
  0x1d   :  { %p276_p0 = por %p275_p13, %p274_p12 }
  0x1f   :  { %p277_p1 = pnand %p276_p0, %p270_p11 }
  0x21   :  { %280 = shalt.err (!%p277_p1)
}
  0x22   :  { %22 = dma.hbm_to_vmem [thread:$0]  %s425_s0, 256, %s357_s15, [#allocation3], %s333_s24, %s333_s24, %s334_s25  }
  0x23   :  { %s335_s10 = smov [#allocation7]   ;;  %s281_s14 = scalar_lea.hbm %s427_s2, 16 }
  0x24   :  { %s41_s11 = sshll.u32 %s335_s10, 4  ;;  %p282_p2 = scmp.ne.s32.totalorder %s427_s2, %s281_s14  ;;  %s42_s11 = int_to_ptr.vmem [resolvable:$true] %s41_s11 }
  0x25   :  { %p285_p3 = scmp.lt.u32.totalorder %s281_s14, %s427_s2 }
  0x27   :  { %p287_p4 = pnand %p285_p3, %p282_p2 }
  0x29   :  { %290 = shalt.err (!%p287_p4)
}
  0x2a   :  { %s291_s20 = scalar_lea.vmem %s42_s11, 16  ;;  %s295_s0 = scalar_lea.vmem %s42_s11, 32 }
  0x2b   :  { %p292_p5 = scmp.ne.s32.totalorder %s42_s11, %s291_s20  ;;  %p296_p6 = scmp.lt.s32.totalorder %s42_s11, %s42_s11 }
  0x2c   :  { %p297_p7 = scmp.lt.s32.totalorder %s295_s0, %s291_s20 }
  0x2e   :  { %p298_p8 = por %p297_p7, %p296_p6 }
  0x30   :  { %p299_p9 = pnand %p298_p8, %p292_p5 }
  0x32   :  { %302 = shalt.err (!%p299_p9)
}
  0x33   :  { %44 = dma.hbm_to_vmem [thread:$0]  %s427_s2, 16, %s42_s11, [#allocation6]  }
  0x34   :  { %325 = dma.done.wait [#allocation3], 256  }
  0x35   :  { %326 = vsyncadd [#allocation3], 4294967040 }
  0x36   :  { %327 = dma.done.wait [#allocation6], 400  }
  0x37   :  { %328 = vsyncadd [#allocation6], 4294966896  ;;  %v232_v0 = vld [vmem:[#allocation5] sm:$0xff]   ;;  %v233_v1 = vld [vmem:[#allocation5 + $0x8] sm:$0xff]   ;;  %vm100_vm0 = vcmask 392192   ;;  %vm172_vm1 = vcmask 257024  }
  0x38   :  { %216 = vmatprep.subr.bf16.mxu0 %v232_v0  ;;  %v235_v2 = vld [vmem:[#allocation2] sm:$0xff]   ;;  %v236_v4 = vld [vmem:[#allocation2 + $0x8] sm:$0xff]   ;;  %s336_s2 = smov [#allocation8]  }
  0x39   :  { %217 = vmatpush3.bf16.msra.mxu0 %v232_v0  ;;  %v234_v3 = vld [vmem:[#allocation5 + $0x10] sm:$0xff]   ;;  %222 = vmatprep.mubr.msk.bf16.mxu0 %vm100_vm0, %v235_v2  ;;  %v195_v5 = vld [vmem:[#allocation7] ss:$0 sm:$0xff]  ;;  %s182_s22 = sshll.u32 %s336_s2, 4  ;;  %s183_s22 = int_to_ptr.vmem [resolvable:$true] %s182_s22 }
  0x3a   :  { %218 = vmatprep.subr.bf16.mxu0 %v233_v1  ;;  %s303_s23 = scalar_lea.vmem %s183_s22, 256  ;;  %p308_p11 = scmp.lt.s32.totalorder %s183_s22, %s183_s22 }
  0x3b   :  { %p304_p10 = scmp.ne.s32.totalorder %s183_s22, %s303_s23  ;;  %p309_p12 = scmp.lt.s32.totalorder %s303_s23, %s303_s23 }
  0x3d   :  { %219 = vmatpush3.bf16.msra.mxu0 %v233_v1  ;;  %p310_p13 = por %p309_p12, %p308_p11 }
  0x3e   :  { %220 = vmatprep.subr.bf16.mxu0 %v234_v3 }
  0x3f   :  { %p311_p0 = pnand %p310_p13, %p304_p10 }
  0x41   :  { %221 = vmatpush3.bf16.msra.mxu0 %v234_v3 }
  0x44   :  { %223 = vmatmul.mubr.msk.bf16.vlgmr.msra.gmra.mrb[0].mxu0 %vm100_vm0, %v236_v4 }
 0x117   :  { %v224_v6 = vpop.f32.mrb[0].mxu0 }
 0x118   :  { %v150_v7 = vadd.f32 %v224_v6, %v195_v5  ;;  %v141_v8 = vpop.f32.mrb[1].mxu0 }
 0x119   :  { %v142_v9 = vadd.f32 %v195_v5, %v141_v8  ;;  %v225_v10 = vpop.f32.mrb[2].mxu0 }
 0x11a   :  { %v209_v11 = vpack.c.bf16 %v150_v7, %v150_v7  ;;  %v153_v12 = vadd.f32 %v225_v10, %v195_v5  ;;  %v144_v13 = vpop.f32.mrb[3].mxu0 }
 0x11b   :  { %v207_v14 = vpack.c.bf16 %v142_v9, %v142_v9  ;;  %v145_v15 = vadd.f32 %v195_v5, %v144_v13 }
 0x11c   :  { %175 = vst.msk [vmem:[#allocation8 + $0x8] sm:$0xf] %vm172_vm1, %v209_v11  ;;  %v210_v16 = vpack.c.bf16 %v153_v12, %v153_v12 }
 0x11d   :  { %173 = vst.msk [vmem:[#allocation8] sm:$0xf] %vm172_vm1, %v207_v14  ;;  %v208_v17 = vpack.c.bf16 %v145_v15, %v145_v15 }
 0x11e   :  { %176 = vst.msk [vmem:[#allocation8 + $0xc] sm:$0xf] %vm172_vm1, %v210_v16 }
 0x11f   :  { %174 = vst.msk [vmem:[#allocation8 + $0x4] sm:$0xf] %vm172_vm1, %v208_v17 }
 0x120   :  { %314 = shalt.err (!%p311_p0)
}
 0x121   :  { %s315_s28 = scalar_lea.hbm %s428_s3, 256 }
 0x122   :  { %p316_p1 = scmp.ne.s32.totalorder %s428_s3, %s315_s28  ;;  %p319_p2 = scmp.lt.u32.totalorder %s315_s28, %s428_s3 }
 0x124   :  { %p321_p3 = pnand %p319_p2, %p316_p1 }
 0x126   :  { %324 = shalt.err (!%p321_p3)
}
 0x127   :  { %188 = dma.vmem_to_hbm [thread:$0]  %s183_s22, 256, %s428_s3, [#allocation4], %s333_s24, %s333_s24, %s334_s25  }
 0x128   :  { %329 = dma.done.wait [#allocation4], 256  }
 0x129   :  { %330 = vsyncadd [#allocation4], 4294967040 }
 0x12a   :  { %192 = vsyncpa [#allocation3], 1 }
 0x12b   :  { %193 = vsyncpa [#allocation6], 1 }
 0x12c   :  { %194 = vsyncpa [#allocation4], 1 }

// kernel: image_model_forward.15
= control target key start
LH: loop header
LB: loop body
LE: loop exit
PB: predicated region body
PF: predicated region fallthrough
CT: control target
= control target key end

     0   :  { %9 = vsyncpa [#allocation3], 0  ;;  %s572_s0 = inlined_call_operand.hbm [shape: bf16[48,32], index: 0, kind: input, shape index: {}]   ;;  %s573_s1 = inlined_call_operand.hbm [shape: bf16[32,32], index: 1, kind: input, shape index: {}]   ;;  %s574_s2 = inlined_call_operand.hbm [shape: f32[1,32], index: 2, kind: input, shape index: {}]   ;;  %s575_s3 = inlined_call_operand.hbm [shape: bf16[48,32], index: 3, kind: input, shape index: {}]   ;;  %s576_s4 = inlined_call_operand.hbm [shape: bf16[48,32], index: 4, kind: output, shape index: {}]  }
   0x1   :  { %10 = vsyncpa [#allocation6], 0 }
   0x2   :  { %11 = vsyncpa [#allocation9], 0 }
   0x3   :  { %12 = vsyncpa [#allocation4], 0  ;;  %s443_s15 = smov [#allocation5]   ;;  %s444_s17 = smov [#allocation2]  }
   0x4   :  { %s30_s16 = sshll.u32 %s443_s15, 4  ;;  %s18_s18 = sshll.u32 %s444_s17, 4  ;;  %s31_s16 = int_to_ptr.vmem [resolvable:$true] %s30_s16  ;;  %s477_s18 = int_to_ptr.vmem [resolvable:$true] %s18_s18 }
   0x5   :  { %s325_s21 = scalar_lea.hbm %s573_s1, 256 }
   0x6   :  { %p326_p0 = scmp.ne.s32.totalorder %s573_s1, %s325_s21  ;;  %p329_p1 = scmp.lt.u32.totalorder %s325_s21, %s573_s1 }
   0x8   :  { %p331_p2 = pnand %p329_p1, %p326_p0 }
   0xa   :  { %334 = shalt.err (!%p331_p2)
}
   0xb   :  { %s335_s26 = scalar_lea.vmem %s31_s16, 256  ;;  %p340_p4 = scmp.lt.s32.totalorder %s31_s16, %s31_s16 }
   0xc   :  { %p336_p3 = scmp.ne.s32.totalorder %s31_s16, %s335_s26  ;;  %p341_p5 = scmp.lt.s32.totalorder %s335_s26, %s335_s26 }
   0xe   :  { %p342_p6 = por %p341_p5, %p340_p4 }
  0x10   :  { %p343_p7 = pnand %p342_p6, %p336_p3 }
  0x12   :  { %346 = shalt.err (!%p343_p7)
}
  0x13   :  { %s445_s27 = smov 64   ;;  %s446_s28 = smov 4  }
  0x14   :  { %36 = dma.hbm_to_vmem [thread:$0]  %s573_s1, 256, %s31_s16, [#allocation6], %s445_s27, %s445_s27, %s446_s28  }
  0x15   :  { %s347_s7 = scalar_lea.hbm %s572_s0, 384 }
  0x16   :  { %p348_p8 = scmp.ne.s32.totalorder %s572_s0, %s347_s7  ;;  %p351_p9 = scmp.lt.u32.totalorder %s347_s7, %s572_s0 }
  0x18   :  { %p353_p10 = pnand %p351_p9, %p348_p8 }
  0x1a   :  { %356 = shalt.err (!%p353_p10)
}
  0x1b   :  { %s357_s12 = scalar_lea.vmem %s477_s18, 384  ;;  %p362_p12 = scmp.lt.s32.totalorder %s477_s18, %s477_s18 }
  0x1c   :  { %p358_p11 = scmp.ne.s32.totalorder %s477_s18, %s357_s12  ;;  %p363_p13 = scmp.lt.s32.totalorder %s357_s12, %s357_s12 }
  0x1e   :  { %p364_p0 = por %p363_p13, %p362_p12 }
  0x20   :  { %p365_p1 = pnand %p364_p0, %p358_p11 }
  0x22   :  { %368 = shalt.err (!%p365_p1)
}
  0x23   :  { %24 = dma.hbm_to_vmem [thread:$0]  %s572_s0, 384, %s477_s18, [#allocation3], %s445_s27, %s445_s27, %s446_s28  }
  0x24   :  { %s447_s14 = smov [#allocation7]   ;;  %s448_s16 = smov [#allocation8]  }
  0x25   :  { %s43_s15 = sshll.u32 %s447_s14, 4  ;;  %s52_s17 = sshll.u32 %s448_s16, 4  ;;  %s44_s15 = int_to_ptr.vmem [resolvable:$true] %s43_s15  ;;  %s514_s17 = int_to_ptr.vmem [resolvable:$true] %s52_s17 }
  0x26   :  { %s369_s21 = scalar_lea.hbm %s574_s2, 16 }
  0x27   :  { %p370_p2 = scmp.ne.s32.totalorder %s574_s2, %s369_s21  ;;  %p373_p3 = scmp.lt.u32.totalorder %s369_s21, %s574_s2 }
  0x29   :  { %p375_p4 = pnand %p373_p3, %p370_p2 }
  0x2b   :  { %378 = shalt.err (!%p375_p4)
}
  0x2c   :  { %s379_s0 = scalar_lea.vmem %s44_s15, 16  ;;  %s383_s18 = scalar_lea.vmem %s44_s15, 32 }
  0x2d   :  { %p380_p5 = scmp.ne.s32.totalorder %s44_s15, %s379_s0  ;;  %p384_p6 = scmp.lt.s32.totalorder %s44_s15, %s44_s15 }
  0x2e   :  { %p385_p7 = scmp.lt.s32.totalorder %s383_s18, %s379_s0 }
  0x30   :  { %p386_p8 = por %p385_p7, %p384_p6 }
  0x32   :  { %p387_p9 = pnand %p386_p8, %p380_p5 }
  0x34   :  { %390 = shalt.err (!%p387_p9)
}
  0x35   :  { %46 = dma.hbm_to_vmem [thread:$0]  %s574_s2, 16, %s44_s15, [#allocation6]  }
  0x36   :  { %s391_s6 = scalar_lea.hbm %s575_s3, 384 }
  0x37   :  { %p392_p10 = scmp.ne.s32.totalorder %s575_s3, %s391_s6  ;;  %p395_p11 = scmp.lt.u32.totalorder %s391_s6, %s575_s3 }
  0x39   :  { %p397_p12 = pnand %p395_p11, %p392_p10 }
  0x3b   :  { %400 = shalt.err (!%p397_p12)
}
  0x3c   :  { %s401_s11 = scalar_lea.vmem %s514_s17, 384  ;;  %p406_p0 = scmp.lt.s32.totalorder %s514_s17, %s514_s17 }
  0x3d   :  { %p402_p13 = scmp.ne.s32.totalorder %s514_s17, %s401_s11  ;;  %p407_p1 = scmp.lt.s32.totalorder %s401_s11, %s401_s11 }
  0x3f   :  { %p408_p2 = por %p407_p1, %p406_p0 }
  0x41   :  { %p409_p3 = pnand %p408_p2, %p402_p13 }
  0x43   :  { %412 = shalt.err (!%p409_p3)
}
  0x44   :  { %58 = dma.hbm_to_vmem [thread:$0]  %s575_s3, 384, %s514_s17, [#allocation9], %s445_s27, %s445_s27, %s446_s28  }
  0x45   :  { %435 = dma.done.wait [#allocation3], 384  }
  0x46   :  { %436 = vsyncadd [#allocation3], 4294966912 }
  0x47   :  { %437 = dma.done.wait [#allocation6], 272  }
  0x48   :  { %438 = vsyncadd [#allocation6], 4294967024 }
  0x49   :  { %439 = dma.done.wait [#allocation9], 384  }
  0x4a   :  { %440 = vsyncadd [#allocation9], 4294966912  ;;  %v449_v0 = vmov 0.0   ;;  %vm450_vm0 = vmmov 0   ;;  %v320_v1 = vld [vmem:[#allocation5] sm:$0xff]   ;;  %v321_v2 = vld [vmem:[#allocation5 + $0x8] sm:$0xff]  }
  0x4b   :  { %307 = vmatprep.subr.bf16.mxu1 %v449_v0  ;;  %291 = vmatprep.subr.bf16.mxu0 %v449_v0  ;;  %v322_v3 = vld [vmem:[#allocation2 + $0x8] sm:$0xff]   ;;  %v323_v4 = vld [vmem:[#allocation2] sm:$0xff]   ;;  %vm116_vm1 = vcmask 261120   ;;  %v324_v5 = vld [vmem:[#allocation2 + $0x10] sm:$0xff]   ;;  %vm225_vm2 = vcmask 257024   ;;  %s451_s3 = smov [#allocation10]  }
  0x4c   :  { %299 = vmatprep.mubr.msk.bf16.mxu1 %vm450_vm0, %v449_v0  ;;  %295 = vmatprep.mubr.msk.bf16.mxu0 %vm450_vm0, %v449_v0  ;;  %v284_v6 = vld [vmem:[#allocation8 + $0x8] sm:$0xff]   ;;  %v273_v7 = vld [vmem:[#allocation8] sm:$0xff]   ;;  %v251_v8 = vld [vmem:[#allocation7] ss:$0 sm:$0xff]  ;;  %s237_s1 = sshll.u32 %s451_s3, 4  ;;  %s238_s1 = int_to_ptr.vmem [resolvable:$true] %s237_s1 }
  0x4d   :  { %309 = vmatpush3.bf16.msra.mxu1 %v320_v1  ;;  %292 = vmatpush3.bf16.msra.mxu0 %v320_v1  ;;  %v278_v9 = vunpack.c.l.bf16 %v284_v6  ;;  %v274_v10 = vunpack.c.l.bf16 %v273_v7  ;;  %v279_v15 = vunpack.c.h.bf16 %v284_v6  ;;  %v275_v18 = vunpack.c.h.bf16 %v273_v7  ;;  %v285_v27 = vld [vmem:[#allocation8 + $0x10] sm:$0xff]   ;;  %s413_s13 = scalar_lea.vmem %s238_s1, 384  ;;  %p418_p5 = scmp.lt.s32.totalorder %s238_s1, %s238_s1 }
  0x4e   :  { %308 = vmatprep.subr.bf16.mxu1 %v449_v0  ;;  %293 = vmatprep.subr.bf16.mxu0 %v449_v0  ;;  %v282_v34 = vunpack.c.l.bf16 %v285_v27  ;;  %v283_v38 = vunpack.c.h.bf16 %v285_v27  ;;  %p414_p4 = scmp.ne.s32.totalorder %s238_s1, %s413_s13  ;;  %p419_p6 = scmp.lt.s32.totalorder %s413_s13, %s413_s13 }
  0x50   :  { %p420_p7 = por %p419_p6, %p418_p5 }
  0x51   :  { %310 = vmatpush3.bf16.msra.mxu1 %v321_v2  ;;  %294 = vmatpush3.bf16.msra.mxu0 %v321_v2 }
  0x52   :  { %p421_p8 = pnand %p420_p7, %p414_p4 }
  0x54   :  { %300 = vmatmul.mubr.msk.bf16.vlgmr.msra.gmra.mrb[0].mxu1 %vm116_vm1, %v322_v3  ;;  %296 = vmatmul.mubr.msk.bf16.vlgmr.msra.gmra.mrb[0].mxu0 %vm116_vm1, %v323_v4 }
  0x55   :  { %303 = vmatprep.mubr.msk.bf16.mxu1 %vm450_vm0, %v449_v0 }
  0x5c   :  { %304 = vmatmul.mubr.msk.bf16.gmra.mrb[4].mxu1 %vm116_vm1, %v324_v5 }
 0x127   :  { %v168_v11 = vpop.f32.mrb[0].mxu1  ;;  %v160_v12 = vpop.f32.mrb[0].mxu0 }
 0x128   :  { %v169_v13 = vadd.f32 %v251_v8, %v168_v11  ;;  %v301_v14 = vpop.f32.mrb[1].mxu1  ;;  %v161_v16 = vadd.f32 %v251_v8, %v160_v12  ;;  %v297_v17 = vpop.f32.mrb[1].mxu0 }
 0x129   :  { %v171_v19 = vpop.f32.mrb[2].mxu1  ;;  %v163_v20 = vpop.f32.mrb[2].mxu0 }
 0x12a   :  { %v197_v21 = vadd.f32 %v278_v9, %v169_v13  ;;  %v172_v22 = vadd.f32 %v251_v8, %v171_v19  ;;  %v302_v23 = vpop.f32.mrb[3].mxu1  ;;  %v195_v24 = vadd.f32 %v274_v10, %v161_v16  ;;  %v164_v25 = vadd.f32 %v251_v8, %v163_v20  ;;  %v298_v26 = vpop.f32.mrb[3].mxu0 }
 0x12c   :  { %v268_v28 = vpack.c.bf16 %v197_v21, %v197_v21  ;;  %v198_v29 = vadd.f32 %v279_v15, %v172_v22  ;;  %v266_v30 = vpack.c.bf16 %v195_v24, %v195_v24  ;;  %v196_v31 = vadd.f32 %v275_v18, %v164_v25 }
 0x12e   :  { %228 = vst.msk [vmem:[#allocation10 + $0x8] sm:$0xf] %vm225_vm2, %v268_v28  ;;  %v269_v32 = vpack.c.bf16 %v198_v29, %v198_v29  ;;  %226 = vst.msk [vmem:[#allocation10] sm:$0xf] %vm225_vm2, %v266_v30  ;;  %v267_v33 = vpack.c.bf16 %v196_v31, %v196_v31 }
 0x12f   :  { %v176_v35 = vpop.f32.mrb[4].mxu1 }
 0x130   :  { %229 = vst.msk [vmem:[#allocation10 + $0xc] sm:$0xf] %vm225_vm2, %v269_v32  ;;  %227 = vst.msk [vmem:[#allocation10 + $0x4] sm:$0xf] %vm225_vm2, %v267_v33  ;;  %v177_v36 = vadd.f32 %v251_v8, %v176_v35  ;;  %v305_v37 = vpop.f32.mrb[5].mxu1 }
 0x131   :  { %v179_v39 = vpop.f32.mrb[6].mxu1 }
 0x132   :  { %v199_v40 = vadd.f32 %v282_v34, %v177_v36  ;;  %v180_v41 = vadd.f32 %v251_v8, %v179_v39  ;;  %v306_v42 = vpop.f32.mrb[7].mxu1 }
 0x134   :  { %v270_v43 = vpack.c.bf16 %v199_v40, %v199_v40  ;;  %v200_v44 = vadd.f32 %v283_v38, %v180_v41 }
 0x136   :  { %230 = vst.msk [vmem:[#allocation10 + $0x10] sm:$0xf] %vm225_vm2, %v270_v43  ;;  %v271_v45 = vpack.c.bf16 %v200_v44, %v200_v44 }
 0x138   :  { %231 = vst.msk [vmem:[#allocation10 + $0x14] sm:$0xf] %vm225_vm2, %v271_v45 }
 0x139   :  { %424 = shalt.err (!%p421_p8)
}
 0x13a   :  { %s425_s16 = scalar_lea.hbm %s576_s4, 384 }
 0x13b   :  { %p426_p9 = scmp.ne.s32.totalorder %s576_s4, %s425_s16  ;;  %p429_p10 = scmp.lt.u32.totalorder %s425_s16, %s576_s4 }
 0x13d   :  { %p431_p11 = pnand %p429_p10, %p426_p9 }
 0x13f   :  { %434 = shalt.err (!%p431_p11)
}
 0x140   :  { %243 = dma.vmem_to_hbm [thread:$0]  %s238_s1, 384, %s576_s4, [#allocation4], %s445_s27, %s445_s27, %s446_s28  }
 0x141   :  { %441 = dma.done.wait [#allocation4], 384  }
 0x142   :  { %442 = vsyncadd [#allocation4], 4294966912 }
 0x143   :  { %247 = vsyncpa [#allocation3], 1 }
 0x144   :  { %248 = vsyncpa [#allocation6], 1 }
 0x145   :  { %249 = vsyncpa [#allocation9], 1 }
 0x146   :  { %250 = vsyncpa [#allocation4], 1 }

// kernel: image_model_forward.14
= control target key start
LH: loop header
LB: loop body
LE: loop exit
PB: predicated region body
PF: predicated region fallthrough
CT: control target
= control target key end

     0   :  { %6 = vsyncpa [#allocation3], 0  ;;  %s1710_s0 = inlined_call_operand.hbm [shape: bf16[2,24,96], index: 0, kind: input, shape index: {}]   ;;  %s1711_s1 = inlined_call_operand.hbm [shape: bf16[2,24,32], index: 1, kind: output, shape index: {}]  }
   0x1   :  { %8 = vsyncpa [#allocation3 + $0x1], 0 }
   0x2   :  { %9 = vsyncpa [#allocation4], 0 }
   0x3   :  { %11 = vsyncpa [#allocation4 + $0x1], 0  ;;  %s1386_s6 = smov 0   ;;  %s1388_s7 = smov 0  }
   0x4   :  { %s1390_s8 = smov 0   ;;  %s1392_s9 = smov 0  }
   0x5 LB: > { %s1407_s10 = sadd.s32 4294967295, %s1355_s9   ;;  %s985_s11 = sadd.s32 4294967294, %s1355_s9   ;;  %s1355_s9 = sphi %s1392_s9, %s1723_s9   ;;  %s1351_s8 = sphi %s1390_s8, %s1722_s8   ;;  %s1347_s7 = sphi %s1388_s7, %s1721_s7   ;;  %s1343_s6 = sphi %s1386_s6, %s1720_s6  }
   0x6   : > { %s1411_s12 = sadd.s32 1, %s1355_s9   ;;  %s24_s13 = sadd.s32 1, %s1351_s8 }
   0x7   : > { %s21_s14 = ssub.s32 %s1355_s9, %s1411_s12  ;;  %p31_p0 = scmp.ne.s32.totalorder %s1351_s8, %s1347_s7 }
   0x8   : > { %p22_p1 = scmp.eq.s32.totalorder %s21_s14, 0  ;;  %p32_p2 = scmp.eq.s32.totalorder %s1355_s9, 0 }
   0x9   : > { %p37_p3 = scmp.ne.s32.totalorder %s1347_s7, %s1343_s6  ;;  %p38_p4 = scmp.eq.s32.totalorder %s1407_s10, 0 }
   0xa   : > { %s1423_s15 = scalar_select %p22_p1, %s1351_s8, %s24_s13  }
   0xb   : > { %p33_p5 = por %p32_p2, %p31_p0  ;;  %p1425_p6 = por %p38_p4, %p37_p3 }
   0xc   : > { %p61_p7 = scmp.eq.s32.totalorder %s1407_s10, 1  ;;  %p67_p8 = scmp.eq.s32.totalorder %s985_s11, 1 }
   0xd   : > { %p1143_p10 = scmp.lt.s32.totalorder %s1355_s9, 2  ;;  %s87_s19 = sand.u32 1, %s1351_s8  }
   0xe   : > { %p1432_p11 = por %p61_p7, %p31_p0  ;;  %p1436_p12 = por %p67_p8, %p37_p3 }
   0xf   : > { %s1128_s20 = smul.u32 192, %s1355_s9  ;;  %p1447_p13 = pnand %p1143_p10, %p33_p5 }
  0x10   : > { %s1714_s17 = scalar_select %p1432_p11, 1, 0 }
  0x11   : > { %s1715_s18 = scalar_select %p1436_p12, 1, 0 }
  0x12   : > { %s1127_s21 = smul.u32 12, %s87_s19  ;;  %s1445_s24 = scalar_lea.hbm %s1710_s0, %s1128_s20 }
  0x13   : > { %s1453_s28 = scalar_lea.sflag [#allocation3], %s87_s19  ;;  %s1259_s29 = scalar_lea.hbm %s1445_s24, 192 }
  0x14   : > { %s91_s26 = scalar_lea.vmem [#allocation2], %s1127_s21  ;;  %p1260_p0 = scmp.ne.s32.totalorder %s1445_s24, %s1259_s29 }
  0x15   : > { %s98_s27 = sshll.u32 %s91_s26, 4  ;;  %p1261_p1 = pneg %p1447_p13  ;;  %s1451_s27 = int_to_ptr.vmem [resolvable:$true] %s98_s27 }
  0x16   : > { %s1264_s3 = scalar_lea.hbm %s1710_s0, 384  ;;  %p1265_p4 = scmp.lt.u32.totalorder %s1445_s24, %s1710_s0 }
  0x17   : > { %p1262_p2 = pnand %p1261_p1, %p1260_p0  ;;  %p1266_p5 = scmp.lt.u32.totalorder %s1264_s3, %s1259_s29 }
  0x18   : > { %p1268_p8 = scmp.lt.u32.totalorder %s1259_s29, %s1445_s24 }
  0x19   : > { %p1263_p3 = pneg %p1262_p2  ;;  %p1267_p7 = por %p1266_p5, %p1265_p4 }
  0x1b   : > { %p1269_p10 = por %p1268_p8, %p1267_p7 }
  0x1d   : > { %p1270_p9 = pnand %p1269_p10, %p1263_p3 }
  0x1f   : > { %1273 = shalt.err (!%p1270_p9)
}
  0x20   : > { %s1274_s11 = scalar_lea.vmem %s1451_s27, 192  ;;  %s1357_s13 = smov [#allocation2]  }
  0x21   : > { %p1275_p0 = scmp.ne.s32.totalorder %s1451_s27, %s1274_s11  ;;  %s1279_s14 = sshll.u32 %s1357_s13, 4  ;;  %s1280_s14 = int_to_ptr.vmem [resolvable:$false] %s1279_s14 }
  0x22   : > { %s1281_s19 = scalar_lea.vmem %s1280_s14, 384  ;;  %p1282_p11 = scmp.lt.s32.totalorder %s1451_s27, %s1280_s14 }
  0x23   : > { %p1277_p2 = pnand %p1275_p0, %p1261_p1  ;;  %p1283_p4 = scmp.lt.s32.totalorder %s1281_s19, %s1274_s11 }
  0x25   : > { %p1278_p12 = pneg %p1277_p2  ;;  %p1284_p5 = por %p1283_p4, %p1282_p11 }
  0x27   : > { %p1285_p7 = pnand %p1284_p5, %p1278_p12 }
  0x29   : > { %1288 = shalt.err (!%p1285_p7)
}
  0x2a   : > { %s1358_s20 = smov 64   ;;  %s1359_s21 = smov 4  }
  0x2b   : > { %1138 = dma.hbm_to_vmem [thread:$0]  (!%p1447_p13), %s1445_s24, 192, %s1451_s27, %s1453_s28, %s1358_s20, %s1358_s20, %s1359_s21  }
  0x2c   : > { %p989_p9 = scmp.ge.s32.totalorder %s1355_s9, 1  ;;  %p106_p1 = scmp.lt.s32.totalorder %s1355_s9, 3 }
  0x2e   : > { %p107_p3 = pnand %p989_p9, %p106_p1 }
  0x2f   : > { %s1484_s22 = sand.u32 (!%p107_p3), 1, %s1347_s7  }
  0x30   : > { %110 = sbr.rel (%p107_p3) target bundleno = 2745 (0xab9), region = 24  ;;  %s113_s26 = scalar_lea.sflag (!%p107_p3), [#allocation3], %s1484_s22 }
  0x31   : > { %s1129_s23 = smul.u32 (!%p107_p3), 12, %s1484_s22 }
  0x33   : > { %s116_s29 = scalar_lea.vmem (!%p107_p3), [#allocation2], %s1129_s23 }
  0x37   : > { %1334 = dma.done.wait (%p1425_p6), %s113_s26, 192  }
  0x38   : > { %1336 = vsyncadd (%p1425_p6), %s113_s26, 4294967104  ;;  %v140_v0 = vld [vmem:[%s116_s29] sm:$0xf]  ;;  %v141_v1 = vld [vmem:[%s116_s29 + $0x4] sm:$0xf]  ;;  %s1360_s24 = smov 96   ;;  %v137_v14 = vlaneseq }
  0x39   : > { %v142_v2 = vld [vmem:[%s116_s29 + $0x8] sm:$0xf]  ;;  %v1494_v3 = vcombine.low %v140_v0, %v141_v1  ;;  %v143_v4 = vmul.bf16 1052065461, %v140_v0  ;;  %v144_v5 = vmul.bf16 1052065461, %v141_v1 }
  0x3a   : > { %v1497_v6 = vcombine.low %v142_v2, %v142_v2  ;;  %vm166_vm0 = vcmask 64512   ;;  %v145_v12 = vmul.bf16 1052065461, %v142_v2  ;;  %v1512_v15 = vand.u32 127, %v137_v14  ;;  %s1361_s16 = smov 64   ;;  %s1362_s25 = smov 88  }
  0x3b   : > { %162 = vrot.lane.b32.xlu0 %v1494_v3, %s1360_s24  ;;  %v1499_v7 = vcombine.low %v143_v4, %v144_v5  ;;  %vm232_vm2 = vcmask 195584   ;;  %s1363_s27 = smov 120   ;;  %vm279_vm3 = vcmask 1043456   ;;  %s1364_s28 = smov 56   ;;  %vm874_vm4 = vcmask 130048  }
  0x3c   : > { %v1508_v13 = vcombine.low %v145_v12, %v145_v12  ;;  %vm139_vm1 = vcmp.lt.s32.totalorder %v1512_v15, 17  ;;  %s1365_s30 = smov 80   ;;  %s1366_s2 = smov 112   ;;  %vm894_vm5 = vcmask 257024  }
  0x3d   : > { %1055 = vmatprep.mubr.msk.bf16.mxu0 %vm166_vm0, %v1499_v7  ;;  %s1367_s3 = smov 48   ;;  %s1368_s4 = smov 72  }
  0x3e   : > { %s1369_s5 = smov 104   ;;  %s1370_s11 = smov 40  }
  0x3f   : > { %164 = vrot.lane.b32.xlu0 %v1497_v6, %s1360_s24  ;;  %s1371_s13 = smov 8   ;;  %s1372_s14 = smov 16  }
  0x40   : > { %s1373_s19 = smov 24   ;;  %s134_s20 = scalar_lea.vmem [#allocation5], %s1129_s23 }
  0x41   : > { %s912_s21 = sshll.u32 %s134_s20, 4  ;;  %s1130_s26 = smul.u32 192, %s1407_s10  ;;  %s1655_s21 = int_to_ptr.vmem [resolvable:$true] %s912_s21 }
  0x42   : > { %s899_s24 = scalar_lea.sflag [#allocation4], %s1484_s22  ;;  %p1717_p11 = scmp.ne.s32.totalorder %s1714_s17, 0 }
  0x43   : > { %s1662_s29 = scalar_lea.hbm %s1711_s1, %s1130_s26 }
  0xad   : > { %v163_v8 = vpop.permute.xlu0 %162 }
  0xae   : > { %1115 = vmatprep.subr.msk.bf16.mxu0 %vm166_vm0, %v163_v8  ;;  %v174_v9 = vsel %vm166_vm0, %v163_v8, 0 }
  0xaf   : > { %1052 = vmatpush3.bf16.xpose.msra.mxu0 %v174_v9 }
  0xb1   : > { %v165_v10 = vpop.permute.xlu0 %164 }
  0xb2   : > { %1116 = vmatprep.subr.msk.bf16.mxu0 %vm166_vm0, %v165_v10  ;;  %v177_v11 = vsel %vm166_vm0, %v165_v10, 0 }
  0xb7   : > { %1054 = vmatpush3.bf16.xpose.msra.mxu0 %v177_v11 }
  0xbe   : > { %1056 = vmatmul.mubr.msk.bf16.vlgmr.msra.gmra.mrb[0].mxu0 %vm166_vm0, %v1508_v13 }
 0x191   : > { %v1057_v16 = vpop.f32.mrb[0].mxu0 }
 0x192   : > { %v231_v17 = vsel %vm139_vm1, %v1057_v16, -1e+30  ;;  %v213_v18 = vpop.f32.mrb[1].mxu0 }
 0x193   : > { %v229_v19 = vsel %vm139_vm1, %v213_v18, -1e+30  ;;  %v1058_v20 = vpop.f32.mrb[2].mxu0  ;;  %v239_v21 = vsel %vm232_vm2, %v231_v17, -inf }
 0x194   : > { %240 = vmax.xlane.f32.xlu0 %v239_v21  ;;  %v216_v22 = vpop.f32.mrb[3].mxu0  ;;  %v233_v23 = vsel %vm232_vm2, %v229_v19, -inf }
 0x195   : > { %v230_v24 = vsel %vm139_vm1, %v216_v22, -1e+30  ;;  %234 = vmax.xlane.f32.xlu1 %v233_v23 }
 0x196   : > { %v236_v25 = vsel %vm232_vm2, %v230_v24, -inf }
 0x199   : > { %237 = vmax.xlane.f32.xlu1 %v236_v25 }
 0x1aa   : > { %268 = vrot.lane.b32.xlu1 %v1494_v3, %s1361_s16  ;;  %335 = vrot.lane.b32.xlu0 %v1494_v3, %s1362_s25 }
 0x221   : > { %v241_v26 = vpop.xlane.xlu0 %240 }
 0x222   : > { %v244_v27 = vsub.f32 %v231_v17, %v241_v26  ;;  %v235_v28 = vpop.xlane.xlu1 %234 }
 0x223   : > { %v242_v29 = vsub.f32 %v229_v19, %v235_v28 }
 0x224   : > { %v249_v30 = vmul.f32 1.442695, %v244_v27 }
 0x225   : > { %v245_v31 = vmul.f32 1.442695, %v242_v29  ;;  %v336_v46 = vpop.permute.xlu0 %335 }
 0x226   : > { %1211 = vpow2.f32 %v249_v30  ;;  %v238_v32 = vpop.xlane.xlu1 %237  ;;  %v346_v56 = vsel %vm166_vm0, %v336_v46, 0 }
 0x227   : > { %v243_v33 = vsub.f32 %v230_v24, %v238_v32  ;;  %1213 = vpow2.f32 %v245_v31 }
 0x229   : > { %v247_v34 = vmul.f32 1.442695, %v243_v33 }
 0x22a   : > { %v269_v35 = vpop.permute.xlu1 %268 }
 0x22b   : > { %1059 = vmatprep.subr.bf16.mxu1 %v269_v35  ;;  %1215 = vpow2.f32 %v247_v34 }
 0x22c   : > { %1060 = vmatpush3.bf16.msra.mxu1 %v269_v35 }
 0x230   : > { %v1212_v36 = vpop.eup %1211 }
 0x231   : > { %v257_v37 = vsel %vm232_vm2, %v1212_v36, 0.0  ;;  %v1214_v38 = vpop.eup %1213 }
 0x232   : > { %258 = vadd.xlane.f32.xlu1 %v257_v37  ;;  %v251_v39 = vsel %vm232_vm2, %v1214_v38, 0.0 }
 0x235   : > { %v1216_v40 = vpop.eup %1215 }
 0x236   : > { %252 = vadd.xlane.f32.xlu1 %v251_v39  ;;  %v254_v41 = vsel %vm232_vm2, %v1216_v40, 0.0 }
 0x23a   : > { %255 = vadd.xlane.f32.xlu1 %v254_v41 }
 0x24b   : > { %270 = vrot.lane.b32.xlu1 %v1497_v6, %s1361_s16 }
 0x24f   : > { %337 = vrot.lane.b32.xlu1 %v1497_v6, %s1362_s25  ;;  %s1289_s25 = scalar_lea.vmem %s1655_s21, 192 }
 0x250   : > { %p1290_p6 = scmp.ne.s32.totalorder %s1655_s21, %s1289_s25 }
 0x252   : > { %p1291_p12 = pnand %p1290_p6, %p1717_p11 }
 0x253   : > { %331 = vrot.lane.b32.xlu1 %v1499_v7, %s1363_s27 }
 0x254   : > { %p1292_p13 = pneg %p1291_p12 }
 0x257   : > { %333 = vrot.lane.b32.xlu1 %v1508_v13, %s1363_s27  ;;  %s1374_s27 = smov [#allocation5]  }
 0x2bf   : > { %v259_v42 = vpop.xlane.xlu1 %258 }
 0x2c0   : > { %1217 = vrcp.f32 %v259_v42 }
 0x2c3   : > { %v253_v43 = vpop.xlane.xlu1 %252 }
 0x2c4   : > { %1219 = vrcp.f32 %v253_v43 }
 0x2c7   : > { %v256_v44 = vpop.xlane.xlu1 %255 }
 0x2c8   : > { %1221 = vrcp.f32 %v256_v44 }
 0x2ca   : > { %v1218_v48 = vpop.eup %1217 }
 0x2cb   : > { %v271_v45 = vpop.permute.xlu1 %270  ;;  %v265_v52 = vmul.f32 %v1218_v48, %v1212_v36 }
 0x2cc   : > { %1117 = vmatprep.subr.msk.bf16.mxu1 %vm279_vm3, %v271_v45  ;;  %v281_v47 = vsel %vm279_vm3, %v271_v45, 0 }
 0x2cd   : > { %1062 = vmatpush3.bf16.msra.mxu1 %v281_v47  ;;  %v267_v57 = vpack.c.bf16 %v265_v52, %v265_v52 }
 0x2ce   : > { %1118 = vmatprep.subr.msk.bf16.mxu1 %vm166_vm0, %v336_v46  ;;  %v1220_v49 = vpop.eup %1219 }
 0x2cf   : > { %v338_v50 = vpop.permute.xlu1 %337  ;;  %v263_v53 = vmul.f32 %v1220_v49, %v1214_v38 }
 0x2d0   : > { %v349_v59 = vsel %vm166_vm0, %v338_v50, 0 }
 0x2d2   : > { %v1222_v51 = vpop.eup %1221 }
 0x2d3   : > { %v264_v54 = vmul.f32 %v1222_v51, %v1216_v40  ;;  %v332_v58 = vpop.permute.xlu1 %331 }
 0x2d5   : > { %v266_v55 = vpack.c.bf16 %v264_v54, %v263_v53 }
 0x2d7   : > { %1063 = vmatprep.mubr.msk.bf16.mxu1 %vm232_vm2, %v266_v55  ;;  %v334_v60 = vpop.permute.xlu1 %333 }
 0x2d8   : > { %1064 = vmatmul.mubr.msk.bf16.vlgmr.msra.gmra.mrb[0].mxu1 %vm232_vm2, %v267_v57 }
 0x2d9   : > { %1068 = vmatpush3.bf16.xpose.msra.mxu1 %v346_v56  ;;  %1071 = vmatprep.mubr.msk.bf16.mxu1 %vm166_vm0, %v332_v58 }
 0x2da   : > { %1119 = vmatprep.subr.msk.bf16.mxu1 %vm166_vm0, %v338_v50 }
 0x2e1   : > { %1070 = vmatpush3.bf16.xpose.msra.mxu1 %v349_v59 }
 0x2e8   : > { %1072 = vmatmul.mubr.msk.bf16.vlgmr.msra.gmra.mrb[4].mxu1 %vm166_vm0, %v334_v60 }
 0x3ab   : > { %v1545_v61 = vpop.f32.mrb[0].mxu1 }
 0x3ac   : > { %v1547_v62 = vpop.f32.mrb[1].mxu1 }
 0x3ad   : > { %v1066_v63 = vpop.f32.mrb[2].mxu1 }
 0x3ae   : > { %v1549_v0 = vpop.f32.mrb[3].mxu1 }
 0x3bb   : > { %v1073_v1 = vpop.f32.mrb[4].mxu1 }
 0x3bc   : > { %v385_v2 = vpop.f32.mrb[5].mxu1  ;;  %v401_v10 = vsel %vm139_vm1, %v1073_v1, -1e+30 }
 0x3bd   : > { %v399_v4 = vsel %vm139_vm1, %v385_v2, -1e+30  ;;  %v1074_v5 = vpop.f32.mrb[6].mxu1  ;;  %v408_v14 = vsel %vm232_vm2, %v401_v10, -inf }
 0x3be   : > { %v388_v8 = vpop.f32.mrb[7].mxu1  ;;  %v402_v9 = vsel %vm232_vm2, %v399_v4, -inf }
 0x3bf   : > { %v400_v11 = vsel %vm139_vm1, %v388_v8, -1e+30  ;;  %403 = vmax.xlane.f32.xlu1 %v402_v9 }
 0x3c0   : > { %v405_v12 = vsel %vm232_vm2, %v400_v11, -inf }
 0x3c1   : > { %406 = vmax.xlane.f32.xlu0 %v405_v12 }
 0x3c3   : > { %409 = vmax.xlane.f32.xlu1 %v408_v14 }
 0x3d4   : > { %437 = vrot.lane.b32.xlu1 %v1494_v3, %s1364_s28 }
 0x44c   : > { %v404_v16 = vpop.xlane.xlu1 %403 }
 0x44d   : > { %v411_v18 = vsub.f32 %v399_v4, %v404_v16 }
 0x44e   : > { %v407_v17 = vpop.xlane.xlu0 %406 }
 0x44f   : > { %v412_v19 = vsub.f32 %v400_v11, %v407_v17  ;;  %v414_v23 = vmul.f32 1.442695, %v411_v18 }
 0x450   : > { %v410_v20 = vpop.xlane.xlu1 %409 }
 0x451   : > { %v416_v21 = vmul.f32 1.442695, %v412_v19  ;;  %v413_v22 = vsub.f32 %v401_v10, %v410_v20 }
 0x453   : > { %1223 = vpow2.f32 %v416_v21  ;;  %v418_v24 = vmul.f32 1.442695, %v413_v22 }
 0x454   : > { %v438_v25 = vpop.permute.xlu1 %437 }
 0x455   : > { %1225 = vpow2.f32 %v418_v24  ;;  %1075 = vmatprep.subr.bf16.mxu0 %v438_v25 }
 0x456   : > { %1076 = vmatpush3.bf16.msra.mxu0 %v438_v25  ;;  %1227 = vpow2.f32 %v414_v23 }
 0x45d   : > { %v1224_v26 = vpop.eup %1223 }
 0x45e   : > { %v423_v27 = vsel %vm232_vm2, %v1224_v26, 0.0 }
 0x45f   : > { %v1226_v28 = vpop.eup %1225  ;;  %424 = vadd.xlane.f32.xlu1 %v423_v27 }
 0x460   : > { %v426_v29 = vsel %vm232_vm2, %v1226_v28, 0.0  ;;  %v1228_v30 = vpop.eup %1227 }
 0x461   : > { %427 = vadd.xlane.f32.xlu0 %v426_v29  ;;  %v420_v31 = vsel %vm232_vm2, %v1228_v30, 0.0 }
 0x465   : > { %421 = vadd.xlane.f32.xlu0 %v420_v31 }
 0x470   : > { %503 = vrot.lane.b32.xlu1 %v1494_v3, %s1365_s30 }
 0x474   : > { %505 = vrot.lane.b32.xlu1 %v1497_v6, %s1365_s30 }
 0x478   : > { %501 = vrot.lane.b32.xlu1 %v1508_v13, %s1366_s2 }
 0x47b   : > { %439 = vrot.lane.b32.xlu0 %v1497_v6, %s1364_s28  ;;  %s1293_s28 = sshll.u32 %s1374_s27, 4  ;;  %s1294_s28 = int_to_ptr.vmem [resolvable:$false] %s1293_s28 }
 0x47c   : > { %s1295_s30 = scalar_lea.vmem %s1294_s28, 384  ;;  %p1296_p8 = scmp.lt.s32.totalorder %s1655_s21, %s1294_s28 }
 0x47d   : > { %p1297_p10 = scmp.lt.s32.totalorder %s1295_s30, %s1289_s25 }
 0x47f   : > { %499 = vrot.lane.b32.xlu0 %v1499_v7, %s1366_s2  ;;  %p1298_p0 = por %p1297_p10, %p1296_p8 }
 0x481   : > { %p1299_p2 = pnand %p1298_p0, %p1292_p13 }
 0x4ec   : > { %v425_v32 = vpop.xlane.xlu1 %424 }
 0x4ee   : > { %v428_v33 = vpop.xlane.xlu0 %427 }
 0x4ef   : > { %1229 = vrcp.f32 %v428_v33 }
 0x4f0   : > { %1231 = vrcp.f32 %v425_v32  ;;  %v504_v36 = vpop.permute.xlu1 %503 }
 0x4f1   : > { %v514_v45 = vsel %vm166_vm0, %v504_v36, 0 }
 0x4f2   : > { %v422_v34 = vpop.xlane.xlu0 %421 }
 0x4f3   : > { %1233 = vrcp.f32 %v422_v34 }
 0x4f4   : > { %v506_v48 = vpop.permute.xlu1 %505 }
 0x4f5   : > { %v517_v49 = vsel %vm166_vm0, %v506_v48, 0 }
 0x4f6   : > { %v440_v35 = vpop.permute.xlu0 %439 }
 0x4f7   : > { %v449_v37 = vsel %vm279_vm3, %v440_v35, 0  ;;  %1120 = vmatprep.subr.msk.bf16.mxu0 %vm279_vm3, %v440_v35 }
 0x4f8   : > { %1078 = vmatpush3.bf16.msra.mxu0 %v449_v37  ;;  %v502_v50 = vpop.permute.xlu1 %501 }
 0x4f9   : > { %1121 = vmatprep.subr.msk.bf16.mxu0 %vm166_vm0, %v504_v36  ;;  %v1230_v38 = vpop.eup %1229 }
 0x4fa   : > { %v1232_v39 = vpop.eup %1231  ;;  %v434_v41 = vmul.f32 %v1230_v38, %v1226_v28  ;;  %v500_v47 = vpop.permute.xlu0 %499 }
 0x4fb   : > { %v433_v43 = vmul.f32 %v1232_v39, %v1224_v26 }
 0x4fc   : > { %v436_v46 = vpack.c.bf16 %v434_v41, %v434_v41 }
 0x4fd   : > { %v1234_v40 = vpop.eup %1233 }
 0x4fe   : > { %v432_v42 = vmul.f32 %v1234_v40, %v1228_v30 }
 0x500   : > { %v435_v44 = vpack.c.bf16 %v433_v43, %v432_v42 }
 0x502   : > { %1079 = vmatprep.mubr.msk.bf16.mxu0 %vm232_vm2, %v435_v44 }
 0x503   : > { %1080 = vmatmul.mubr.msk.bf16.vlgmr.msra.gmra.mrb[4].mxu0 %vm232_vm2, %v436_v46 }
 0x504   : > { %1084 = vmatpush3.bf16.xpose.msra.mxu0 %v514_v45  ;;  %1087 = vmatprep.mubr.msk.bf16.mxu0 %vm166_vm0, %v500_v47 }
 0x505   : > { %1122 = vmatprep.subr.msk.bf16.mxu0 %vm166_vm0, %v506_v48 }
 0x50c   : > { %1086 = vmatpush3.bf16.xpose.msra.mxu0 %v517_v49 }
 0x513   : > { %1088 = vmatmul.mubr.msk.bf16.vlgmr.msra.gmra.mrb[8].mxu0 %vm166_vm0, %v502_v50 }
 0x5d6   : > { %v1581_v51 = vpop.f32.mrb[4].mxu0 }
 0x5d7   : > { %v1583_v52 = vpop.f32.mrb[5].mxu0 }
 0x5d8   : > { %v1082_v53 = vpop.f32.mrb[6].mxu0 }
 0x5d9   : > { %v1585_v54 = vpop.f32.mrb[7].mxu0 }
 0x5da   : > { %v1194_v55 = vpack.i.bf16 %v1585_v54, %v1583_v52 }
 0x5e6   : > { %v1089_v56 = vpop.f32.mrb[8].mxu0 }
 0x5e7   : > { %v553_v57 = vpop.f32.mrb[9].mxu0  ;;  %v569_v1 = vsel %vm139_vm1, %v1089_v56, -1e+30 }
 0x5e8   : > { %v567_v58 = vsel %vm139_vm1, %v553_v57, -1e+30  ;;  %v1090_v59 = vpop.f32.mrb[10].mxu0  ;;  %v576_v5 = vsel %vm232_vm2, %v569_v1, -inf }
 0x5e9   : > { %v556_v60 = vpop.f32.mrb[11].mxu0  ;;  %v570_v63 = vsel %vm232_vm2, %v567_v58, -inf }
 0x5ea   : > { %v568_v2 = vsel %vm139_vm1, %v556_v60, -1e+30  ;;  %571 = vmax.xlane.f32.xlu0 %v570_v63 }
 0x5eb   : > { %v573_v4 = vsel %vm232_vm2, %v568_v2, -inf }
 0x5ec   : > { %574 = vmax.xlane.f32.xlu1 %v573_v4 }
 0x5ee   : > { %577 = vmax.xlane.f32.xlu0 %v576_v5 }
 0x5fd   : > { %605 = vrot.lane.b32.xlu1 %v1494_v3, %s1367_s3 }
 0x677   : > { %v572_v8 = vpop.xlane.xlu0 %571 }
 0x678   : > { %v579_v10 = vsub.f32 %v567_v58, %v572_v8 }
 0x679   : > { %v575_v9 = vpop.xlane.xlu1 %574 }
 0x67a   : > { %v580_v11 = vsub.f32 %v568_v2, %v575_v9  ;;  %v582_v18 = vmul.f32 1.442695, %v579_v10 }
 0x67b   : > { %v578_v12 = vpop.xlane.xlu0 %577 }
 0x67c   : > { %v584_v14 = vmul.f32 1.442695, %v580_v11  ;;  %v581_v16 = vsub.f32 %v569_v1, %v578_v12 }
 0x67d   : > { %v606_v17 = vpop.permute.xlu1 %605 }
 0x67e   : > { %1235 = vpow2.f32 %v584_v14  ;;  %v586_v19 = vmul.f32 1.442695, %v581_v16  ;;  %1091 = vmatprep.subr.bf16.mxu1 %v606_v17 }
 0x67f   : > { %1092 = vmatpush3.bf16.msra.mxu1 %v606_v17 }
 0x680   : > { %1237 = vpow2.f32 %v586_v19 }
 0x681   : > { %1239 = vpow2.f32 %v582_v18 }
 0x688   : > { %v1236_v20 = vpop.eup %1235 }
 0x689   : > { %v591_v21 = vsel %vm232_vm2, %v1236_v20, 0.0 }
 0x68a   : > { %v1238_v22 = vpop.eup %1237  ;;  %592 = vadd.xlane.f32.xlu1 %v591_v21 }
 0x68b   : > { %v594_v23 = vsel %vm232_vm2, %v1238_v22, 0.0  ;;  %v1240_v24 = vpop.eup %1239 }
 0x68c   : > { %595 = vadd.xlane.f32.xlu0 %v594_v23  ;;  %v588_v25 = vsel %vm232_vm2, %v1240_v24, 0.0 }
 0x690   : > { %589 = vadd.xlane.f32.xlu0 %v588_v25 }
 0x69b   : > { %671 = vrot.lane.b32.xlu1 %v1494_v3, %s1368_s4 }
 0x69f   : > { %673 = vrot.lane.b32.xlu1 %v1497_v6, %s1368_s4 }
 0x6a3   : > { %669 = vrot.lane.b32.xlu1 %v1508_v13, %s1369_s5 }
 0x6a6   : > { %607 = vrot.lane.b32.xlu0 %v1497_v6, %s1367_s3 }
 0x6aa   : > { %667 = vrot.lane.b32.xlu0 %v1499_v7, %s1369_s5 }
 0x717   : > { %v593_v26 = vpop.xlane.xlu1 %592 }
 0x719   : > { %v596_v27 = vpop.xlane.xlu0 %595 }
 0x71a   : > { %1241 = vrcp.f32 %v596_v27 }
 0x71b   : > { %1243 = vrcp.f32 %v593_v26  ;;  %v672_v30 = vpop.permute.xlu1 %671 }
 0x71c   : > { %v682_v37 = vsel %vm166_vm0, %v672_v30, 0 }
 0x71d   : > { %v590_v28 = vpop.xlane.xlu0 %589 }
 0x71e   : > { %1245 = vrcp.f32 %v590_v28 }
 0x71f   : > { %v674_v40 = vpop.permute.xlu1 %673 }
 0x720   : > { %v685_v41 = vsel %vm166_vm0, %v674_v40, 0 }
 0x721   : > { %v608_v29 = vpop.permute.xlu0 %607 }
 0x722   : > { %v617_v31 = vsel %vm279_vm3, %v608_v29, 0  ;;  %1123 = vmatprep.subr.msk.bf16.mxu1 %vm279_vm3, %v608_v29 }
 0x723   : > { %1094 = vmatpush3.bf16.msra.mxu1 %v617_v31  ;;  %v670_v42 = vpop.permute.xlu1 %669 }
 0x724   : > { %1124 = vmatprep.subr.msk.bf16.mxu1 %vm166_vm0, %v672_v30  ;;  %v1242_v13 = vpop.eup %1241 }
 0x725   : > { %v1244_v32 = vpop.eup %1243  ;;  %v602_v34 = vmul.f32 %v1242_v13, %v1238_v22  ;;  %v668_v39 = vpop.permute.xlu0 %667 }
 0x726   : > { %v601_v35 = vmul.f32 %v1244_v32, %v1236_v20 }
 0x727   : > { %v604_v38 = vpack.c.bf16 %v602_v34, %v602_v34 }
 0x728   : > { %v1246_v33 = vpop.eup %1245 }
 0x729   : > { %v600_v7 = vmul.f32 %v1246_v33, %v1240_v24 }
 0x72b   : > { %v603_v36 = vpack.c.bf16 %v601_v35, %v600_v7 }
 0x72d   : > { %1095 = vmatprep.mubr.msk.bf16.mxu1 %vm232_vm2, %v603_v36 }
 0x72e   : > { %1096 = vmatmul.mubr.msk.bf16.vlgmr.msra.gmra.mrb[8].mxu1 %vm232_vm2, %v604_v38 }
 0x72f   : > { %1100 = vmatpush3.bf16.xpose.msra.mxu1 %v682_v37  ;;  %1103 = vmatprep.mubr.msk.bf16.mxu1 %vm166_vm0, %v668_v39 }
 0x730   : > { %1125 = vmatprep.subr.msk.bf16.mxu1 %vm166_vm0, %v674_v40 }
 0x737   : > { %1102 = vmatpush3.bf16.xpose.msra.mxu1 %v685_v41 }
 0x73e   : > { %1104 = vmatmul.mubr.msk.bf16.vlgmr.msra.gmra.mrb[12].mxu1 %vm166_vm0, %v670_v42 }
 0x801   : > { %v1097_v43 = vpop.f32.mrb[8].mxu1 }
 0x802   : > { %v653_v44 = vpop.f32.mrb[9].mxu1 }
 0x803   : > { %v1098_v45 = vpop.f32.mrb[10].mxu1 }
 0x804   : > { %v656_v46 = vpop.f32.mrb[11].mxu1 }
 0x805   : > { %v1199_v47 = vpack.i.bf16 %v656_v46, %v653_v44 }
 0x811   : > { %v1105_v48 = vpop.f32.mrb[12].mxu1 }
 0x812   : > { %v721_v49 = vpop.f32.mrb[13].mxu1  ;;  %v737_v58 = vsel %vm139_vm1, %v1105_v48, -1e+30 }
 0x813   : > { %v735_v50 = vsel %vm139_vm1, %v721_v49, -1e+30  ;;  %v1106_v53 = vpop.f32.mrb[14].mxu1  ;;  %v744_v63 = vsel %vm232_vm2, %v737_v58, -inf }
 0x814   : > { %v724_v56 = vpop.f32.mrb[15].mxu1  ;;  %v738_v57 = vsel %vm232_vm2, %v735_v50, -inf }
 0x815   : > { %v736_v59 = vsel %vm139_vm1, %v724_v56, -1e+30  ;;  %739 = vmax.xlane.f32.xlu0 %v738_v57 }
 0x816   : > { %v741_v60 = vsel %vm232_vm2, %v736_v59, -inf }
 0x817   : > { %742 = vmax.xlane.f32.xlu1 %v741_v60 }
 0x819   : > { %745 = vmax.xlane.f32.xlu0 %v744_v63 }
 0x8a2   : > { %v740_v1 = vpop.xlane.xlu0 %739 }
 0x8a3   : > { %v747_v4 = vsub.f32 %v735_v50, %v740_v1 }
 0x8a4   : > { %v743_v2 = vpop.xlane.xlu1 %742 }
 0x8a5   : > { %v748_v5 = vsub.f32 %v736_v59, %v743_v2  ;;  %v750_v11 = vmul.f32 1.442695, %v747_v4 }
 0x8a6   : > { %v746_v8 = vpop.xlane.xlu0 %745 }
 0x8a7   : > { %v752_v9 = vmul.f32 1.442695, %v748_v5  ;;  %v749_v10 = vsub.f32 %v737_v58, %v746_v8 }
 0x8a9   : > { %1247 = vpow2.f32 %v752_v9  ;;  %v754_v12 = vmul.f32 1.442695, %v749_v10 }
 0x8ab   : > { %1249 = vpow2.f32 %v754_v12 }
 0x8ac   : > { %1251 = vpow2.f32 %v750_v11 }
 0x8b3   : > { %v1248_v15 = vpop.eup %1247 }
 0x8b4   : > { %v759_v14 = vsel %vm232_vm2, %v1248_v15, 0.0 }
 0x8b5   : > { %v1250_v16 = vpop.eup %1249  ;;  %760 = vadd.xlane.f32.xlu1 %v759_v14 }
 0x8b6   : > { %v762_v17 = vsel %vm232_vm2, %v1250_v16, 0.0  ;;  %v1252_v18 = vpop.eup %1251 }
 0x8b7   : > { %763 = vadd.xlane.f32.xlu0 %v762_v17  ;;  %v756_v19 = vsel %vm232_vm2, %v1252_v18, 0.0 }
 0x8bb   : > { %757 = vadd.xlane.f32.xlu0 %v756_v19 }
 0x8c6   : > { %773 = vrot.lane.b32.xlu1 %v1494_v3, %s1370_s11 }
 0x8ca   : > { %1195 = vrot.lane.b32.xlu1 %v1194_v55, %s1371_s13 }
 0x8ce   : > { %842 = vrot.lane.b32.xlu1 %v1581_v51, %s1371_s13 }
 0x8d1   : > { %775 = vrot.lane.b32.xlu0 %v1497_v6, %s1370_s11 }
 0x8d2   : > { %854 = vrot.lane.b32.xlu1 %v1097_v43, %s1372_s14 }
 0x8d5   : > { %1200 = vrot.lane.b32.xlu0 %v1199_v47, %s1372_s14 }
 0x942   : > { %v761_v20 = vpop.xlane.xlu1 %760 }
 0x944   : > { %v764_v21 = vpop.xlane.xlu0 %763 }
 0x945   : > { %1253 = vrcp.f32 %v764_v21 }
 0x946   : > { %v774_v22 = vpop.permute.xlu1 %773  ;;  %1255 = vrcp.f32 %v761_v20 }
 0x947   : > { %1107 = vmatprep.subr.bf16.mxu0 %v774_v22 }
 0x948   : > { %v758_v23 = vpop.xlane.xlu0 %757  ;;  %1108 = vmatpush3.bf16.msra.mxu0 %v774_v22 }
 0x949   : > { %1257 = vrcp.f32 %v758_v23 }
 0x94a   : > { %v1196_v32 = vpop.permute.xlu1 %1195 }
 0x94b   : > { %v1198_v39 = vunpack.i.h.bf16 %v1196_v32  ;;  %v1197_v40 = vunpack.i.l.bf16 %v1196_v32 }
 0x94c   : > { %v776_v3 = vpop.permute.xlu0 %775 }
 0x94d   : > { %v785_v52 = vsel %vm279_vm3, %v776_v3, 0  ;;  %1126 = vmatprep.subr.msk.bf16.mxu0 %vm279_vm3, %v776_v3  ;;  %v871_v45 = vsel %vm166_vm0, %v1547_v62, %v1197_v40 }
 0x94e   : > { %1110 = vmatpush3.bf16.msra.mxu0 %v785_v52  ;;  %v843_v33 = vpop.permute.xlu1 %842 }
 0x94f   : > { %v1254_v51 = vpop.eup %1253  ;;  %v873_v7 = vsel %vm166_vm0, %v1545_v61, %v843_v33  ;;  %v872_v61 = vsel %vm166_vm0, %v1549_v0, %v1198_v39 }
 0x950   : > { %v1256_v6 = vpop.eup %1255  ;;  %v770_v55 = vmul.f32 %v1254_v51, %v1250_v16  ;;  %v1201_v35 = vpop.permute.xlu0 %1200 }
 0x951   : > { %v769_v25 = vmul.f32 %v1256_v6, %v1248_v15  ;;  %v1203_v42 = vunpack.i.h.bf16 %v1201_v35  ;;  %v1202_v43 = vunpack.i.l.bf16 %v1201_v35 }
 0x952   : > { %v772_v27 = vpack.c.bf16 %v770_v55, %v770_v55  ;;  %v855_v34 = vpop.permute.xlu1 %854 }
 0x953   : > { %v1258_v54 = vpop.eup %1257  ;;  %v877_v36 = vsel %vm874_vm4, %v873_v7, %v855_v34  ;;  %v875_v48 = vsel %vm874_vm4, %v871_v45, %v1202_v43  ;;  %v876_v49 = vsel %vm874_vm4, %v872_v61, %v1203_v42 }
 0x954   : > { %v768_v24 = vmul.f32 %v1258_v54, %v1252_v18 }
 0x956   : > { %v771_v26 = vpack.c.bf16 %v769_v25, %v768_v24 }
 0x958   : > { %1111 = vmatprep.mubr.msk.bf16.mxu0 %vm232_vm2, %v771_v26 }
 0x959   : > { %1112 = vmatmul.mubr.msk.bf16.vlgmr.msra.gmra.mrb[12].mxu0 %vm232_vm2, %v772_v27 }
 0xa2c   : > { %v1113_v28 = vpop.f32.mrb[12].mxu0 }
 0xa2d   : > { %866 = vrot.lane.b32.xlu1 %v1113_v28, %s1373_s19  ;;  %v821_v29 = vpop.f32.mrb[13].mxu0 }
 0xa2e   : > { %v1114_v30 = vpop.f32.mrb[14].mxu0 }
 0xa2f   : > { %v824_v31 = vpop.f32.mrb[15].mxu0 }
 0xa30   : > { %v1204_v13 = vpack.i.bf16 %v824_v31, %v821_v29 }
 0xa32   : > { %1205 = vrot.lane.b32.xlu0 %v1204_v13, %s1373_s19 }
 0xa9f   : > { %v867_v37 = vpop.permute.xlu1 %866 }
 0xaa0   : > { %v880_v38 = vsel %vm232_vm2, %v877_v36, %v867_v37 }
 0xaa1   : > { %v1018_v41 = vpack.c.bf16 %v880_v38, %v880_v38 }
 0xaa3   : > { %897 = vst.msk [vmem:[%s134_s20 + $0x8] sm:$0xf] %vm894_vm5, %v1018_v41 }
 0xaa4   : > { %v1206_v44 = vpop.permute.xlu0 %1205 }
 0xaa5   : > { %v1208_v46 = vunpack.i.h.bf16 %v1206_v44  ;;  %v1207_v47 = vunpack.i.l.bf16 %v1206_v44 }
 0xaa7   : > { %v878_v50 = vsel %vm232_vm2, %v875_v48, %v1207_v47  ;;  %v879_v53 = vsel %vm232_vm2, %v876_v49, %v1208_v46 }
 0xaa8   : > { %v1016_v0 = vpack.c.bf16 %v878_v50, %v878_v50  ;;  %v1017_v56 = vpack.c.bf16 %v879_v53, %v879_v53 }
 0xaaa   : > { %895 = vst.msk [vmem:[%s134_s20] sm:$0xf] %vm894_vm5, %v1016_v0  ;;  %896 = vst.msk [vmem:[%s134_s20 + $0x4] sm:$0xf] %vm894_vm5, %v1017_v56 }
 0xaab   : > { %1302 = shalt.err (!%p1299_p2)
}
 0xaac   : > { %s1303_s2 = scalar_lea.hbm %s1662_s29, 192  ;;  %s1307_s5 = scalar_lea.hbm %s1711_s1, 384 }
 0xaad   : > { %p1304_p4 = scmp.ne.s32.totalorder %s1662_s29, %s1303_s2  ;;  %p1308_p9 = scmp.lt.u32.totalorder %s1662_s29, %s1711_s1 }
 0xaae   : > { %p1309_p1 = scmp.lt.u32.totalorder %s1307_s5, %s1303_s2  ;;  %p1311_p6 = scmp.lt.u32.totalorder %s1303_s2, %s1662_s29 }
 0xaaf   : > { %p1305_p5 = pnand %p1304_p4, %p1717_p11 }
 0xab0   : > { %p1310_p3 = por %p1309_p1, %p1308_p9 }
 0xab1   : > { %p1306_p7 = pneg %p1305_p5 }
 0xab2   : > { %p1312_p12 = por %p1311_p6, %p1310_p3 }
 0xab4   : > { %p1313_p13 = pnand %p1312_p12, %p1306_p7 }
 0xab6   : > { %1316 = shalt.err (!%p1313_p13)
}
 0xab7   : > { %s1375_s14 = smov 4  }
 0xab8   : > { %1133 = dma.vmem_to_hbm [thread:$0]  (%p1717_p11), %s1655_s21, 192, %s1662_s29, %s899_s24, %s1361_s16, %s1361_s16, %s1375_s14  }
 0xab9 PF: > { %s927_s19 = sand.u32 1, %s1343_s6   ;;  %p1718_p8 = scmp.ne.s32.totalorder %s1715_s18, 0 }
 0xaba   : > { %p1719_p10 = scmp.ge.s32.totalorder %s1355_s9, 2  ;;  %s928_s20 = scalar_lea.sflag [#allocation4], %s927_s19 }
 0xabc   : > { %p1140_p0 = pnand %p1719_p10, %p1718_p8 }
 0xabe   : > { %1338 = dma.done.wait (!%p1140_p0), %s928_s20, 192  }
 0xabf   : > { %1340 = vsyncadd (!%p1140_p0), %s928_s20, 4294967104  ;;  %p14_p2 = scmp.ge.s32.totalorder %s1411_s12, 4   ;;  %s1720_s6 = smov %s1347_s7 }
 0xac0   : > { %s1721_s7 = smov %s1351_s8  ;;  %s1722_s8 = smov %s1423_s15 }
 0xac1   : > { %s1723_s9 = smov %s1411_s12  ;;  %16 = sbr.rel (!%p14_p2) target bundleno = 5 (0x5), region = 69 }
 0xac8   :  { %933 = vsyncpa [#allocation3], 1 }
 0xac9   :  { %935 = vsyncpa [#allocation3 + $0x1], 1 }
 0xaca   :  { %936 = vsyncpa [#allocation4], 1 }
 0xacb   :  { %938 = vsyncpa [#allocation4 + $0x1], 1 }

// kernel: image_model_forward.17
= control target key start
LH: loop header
LB: loop body
LE: loop exit
PB: predicated region body
PF: predicated region fallthrough
CT: control target
= control target key end

     0   :  { %9 = vsyncpa [#allocation3], 0  ;;  %s602_s0 = inlined_call_operand.hbm [shape: bf16[48,64], index: 0, kind: input, shape index: {}]   ;;  %s603_s1 = inlined_call_operand.hbm [shape: bf16[64,32], index: 1, kind: input, shape index: {}]   ;;  %s604_s2 = inlined_call_operand.hbm [shape: f32[1,32], index: 2, kind: input, shape index: {}]   ;;  %s605_s3 = inlined_call_operand.hbm [shape: bf16[48,32], index: 3, kind: input, shape index: {}]   ;;  %s606_s4 = inlined_call_operand.hbm [shape: bf16[48,32], index: 4, kind: output, shape index: {}]  }
   0x1   :  { %10 = vsyncpa [#allocation6], 0 }
   0x2   :  { %11 = vsyncpa [#allocation9], 0 }
   0x3   :  { %12 = vsyncpa [#allocation4], 0  ;;  %s473_s15 = smov [#allocation5]   ;;  %s474_s17 = smov [#allocation2]  }
   0x4   :  { %s30_s16 = sshll.u32 %s473_s15, 4  ;;  %s18_s18 = sshll.u32 %s474_s17, 4  ;;  %s31_s16 = int_to_ptr.vmem [resolvable:$true] %s30_s16  ;;  %s507_s18 = int_to_ptr.vmem [resolvable:$true] %s18_s18 }
   0x5   :  { %s355_s21 = scalar_lea.hbm %s603_s1, 512 }
   0x6   :  { %p356_p0 = scmp.ne.s32.totalorder %s603_s1, %s355_s21  ;;  %p359_p1 = scmp.lt.u32.totalorder %s355_s21, %s603_s1 }
   0x8   :  { %p361_p2 = pnand %p359_p1, %p356_p0 }
   0xa   :  { %364 = shalt.err (!%p361_p2)
}
   0xb   :  { %s365_s26 = scalar_lea.vmem %s31_s16, 512  ;;  %p370_p4 = scmp.lt.s32.totalorder %s31_s16, %s31_s16 }
   0xc   :  { %p366_p3 = scmp.ne.s32.totalorder %s31_s16, %s365_s26  ;;  %p371_p5 = scmp.lt.s32.totalorder %s365_s26, %s365_s26 }
   0xe   :  { %p372_p6 = por %p371_p5, %p370_p4 }
  0x10   :  { %p373_p7 = pnand %p372_p6, %p366_p3 }
  0x12   :  { %376 = shalt.err (!%p373_p7)
}
  0x13   :  { %s475_s27 = smov 64   ;;  %s476_s28 = smov 4  }
  0x14   :  { %36 = dma.hbm_to_vmem [thread:$0]  %s603_s1, 512, %s31_s16, [#allocation6], %s475_s27, %s475_s27, %s476_s28  }
  0x15   :  { %s377_s7 = scalar_lea.hbm %s602_s0, 384 }
  0x16   :  { %p378_p8 = scmp.ne.s32.totalorder %s602_s0, %s377_s7  ;;  %p381_p9 = scmp.lt.u32.totalorder %s377_s7, %s602_s0 }
  0x18   :  { %p383_p10 = pnand %p381_p9, %p378_p8 }
  0x1a   :  { %386 = shalt.err (!%p383_p10)
}
  0x1b   :  { %s387_s12 = scalar_lea.vmem %s507_s18, 384  ;;  %p392_p12 = scmp.lt.s32.totalorder %s507_s18, %s507_s18 }
  0x1c   :  { %p388_p11 = scmp.ne.s32.totalorder %s507_s18, %s387_s12  ;;  %p393_p13 = scmp.lt.s32.totalorder %s387_s12, %s387_s12 }
  0x1e   :  { %p394_p0 = por %p393_p13, %p392_p12 }
  0x20   :  { %p395_p1 = pnand %p394_p0, %p388_p11 }
  0x22   :  { %398 = shalt.err (!%p395_p1)
}
  0x23   :  { %24 = dma.hbm_to_vmem [thread:$0]  %s602_s0, 384, %s507_s18, [#allocation3], %s475_s27, %s475_s27, %s476_s28  }
  0x24   :  { %s477_s14 = smov [#allocation7]   ;;  %s478_s16 = smov [#allocation8]  }
  0x25   :  { %s43_s15 = sshll.u32 %s477_s14, 4  ;;  %s52_s17 = sshll.u32 %s478_s16, 4  ;;  %s44_s15 = int_to_ptr.vmem [resolvable:$true] %s43_s15  ;;  %s544_s17 = int_to_ptr.vmem [resolvable:$true] %s52_s17 }
  0x26   :  { %s399_s21 = scalar_lea.hbm %s604_s2, 16 }
  0x27   :  { %p400_p2 = scmp.ne.s32.totalorder %s604_s2, %s399_s21  ;;  %p403_p3 = scmp.lt.u32.totalorder %s399_s21, %s604_s2 }
  0x29   :  { %p405_p4 = pnand %p403_p3, %p400_p2 }
  0x2b   :  { %408 = shalt.err (!%p405_p4)
}
  0x2c   :  { %s409_s0 = scalar_lea.vmem %s44_s15, 16  ;;  %s413_s18 = scalar_lea.vmem %s44_s15, 32 }
  0x2d   :  { %p410_p5 = scmp.ne.s32.totalorder %s44_s15, %s409_s0  ;;  %p414_p6 = scmp.lt.s32.totalorder %s44_s15, %s44_s15 }
  0x2e   :  { %p415_p7 = scmp.lt.s32.totalorder %s413_s18, %s409_s0 }
  0x30   :  { %p416_p8 = por %p415_p7, %p414_p6 }
  0x32   :  { %p417_p9 = pnand %p416_p8, %p410_p5 }
  0x34   :  { %420 = shalt.err (!%p417_p9)
}
  0x35   :  { %46 = dma.hbm_to_vmem [thread:$0]  %s604_s2, 16, %s44_s15, [#allocation6]  }
  0x36   :  { %s421_s6 = scalar_lea.hbm %s605_s3, 384 }
  0x37   :  { %p422_p10 = scmp.ne.s32.totalorder %s605_s3, %s421_s6  ;;  %p425_p11 = scmp.lt.u32.totalorder %s421_s6, %s605_s3 }
  0x39   :  { %p427_p12 = pnand %p425_p11, %p422_p10 }
  0x3b   :  { %430 = shalt.err (!%p427_p12)
}
  0x3c   :  { %s431_s11 = scalar_lea.vmem %s544_s17, 384  ;;  %p436_p0 = scmp.lt.s32.totalorder %s544_s17, %s544_s17 }
  0x3d   :  { %p432_p13 = scmp.ne.s32.totalorder %s544_s17, %s431_s11  ;;  %p437_p1 = scmp.lt.s32.totalorder %s431_s11, %s431_s11 }
  0x3f   :  { %p438_p2 = por %p437_p1, %p436_p0 }
  0x41   :  { %p439_p3 = pnand %p438_p2, %p432_p13 }
  0x43   :  { %442 = shalt.err (!%p439_p3)
}
  0x44   :  { %58 = dma.hbm_to_vmem [thread:$0]  %s605_s3, 384, %s544_s17, [#allocation9], %s475_s27, %s475_s27, %s476_s28  }
  0x45   :  { %465 = dma.done.wait [#allocation3], 384  }
  0x46   :  { %466 = vsyncadd [#allocation3], 4294966912 }
  0x47   :  { %467 = dma.done.wait [#allocation6], 528  }
  0x48   :  { %468 = vsyncadd [#allocation6], 4294966768 }
  0x49   :  { %469 = dma.done.wait [#allocation9], 384  }
  0x4a   :  { %470 = vsyncadd [#allocation9], 4294966912  ;;  %v479_v0 = vmov 0.0   ;;  %vm480_vm0 = vmmov 0   ;;  %v348_v1 = vld [vmem:[#allocation5] sm:$0xff]   ;;  %v349_v2 = vld [vmem:[#allocation5 + $0x8] sm:$0xff]  }
  0x4b   :  { %331 = vmatprep.subr.bf16.mxu1 %v479_v0  ;;  %311 = vmatprep.subr.bf16.mxu0 %v479_v0  ;;  %v350_v3 = vld [vmem:[#allocation5 + $0x10] sm:$0xff]   ;;  %v351_v4 = vld [vmem:[#allocation5 + $0x18] sm:$0xff]   ;;  %v353_v6 = vld [vmem:[#allocation2] sm:$0xff]   ;;  %vm132_vm1 = vcmask 523264   ;;  %vm241_vm2 = vcmask 257024   ;;  %s481_s3 = smov [#allocation10]  }
  0x4c   :  { %323 = vmatprep.mubr.msk.bf16.mxu1 %vm480_vm0, %v479_v0  ;;  %319 = vmatprep.mubr.msk.bf16.mxu0 %vm480_vm0, %v479_v0  ;;  %v352_v5 = vld [vmem:[#allocation2 + $0x8] sm:$0xff]   ;;  %v354_v7 = vld [vmem:[#allocation2 + $0x10] sm:$0xff]   ;;  %v291_v9 = vld [vmem:[#allocation8] sm:$0xff]   ;;  %s253_s1 = sshll.u32 %s481_s3, 4  ;;  %s254_s1 = int_to_ptr.vmem [resolvable:$true] %s253_s1 }
  0x4d   :  { %335 = vmatpush3.bf16.msra.mxu1 %v348_v1  ;;  %312 = vmatpush3.bf16.msra.mxu0 %v348_v1  ;;  %v302_v8 = vld [vmem:[#allocation8 + $0x8] sm:$0xff]   ;;  %v267_v10 = vld [vmem:[#allocation7] ss:$0 sm:$0xff]  ;;  %v292_v12 = vunpack.c.l.bf16 %v291_v9  ;;  %v293_v20 = vunpack.c.h.bf16 %v291_v9  ;;  %v303_v29 = vld [vmem:[#allocation8 + $0x10] sm:$0xff]   ;;  %s443_s13 = scalar_lea.vmem %s254_s1, 384  ;;  %p448_p5 = scmp.lt.s32.totalorder %s254_s1, %s254_s1 }
  0x4e   :  { %332 = vmatprep.subr.bf16.mxu1 %v479_v0  ;;  %313 = vmatprep.subr.bf16.mxu0 %v479_v0  ;;  %v296_v11 = vunpack.c.l.bf16 %v302_v8  ;;  %v297_v17 = vunpack.c.h.bf16 %v302_v8  ;;  %v300_v36 = vunpack.c.l.bf16 %v303_v29  ;;  %v301_v40 = vunpack.c.h.bf16 %v303_v29  ;;  %p444_p4 = scmp.ne.s32.totalorder %s254_s1, %s443_s13  ;;  %p449_p6 = scmp.lt.s32.totalorder %s443_s13, %s443_s13 }
  0x50   :  { %p450_p7 = por %p449_p6, %p448_p5 }
  0x51   :  { %336 = vmatpush3.bf16.msra.mxu1 %v349_v2  ;;  %314 = vmatpush3.bf16.msra.mxu0 %v349_v2 }
  0x52   :  { %333 = vmatprep.subr.bf16.mxu1 %v479_v0  ;;  %315 = vmatprep.subr.bf16.mxu0 %v479_v0  ;;  %p451_p8 = pnand %p450_p7, %p444_p4 }
  0x55   :  { %337 = vmatpush3.bf16.msra.mxu1 %v350_v3  ;;  %316 = vmatpush3.bf16.msra.mxu0 %v350_v3 }
  0x56   :  { %334 = vmatprep.subr.bf16.mxu1 %v479_v0  ;;  %317 = vmatprep.subr.bf16.mxu0 %v479_v0 }
  0x59   :  { %338 = vmatpush3.bf16.msra.mxu1 %v351_v4  ;;  %318 = vmatpush3.bf16.msra.mxu0 %v351_v4 }
  0x5c   :  { %324 = vmatmul.mubr.msk.bf16.vlgmr.msra.gmra.mrb[0].mxu1 %vm132_vm1, %v352_v5  ;;  %320 = vmatmul.mubr.msk.bf16.vlgmr.msra.gmra.mrb[0].mxu0 %vm132_vm1, %v353_v6 }
  0x5d   :  { %327 = vmatprep.mubr.msk.bf16.mxu1 %vm480_vm0, %v479_v0 }
  0x64   :  { %328 = vmatmul.mubr.msk.bf16.gmra.mrb[4].mxu1 %vm132_vm1, %v354_v7 }
 0x12f   :  { %v184_v13 = vpop.f32.mrb[0].mxu1  ;;  %v176_v14 = vpop.f32.mrb[0].mxu0 }
 0x130   :  { %v185_v15 = vadd.f32 %v267_v10, %v184_v13  ;;  %v325_v16 = vpop.f32.mrb[1].mxu1  ;;  %v177_v18 = vadd.f32 %v267_v10, %v176_v14  ;;  %v321_v19 = vpop.f32.mrb[1].mxu0 }
 0x131   :  { %v187_v21 = vpop.f32.mrb[2].mxu1  ;;  %v179_v22 = vpop.f32.mrb[2].mxu0 }
 0x132   :  { %v213_v23 = vadd.f32 %v296_v11, %v185_v15  ;;  %v188_v24 = vadd.f32 %v267_v10, %v187_v21  ;;  %v326_v25 = vpop.f32.mrb[3].mxu1  ;;  %v211_v26 = vadd.f32 %v292_v12, %v177_v18  ;;  %v180_v27 = vadd.f32 %v267_v10, %v179_v22  ;;  %v322_v28 = vpop.f32.mrb[3].mxu0 }
 0x134   :  { %v286_v30 = vpack.c.bf16 %v213_v23, %v213_v23  ;;  %v214_v31 = vadd.f32 %v297_v17, %v188_v24  ;;  %v284_v32 = vpack.c.bf16 %v211_v26, %v211_v26  ;;  %v212_v33 = vadd.f32 %v293_v20, %v180_v27 }
 0x136   :  { %244 = vst.msk [vmem:[#allocation10 + $0x8] sm:$0xf] %vm241_vm2, %v286_v30  ;;  %v287_v34 = vpack.c.bf16 %v214_v31, %v214_v31  ;;  %242 = vst.msk [vmem:[#allocation10] sm:$0xf] %vm241_vm2, %v284_v32  ;;  %v285_v35 = vpack.c.bf16 %v212_v33, %v212_v33 }
 0x137   :  { %v192_v37 = vpop.f32.mrb[4].mxu1 }
 0x138   :  { %245 = vst.msk [vmem:[#allocation10 + $0xc] sm:$0xf] %vm241_vm2, %v287_v34  ;;  %243 = vst.msk [vmem:[#allocation10 + $0x4] sm:$0xf] %vm241_vm2, %v285_v35  ;;  %v193_v38 = vadd.f32 %v267_v10, %v192_v37  ;;  %v329_v39 = vpop.f32.mrb[5].mxu1 }
 0x139   :  { %v195_v41 = vpop.f32.mrb[6].mxu1 }
 0x13a   :  { %v215_v42 = vadd.f32 %v300_v36, %v193_v38  ;;  %v196_v43 = vadd.f32 %v267_v10, %v195_v41  ;;  %v330_v44 = vpop.f32.mrb[7].mxu1 }
 0x13c   :  { %v288_v45 = vpack.c.bf16 %v215_v42, %v215_v42  ;;  %v216_v46 = vadd.f32 %v301_v40, %v196_v43 }
 0x13e   :  { %246 = vst.msk [vmem:[#allocation10 + $0x10] sm:$0xf] %vm241_vm2, %v288_v45  ;;  %v289_v47 = vpack.c.bf16 %v216_v46, %v216_v46 }
 0x140   :  { %247 = vst.msk [vmem:[#allocation10 + $0x14] sm:$0xf] %vm241_vm2, %v289_v47 }
 0x141   :  { %454 = shalt.err (!%p451_p8)
}
 0x142   :  { %s455_s16 = scalar_lea.hbm %s606_s4, 384 }
 0x143   :  { %p456_p9 = scmp.ne.s32.totalorder %s606_s4, %s455_s16  ;;  %p459_p10 = scmp.lt.u32.totalorder %s455_s16, %s606_s4 }
 0x145   :  { %p461_p11 = pnand %p459_p10, %p456_p9 }
 0x147   :  { %464 = shalt.err (!%p461_p11)
}
 0x148   :  { %259 = dma.vmem_to_hbm [thread:$0]  %s254_s1, 384, %s606_s4, [#allocation4], %s475_s27, %s475_s27, %s476_s28  }
 0x149   :  { %471 = dma.done.wait [#allocation4], 384  }
 0x14a   :  { %472 = vsyncadd [#allocation4], 4294966912 }
 0x14b   :  { %263 = vsyncpa [#allocation3], 1 }
 0x14c   :  { %264 = vsyncpa [#allocation6], 1 }
 0x14d   :  { %265 = vsyncpa [#allocation9], 1 }
 0x14e   :  { %266 = vsyncpa [#allocation4], 1 }

// kernel: image_model_forward.16
= control target key start
LH: loop header
LB: loop body
LE: loop exit
PB: predicated region body
PF: predicated region fallthrough
CT: control target
= control target key end

     0   :  { %10 = vsyncpa [#allocation3], 0  ;;  %s816_s0 = inlined_call_operand.hbm [shape: bf16[48,32], index: 0, kind: input, shape index: {}]   ;;  %s817_s1 = inlined_call_operand.hbm [shape: bf16[32,64], index: 1, kind: input, shape index: {}]   ;;  %s818_s2 = inlined_call_operand.hbm [shape: f32[1,64], index: 2, kind: input, shape index: {}]   ;;  %s819_s3 = inlined_call_operand.hbm [shape: f32[1,32], index: 3, kind: input, shape index: {}]   ;;  %s820_s4 = inlined_call_operand.hbm [shape: f32[1,32], index: 4, kind: input, shape index: {}]   ;;  %s821_s5 = inlined_call_operand.hbm [shape: bf16[48,64], index: 5, kind: output, shape index: {}]  }
   0x1   :  { %11 = vsyncpa [#allocation6], 0 }
   0x2   :  { %12 = vsyncpa [#allocation9], 0 }
   0x3   :  { %13 = vsyncpa [#allocation4], 0  ;;  %s633_s18 = smov [#allocation5]   ;;  %s634_s20 = smov [#allocation8]  }
   0x4   :  { %s31_s19 = sshll.u32 %s633_s18, 4  ;;  %s54_s21 = sshll.u32 %s634_s20, 4  ;;  %s32_s19 = int_to_ptr.vmem [resolvable:$true] %s31_s19  ;;  %s673_s21 = int_to_ptr.vmem [resolvable:$true] %s54_s21 }
   0x5   :  { %s493_s24 = scalar_lea.hbm %s817_s1, 256 }
   0x6   :  { %p494_p0 = scmp.ne.s32.totalorder %s817_s1, %s493_s24  ;;  %p497_p1 = scmp.lt.u32.totalorder %s493_s24, %s817_s1 }
   0x8   :  { %p499_p2 = pnand %p497_p1, %p494_p0 }
   0xa   :  { %502 = shalt.err (!%p499_p2)
}
   0xb   :  { %s503_s29 = scalar_lea.vmem %s32_s19, 256  ;;  %p508_p4 = scmp.lt.s32.totalorder %s32_s19, %s32_s19 }
   0xc   :  { %p504_p3 = scmp.ne.s32.totalorder %s32_s19, %s503_s29  ;;  %p509_p5 = scmp.lt.s32.totalorder %s503_s29, %s503_s29 }
   0xe   :  { %p510_p6 = por %p509_p5, %p508_p4 }
  0x10   :  { %p511_p7 = pnand %p510_p6, %p504_p3 }
  0x12   :  { %514 = shalt.err (!%p511_p7)
}
  0x13   :  { %s635_s30 = smov 64   ;;  %s636_s6 = smov 4  }
  0x14   :  { %37 = dma.hbm_to_vmem [thread:$0]  %s817_s1, 256, %s32_s19, [#allocation6], %s635_s30, %s635_s30, %s636_s6  }
  0x15   :  { %s515_s11 = scalar_lea.hbm %s819_s3, 16 }
  0x16   :  { %p516_p8 = scmp.ne.s32.totalorder %s819_s3, %s515_s11  ;;  %p519_p9 = scmp.lt.u32.totalorder %s515_s11, %s819_s3 }
  0x18   :  { %p521_p10 = pnand %p519_p9, %p516_p8 }
  0x1a   :  { %524 = shalt.err (!%p521_p10)
}
  0x1b   :  { %s525_s16 = scalar_lea.vmem %s673_s21, 16  ;;  %s529_s1 = scalar_lea.vmem %s673_s21, 32 }
  0x1c   :  { %p526_p11 = scmp.ne.s32.totalorder %s673_s21, %s525_s16  ;;  %p530_p12 = scmp.lt.s32.totalorder %s673_s21, %s673_s21 }
  0x1d   :  { %p531_p13 = scmp.lt.s32.totalorder %s529_s1, %s525_s16 }
  0x1f   :  { %p532_p0 = por %p531_p13, %p530_p12 }
  0x21   :  { %p533_p1 = pnand %p532_p0, %p526_p11 }
  0x23   :  { %536 = shalt.err (!%p533_p1)
}
  0x24   :  { %57 = dma.hbm_to_vmem [thread:$0]  %s819_s3, 16, %s673_s21, [#allocation9]  }
  0x25   :  { %s637_s19 = smov [#allocation2]   ;;  %s638_s22 = smov [#allocation7]  }
  0x26   :  { %s19_s20 = sshll.u32 %s637_s19, 4  ;;  %s44_s23 = sshll.u32 %s638_s22, 4  ;;  %s20_s20 = int_to_ptr.vmem [resolvable:$true] %s19_s20  ;;  %s45_s23 = int_to_ptr.vmem [resolvable:$true] %s44_s23 }
  0x27   :  { %s537_s26 = scalar_lea.hbm %s816_s0, 384 }
  0x28   :  { %p538_p2 = scmp.ne.s32.totalorder %s816_s0, %s537_s26  ;;  %p541_p3 = scmp.lt.u32.totalorder %s537_s26, %s816_s0 }
  0x2a   :  { %p543_p4 = pnand %p541_p3, %p538_p2 }
  0x2c   :  { %546 = shalt.err (!%p543_p4)
}
  0x2d   :  { %s547_s3 = scalar_lea.vmem %s20_s20, 384  ;;  %p552_p6 = scmp.lt.s32.totalorder %s20_s20, %s20_s20 }
  0x2e   :  { %p548_p5 = scmp.ne.s32.totalorder %s20_s20, %s547_s3  ;;  %p553_p7 = scmp.lt.s32.totalorder %s547_s3, %s547_s3 }
  0x30   :  { %p554_p8 = por %p553_p7, %p552_p6 }
  0x32   :  { %p555_p9 = pnand %p554_p8, %p548_p5 }
  0x34   :  { %558 = shalt.err (!%p555_p9)
}
  0x35   :  { %25 = dma.hbm_to_vmem [thread:$0]  %s816_s0, 384, %s20_s20, [#allocation3], %s635_s30, %s635_s30, %s636_s6  }
  0x36   :  { %s559_s11 = scalar_lea.hbm %s818_s2, 16 }
  0x37   :  { %p560_p10 = scmp.ne.s32.totalorder %s818_s2, %s559_s11  ;;  %p563_p11 = scmp.lt.u32.totalorder %s559_s11, %s818_s2 }
  0x39   :  { %p565_p12 = pnand %p563_p11, %p560_p10 }
  0x3b   :  { %568 = shalt.err (!%p565_p12)
}
  0x3c   :  { %s569_s16 = scalar_lea.vmem %s45_s23, 16  ;;  %s573_s1 = scalar_lea.vmem %s45_s23, 32 }
  0x3d   :  { %p570_p13 = scmp.ne.s32.totalorder %s45_s23, %s569_s16  ;;  %p574_p0 = scmp.lt.s32.totalorder %s45_s23, %s45_s23 }
  0x3e   :  { %p575_p1 = scmp.lt.s32.totalorder %s573_s1, %s569_s16 }
  0x40   :  { %p576_p2 = por %p575_p1, %p574_p0 }
  0x42   :  { %p577_p3 = pnand %p576_p2, %p570_p13 }
  0x44   :  { %580 = shalt.err (!%p577_p3)
}
  0x45   :  { %47 = dma.hbm_to_vmem [thread:$0]  %s818_s2, 16, %s45_s23, [#allocation6]  }
  0x46   :  { %s639_s18 = smov [#allocation10]   ;;  %s581_s24 = scalar_lea.hbm %s820_s4, 16 }
  0x47   :  { %s64_s19 = sshll.u32 %s639_s18, 4  ;;  %p582_p4 = scmp.ne.s32.totalorder %s820_s4, %s581_s24  ;;  %s65_s19 = int_to_ptr.vmem [resolvable:$true] %s64_s19 }
  0x48   :  { %p585_p5 = scmp.lt.u32.totalorder %s581_s24, %s820_s4 }
  0x4a   :  { %p587_p6 = pnand %p585_p5, %p582_p4 }
  0x4c   :  { %590 = shalt.err (!%p587_p6)
}
  0x4d   :  { %s591_s29 = scalar_lea.vmem %s65_s19, 16  ;;  %s595_s2 = scalar_lea.vmem %s65_s19, 32 }
  0x4e   :  { %p592_p7 = scmp.ne.s32.totalorder %s65_s19, %s591_s29  ;;  %p596_p8 = scmp.lt.s32.totalorder %s65_s19, %s65_s19 }
  0x4f   :  { %p597_p9 = scmp.lt.s32.totalorder %s595_s2, %s591_s29 }
  0x51   :  { %p598_p10 = por %p597_p9, %p596_p8 }
  0x53   :  { %p599_p11 = pnand %p598_p10, %p592_p7 }
  0x55   :  { %602 = shalt.err (!%p599_p11)
}
  0x56   :  { %67 = dma.hbm_to_vmem [thread:$0]  %s820_s4, 16, %s65_s19, [#allocation9]  }
  0x57   :  { %625 = dma.done.wait [#allocation3], 384  }
  0x58   :  { %626 = vsyncadd [#allocation3], 4294966912 }
  0x59   :  { %627 = dma.done.wait [#allocation6], 272  }
  0x5a   :  { %628 = vsyncadd [#allocation6], 4294967024 }
  0x5b   :  { %629 = dma.done.wait [#allocation9], 32  }
  0x5c   :  { %630 = vsyncadd [#allocation9], 4294967264  ;;  %v430_v0 = vld [vmem:[#allocation2 + $0x8] sm:$0xff]   ;;  %vm96_vm0 = vcmask 261120   ;;  %v419_v1 = vld [vmem:[#allocation2] sm:$0xff]   ;;  %v640_v46 = vmov 0.0  }
  0x5d   :  { %v424_v2 = vunpack.c.l.bf16 %v430_v0  ;;  %v425_v3 = vunpack.c.h.bf16 %v430_v0  ;;  %v420_v4 = vunpack.c.l.bf16 %v419_v1  ;;  %v431_v5 = vld [vmem:[#allocation2 + $0x10] sm:$0xff]   ;;  %v421_v6 = vunpack.c.h.bf16 %v419_v1  ;;  %v467_v45 = vld [vmem:[#allocation5] sm:$0xff]   ;;  %453 = vmatprep.subr.bf16.mxu1 %v640_v46  ;;  %437 = vmatprep.subr.bf16.mxu0 %v640_v46  ;;  %v468_v47 = vld [vmem:[#allocation5 + $0x8] sm:$0xff]   ;;  %s642_s4 = smov [#allocation11]  }
  0x5e   :  { %v428_v10 = vunpack.c.l.bf16 %v431_v5  ;;  %v429_v12 = vunpack.c.h.bf16 %v431_v5  ;;  %455 = vmatpush3.bf16.msra.mxu1 %v467_v45  ;;  %438 = vmatpush3.bf16.msra.mxu0 %v467_v45  ;;  %vm641_vm1 = vmmov 0   ;;  %vm372_vm2 = vcmask 519168   ;;  %s384_s3 = sshll.u32 %s642_s4, 4  ;;  %s385_s3 = int_to_ptr.vmem [resolvable:$true] %s384_s3 }
  0x5f   :  { %v103_v7 = vsel %vm96_vm0, %v424_v2, 0.0  ;;  %v97_v8 = vsel %vm96_vm0, %v420_v4, 0.0  ;;  %v106_v9 = vsel %vm96_vm0, %v425_v3, 0.0  ;;  %v100_v11 = vsel %vm96_vm0, %v421_v6, 0.0  ;;  %454 = vmatprep.subr.bf16.mxu1 %v640_v46  ;;  %439 = vmatprep.subr.bf16.mxu0 %v640_v46  ;;  %s603_s21 = scalar_lea.vmem %s385_s3, 384  ;;  %p608_p13 = scmp.lt.s32.totalorder %s385_s3, %s385_s3 }
  0x60   :  { %104 = vadd.xlane.f32.xlu0 %v103_v7  ;;  %98 = vadd.xlane.f32.xlu1 %v97_v8  ;;  %v109_v13 = vsel %vm96_vm0, %v428_v10, 0.0  ;;  %v112_v14 = vsel %vm96_vm0, %v429_v12, 0.0  ;;  %p604_p12 = scmp.ne.s32.totalorder %s385_s3, %s603_s21  ;;  %p609_p0 = scmp.lt.s32.totalorder %s603_s21, %s603_s21 }
  0x61   :  { %445 = vmatprep.mubr.msk.bf16.mxu1 %vm641_vm1, %v640_v46  ;;  %441 = vmatprep.mubr.msk.bf16.mxu0 %vm641_vm1, %v640_v46 }
  0x62   :  { %456 = vmatpush3.bf16.msra.mxu1 %v468_v47  ;;  %440 = vmatpush3.bf16.msra.mxu0 %v468_v47  ;;  %p610_p1 = por %p609_p0, %p608_p13 }
  0x64   :  { %107 = vadd.xlane.f32.xlu0 %v106_v9  ;;  %101 = vadd.xlane.f32.xlu1 %v100_v11  ;;  %p611_p2 = pnand %p610_p1, %p604_p12 }
  0x68   :  { %110 = vadd.xlane.f32.xlu0 %v109_v13  ;;  %113 = vadd.xlane.f32.xlu1 %v112_v14 }
  0xed   :  { %v105_v15 = vpop.xlane.xlu0 %104  ;;  %v99_v16 = vpop.xlane.xlu1 %98 }
  0xee   :  { %v118_v17 = vmul.f32 0.03125, %v105_v15  ;;  %v116_v18 = vmul.f32 0.03125, %v99_v16 }
  0xf0   :  { %v753_v19 = vsub.f32 %v424_v2, %v118_v17  ;;  %v755_v20 = vsub.f32 %v420_v4, %v116_v18  ;;  %v398_v4 = vld [vmem:[#allocation8] ss:$0 sm:$0xff] }
  0xf1   :  { %v108_v21 = vpop.xlane.xlu0 %107  ;;  %v102_v22 = vpop.xlane.xlu1 %101 }
  0xf2   :  { %v119_v23 = vmul.f32 0.03125, %v108_v21  ;;  %v130_v24 = vmul.f32 %v753_v19, %v753_v19  ;;  %v117_v25 = vmul.f32 0.03125, %v102_v22  ;;  %v128_v26 = vmul.f32 %v755_v20, %v755_v20 }
  0xf4   :  { %v761_v27 = vsub.f32 %v425_v3, %v119_v23  ;;  %v140_v28 = vsel %vm96_vm0, %v130_v24, 0.0  ;;  %v764_v29 = vsub.f32 %v421_v6, %v117_v25  ;;  %v134_v31 = vsel %vm96_vm0, %v128_v26, 0.0 }
  0xf5   :  { %141 = vadd.xlane.f32.xlu0 %v140_v28  ;;  %v111_v30 = vpop.xlane.xlu0 %110  ;;  %v114_v32 = vpop.xlane.xlu1 %113 }
  0xf6   :  { %v120_v33 = vmul.f32 0.03125, %v111_v30  ;;  %v131_v34 = vmul.f32 %v761_v27, %v761_v27  ;;  %v121_v35 = vmul.f32 0.03125, %v114_v32  ;;  %v129_v36 = vmul.f32 %v764_v29, %v764_v29 }
  0xf8   :  { %v771_v37 = vsub.f32 %v428_v10, %v120_v33  ;;  %v143_v38 = vsel %vm96_vm0, %v131_v34, 0.0  ;;  %v774_v39 = vsub.f32 %v429_v12, %v121_v35  ;;  %v137_v41 = vsel %vm96_vm0, %v129_v36, 0.0  ;;  %v399_v10 = vld [vmem:[#allocation10] ss:$0 sm:$0xff] }
  0xf9   :  { %144 = vadd.xlane.f32.xlu1 %v143_v38  ;;  %135 = vadd.xlane.f32.xlu0 %v134_v31  ;;  %v400_v31 = vld [vmem:[#allocation7] ss:$0 sm:$0xff] }
  0xfa   :  { %v132_v40 = vmul.f32 %v771_v37, %v771_v37  ;;  %v133_v42 = vmul.f32 %v774_v39, %v774_v39 }
  0xfc   :  { %v146_v43 = vsel %vm96_vm0, %v132_v40, 0.0  ;;  %v149_v44 = vsel %vm96_vm0, %v133_v42, 0.0 }
  0xfd   :  { %147 = vadd.xlane.f32.xlu0 %v146_v43  ;;  %138 = vadd.xlane.f32.xlu1 %v137_v41 }
 0x101   :  { %150 = vadd.xlane.f32.xlu1 %v149_v44 }
 0x182   :  { %v142_v48 = vpop.xlane.xlu0 %141 }
 0x183   :  { %v154_v49 = vmul.f32 0.03125, %v142_v48 }
 0x185   :  { %v160_v50 = vadd.f32 1e-12, %v154_v49 }
 0x186   :  { %v136_v51 = vpop.xlane.xlu0 %135  ;;  %v145_v52 = vpop.xlane.xlu1 %144 }
 0x187   :  { %469 = vrsqrt.f32 %v160_v50  ;;  %v152_v53 = vmul.f32 0.03125, %v136_v51  ;;  %v155_v54 = vmul.f32 0.03125, %v145_v52 }
 0x189   :  { %v158_v55 = vadd.f32 1e-12, %v152_v53  ;;  %v161_v56 = vadd.f32 1e-12, %v155_v54 }
 0x18a   :  { %v148_v57 = vpop.xlane.xlu0 %147  ;;  %v139_v58 = vpop.xlane.xlu1 %138 }
 0x18b   :  { %471 = vrsqrt.f32 %v158_v55  ;;  %v156_v59 = vmul.f32 0.03125, %v148_v57  ;;  %v153_v60 = vmul.f32 0.03125, %v139_v58 }
 0x18c   :  { %473 = vrsqrt.f32 %v161_v56 }
 0x18d   :  { %v162_v61 = vadd.f32 1e-12, %v156_v59  ;;  %v159_v62 = vadd.f32 1e-12, %v153_v60 }
 0x18e   :  { %v151_v63 = vpop.xlane.xlu1 %150 }
 0x18f   :  { %475 = vrsqrt.f32 %v162_v61  ;;  %v157_v0 = vmul.f32 0.03125, %v151_v63 }
 0x190   :  { %477 = vrsqrt.f32 %v159_v62 }
 0x191   :  { %v470_v1 = vpop.eup %469  ;;  %v163_v2 = vadd.f32 1e-12, %v157_v0 }
 0x192   :  { %v172_v3 = vmul.f32 %v470_v1, %v753_v19 }
 0x193   :  { %479 = vrsqrt.f32 %v163_v2 }
 0x194   :  { %v185_v9 = vmul.f32 %v398_v4, %v172_v3 }
 0x195   :  { %v472_v5 = vpop.eup %471 }
 0x196   :  { %v474_v6 = vpop.eup %473  ;;  %v170_v7 = vmul.f32 %v472_v5, %v755_v20  ;;  %v198_v16 = vadd.f32 %v399_v10, %v185_v9 }
 0x197   :  { %v173_v8 = vmul.f32 %v474_v6, %v761_v27 }
 0x198   :  { %v183_v18 = vmul.f32 %v398_v4, %v170_v7 }
 0x199   :  { %v476_v11 = vpop.eup %475  ;;  %v186_v12 = vmul.f32 %v398_v4, %v173_v8 }
 0x19a   :  { %v478_v13 = vpop.eup %477  ;;  %v174_v14 = vmul.f32 %v476_v11, %v771_v37  ;;  %v196_v24 = vadd.f32 %v399_v10, %v183_v18 }
 0x19b   :  { %v171_v15 = vmul.f32 %v478_v13, %v764_v29  ;;  %v199_v17 = vadd.f32 %v399_v10, %v186_v12 }
 0x19c   :  { %v187_v20 = vmul.f32 %v398_v4, %v174_v14 }
 0x19d   :  { %v480_v19 = vpop.eup %479  ;;  %v203_v21 = vpack.c.bf16 %v199_v17, %v198_v16  ;;  %v184_v22 = vmul.f32 %v398_v4, %v171_v15 }
 0x19e   :  { %v175_v23 = vmul.f32 %v480_v19, %v774_v39  ;;  %v200_v28 = vadd.f32 %v399_v10, %v187_v20 }
 0x19f   :  { %446 = vmatmul.mubr.msk.bf16.vlgmr.msra.gmra.mrb[0].mxu1 %vm96_vm0, %v203_v21  ;;  %v197_v25 = vadd.f32 %v399_v10, %v184_v22 }
 0x1a0   :  { %449 = vmatprep.mubr.msk.bf16.mxu1 %vm641_vm1, %v640_v46  ;;  %v188_v26 = vmul.f32 %v398_v4, %v175_v23 }
 0x1a1   :  { %v202_v27 = vpack.c.bf16 %v197_v25, %v196_v24 }
 0x1a2   :  { %v201_v30 = vadd.f32 %v399_v10, %v188_v26 }
 0x1a3   :  { %442 = vmatmul.mubr.msk.bf16.vlgmr.msra.gmra.mrb[0].mxu0 %vm96_vm0, %v202_v27 }
 0x1a4   :  { %v204_v29 = vpack.c.bf16 %v201_v30, %v200_v28 }
 0x1a7   :  { %450 = vmatmul.mubr.msk.bf16.gmra.mrb[4].mxu1 %vm96_vm0, %v204_v29 }
 0x272   :  { %v279_v32 = vpop.f32.mrb[0].mxu1 }
 0x273   :  { %v280_v33 = vadd.f32 %v400_v31, %v279_v32  ;;  %v447_v34 = vpop.f32.mrb[1].mxu1 }
 0x274   :  { %v282_v35 = vpop.f32.mrb[2].mxu1 }
 0x275   :  { %v296_v36 = vmul.f32 %v280_v33, %v280_v33  ;;  %v283_v37 = vadd.f32 %v400_v31, %v282_v35  ;;  %v448_v38 = vpop.f32.mrb[3].mxu1 }
 0x276   :  { %v271_v39 = vpop.f32.mrb[0].mxu0 }
 0x277   :  { %v302_v40 = vmul.f32 %v296_v36, %v280_v33  ;;  %v297_v41 = vmul.f32 %v283_v37, %v283_v37  ;;  %v272_v42 = vadd.f32 %v400_v31, %v271_v39  ;;  %v443_v43 = vpop.f32.mrb[1].mxu0 }
 0x278   :  { %v274_v44 = vpop.f32.mrb[2].mxu0 }
 0x279   :  { %v308_v45 = vmul.f32 0.044715, %v302_v40  ;;  %v303_v46 = vmul.f32 %v297_v41, %v283_v37  ;;  %v294_v47 = vmul.f32 %v272_v42, %v272_v42  ;;  %v275_v48 = vadd.f32 %v400_v31, %v274_v44  ;;  %v444_v49 = vpop.f32.mrb[3].mxu0 }
 0x27a   :  { %v287_v50 = vpop.f32.mrb[4].mxu1 }
 0x27b   :  { %v314_v51 = vadd.f32 %v308_v45, %v280_v33  ;;  %v309_v52 = vmul.f32 0.044715, %v303_v46  ;;  %v300_v53 = vmul.f32 %v294_v47, %v272_v42  ;;  %v295_v54 = vmul.f32 %v275_v48, %v275_v48  ;;  %v451_v55 = vpop.f32.mrb[5].mxu1 }
 0x27c   :  { %v288_v56 = vadd.f32 %v400_v31, %v287_v50  ;;  %v290_v57 = vpop.f32.mrb[6].mxu1 }
 0x27d   :  { %v320_v58 = vmul.f32 0.7978846, %v314_v51  ;;  %v315_v59 = vadd.f32 %v309_v52, %v283_v37  ;;  %v306_v60 = vmul.f32 0.044715, %v300_v53  ;;  %v301_v61 = vmul.f32 %v295_v54, %v275_v48  ;;  %v452_v62 = vpop.f32.mrb[7].mxu1 }
 0x27e   :  { %v298_v63 = vmul.f32 %v288_v56, %v288_v56  ;;  %v291_v0 = vadd.f32 %v400_v31, %v290_v57 }
 0x27f   :  { %481 = vtanh.f32 %v320_v58  ;;  %v321_v1 = vmul.f32 0.7978846, %v315_v59  ;;  %v312_v2 = vadd.f32 %v306_v60, %v272_v42  ;;  %v307_v3 = vmul.f32 0.044715, %v301_v61 }
 0x280   :  { %v304_v4 = vmul.f32 %v298_v63, %v288_v56  ;;  %v299_v5 = vmul.f32 %v291_v0, %v291_v0 }
 0x281   :  { %483 = vtanh.f32 %v321_v1  ;;  %v318_v6 = vmul.f32 0.7978846, %v312_v2  ;;  %v313_v7 = vadd.f32 %v307_v3, %v275_v48 }
 0x282   :  { %v310_v8 = vmul.f32 0.044715, %v304_v4  ;;  %v305_v9 = vmul.f32 %v299_v5, %v291_v0 }
 0x283   :  { %485 = vtanh.f32 %v318_v6  ;;  %v319_v10 = vmul.f32 0.7978846, %v313_v7 }
 0x284   :  { %v316_v11 = vadd.f32 %v310_v8, %v288_v56  ;;  %v311_v12 = vmul.f32 0.044715, %v305_v9 }
 0x285   :  { %487 = vtanh.f32 %v319_v10 }
 0x286   :  { %v322_v13 = vmul.f32 0.7978846, %v316_v11  ;;  %v317_v14 = vadd.f32 %v311_v12, %v291_v0 }
 0x288   :  { %489 = vtanh.f32 %v322_v13  ;;  %v323_v15 = vmul.f32 0.7978846, %v317_v14 }
 0x289   :  { %v482_v16 = vpop.eup %481 }
 0x28a   :  { %v332_v17 = vadd.f32 1.0, %v482_v16  ;;  %491 = vtanh.f32 %v323_v15 }
 0x28b   :  { %v484_v18 = vpop.eup %483 }
 0x28c   :  { %v338_v19 = vmul.f32 0.5, %v332_v17  ;;  %v333_v21 = vadd.f32 1.0, %v484_v18 }
 0x28d   :  { %v486_v22 = vpop.eup %485 }
 0x28e   :  { %v344_v23 = vmul.f32 %v338_v19, %v280_v33  ;;  %v339_v20 = vmul.f32 0.5, %v333_v21  ;;  %v330_v24 = vadd.f32 1.0, %v486_v22 }
 0x28f   :  { %v488_v25 = vpop.eup %487 }
 0x290   :  { %v414_v26 = vpack.c.bf16 %v344_v23, %v344_v23  ;;  %v345_v27 = vmul.f32 %v339_v20, %v283_v37  ;;  %v336_v28 = vmul.f32 0.5, %v330_v24  ;;  %v331_v30 = vadd.f32 1.0, %v488_v25 }
 0x292   :  { %v490_v29 = vpop.eup %489  ;;  %375 = vst.msk [vmem:[#allocation11 + $0x8] sm:$0xf] %vm372_vm2, %v414_v26  ;;  %v415_v31 = vpack.c.bf16 %v345_v27, %v345_v27  ;;  %v342_v32 = vmul.f32 %v336_v28, %v272_v42  ;;  %v337_v34 = vmul.f32 0.5, %v331_v30 }
 0x293   :  { %v334_v35 = vadd.f32 1.0, %v490_v29 }
 0x294   :  { %v492_v36 = vpop.eup %491  ;;  %376 = vst.msk [vmem:[#allocation11 + $0xc] sm:$0xf] %vm372_vm2, %v415_v31  ;;  %v412_v38 = vpack.c.bf16 %v342_v32, %v342_v32  ;;  %v343_v33 = vmul.f32 %v337_v34, %v275_v48 }
 0x295   :  { %v340_v39 = vmul.f32 0.5, %v334_v35  ;;  %v335_v40 = vadd.f32 1.0, %v492_v36 }
 0x296   :  { %373 = vst.msk [vmem:[#allocation11] sm:$0xf] %vm372_vm2, %v412_v38  ;;  %v413_v41 = vpack.c.bf16 %v343_v33, %v343_v33 }
 0x297   :  { %v346_v37 = vmul.f32 %v340_v39, %v288_v56  ;;  %v341_v43 = vmul.f32 0.5, %v335_v40 }
 0x298   :  { %374 = vst.msk [vmem:[#allocation11 + $0x4] sm:$0xf] %vm372_vm2, %v413_v41 }
 0x299   :  { %v416_v44 = vpack.c.bf16 %v346_v37, %v346_v37  ;;  %v347_v42 = vmul.f32 %v341_v43, %v291_v0 }
 0x29b   :  { %377 = vst.msk [vmem:[#allocation11 + $0x10] sm:$0xf] %vm372_vm2, %v416_v44  ;;  %v417_v45 = vpack.c.bf16 %v347_v42, %v347_v42 }
 0x29d   :  { %378 = vst.msk [vmem:[#allocation11 + $0x14] sm:$0xf] %vm372_vm2, %v417_v45 }
 0x29e   :  { %614 = shalt.err (!%p611_p2)
}
 0x29f   :  { %s615_s10 = scalar_lea.hbm %s821_s5, 384 }
 0x2a0   :  { %p616_p3 = scmp.ne.s32.totalorder %s821_s5, %s615_s10  ;;  %p619_p4 = scmp.lt.u32.totalorder %s615_s10, %s821_s5 }
 0x2a2   :  { %p621_p5 = pnand %p619_p4, %p616_p3 }
 0x2a4   :  { %624 = shalt.err (!%p621_p5)
}
 0x2a5   :  { %390 = dma.vmem_to_hbm [thread:$0]  %s385_s3, 384, %s821_s5, [#allocation4], %s635_s30, %s635_s30, %s636_s6  }
 0x2a6   :  { %631 = dma.done.wait [#allocation4], 384  }
 0x2a7   :  { %632 = vsyncadd [#allocation4], 4294966912 }
 0x2a8   :  { %394 = vsyncpa [#allocation3], 1 }
 0x2a9   :  { %395 = vsyncpa [#allocation6], 1 }
 0x2aa   :  { %396 = vsyncpa [#allocation9], 1 }
 0x2ab   :  { %397 = vsyncpa [#allocation4], 1 }

// kernel: image_model_forward.23
= control target key start
LH: loop header
LB: loop body
LE: loop exit
PB: predicated region body
PF: predicated region fallthrough
CT: control target
= control target key end

     0   :  { %10 = vsyncpa [#allocation3], 0  ;;  %s490_s0 = inlined_call_operand.hbm [shape: bf16[8,32], index: 0, kind: input, shape index: {}]   ;;  %s491_s1 = inlined_call_operand.hbm [shape: bf16[32,32], index: 1, kind: input, shape index: {}]   ;;  %s492_s2 = inlined_call_operand.hbm [shape: f32[1,32], index: 2, kind: input, shape index: {}]   ;;  %s493_s3 = inlined_call_operand.hbm [shape: f32[1,32], index: 3, kind: input, shape index: {}]   ;;  %s494_s4 = inlined_call_operand.hbm [shape: f32[1,32], index: 4, kind: input, shape index: {}]   ;;  %s495_s5 = inlined_call_operand.hbm [shape: f32[8,32], index: 5, kind: output, shape index: {}]  }
   0x1   :  { %11 = vsyncpa [#allocation6], 0 }
   0x2   :  { %12 = vsyncpa [#allocation9], 0 }
   0x3   :  { %13 = vsyncpa [#allocation4], 0  ;;  %s374_s18 = smov [#allocation5]   ;;  %s234_s22 = scalar_lea.hbm %s491_s1, 256 }
   0x4   :  { %s29_s19 = sshll.u32 %s374_s18, 4  ;;  %p235_p0 = scmp.ne.s32.totalorder %s491_s1, %s234_s22  ;;  %s30_s19 = int_to_ptr.vmem [resolvable:$true] %s29_s19 }
   0x5   :  { %p238_p1 = scmp.lt.u32.totalorder %s234_s22, %s491_s1 }
   0x7   :  { %p240_p2 = pnand %p238_p1, %p235_p0 }
   0x9   :  { %243 = shalt.err (!%p240_p2)
}
   0xa   :  { %s244_s27 = scalar_lea.vmem %s30_s19, 256  ;;  %p249_p4 = scmp.lt.s32.totalorder %s30_s19, %s30_s19 }
   0xb   :  { %p245_p3 = scmp.ne.s32.totalorder %s30_s19, %s244_s27  ;;  %p250_p5 = scmp.lt.s32.totalorder %s244_s27, %s244_s27 }
   0xd   :  { %p251_p6 = por %p250_p5, %p249_p4 }
   0xf   :  { %p252_p7 = pnand %p251_p6, %p245_p3 }
  0x11   :  { %255 = shalt.err (!%p252_p7)
}
  0x12   :  { %s375_s28 = smov 64   ;;  %s376_s29 = smov 4  }
  0x13   :  { %35 = dma.hbm_to_vmem [thread:$0]  %s491_s1, 256, %s30_s19, [#allocation6], %s375_s28, %s375_s28, %s376_s29  }
  0x14   :  { %s377_s7 = smov [#allocation8]   ;;  %s378_s9 = smov [#allocation2]  }
  0x15   :  { %s52_s8 = sshll.u32 %s377_s7, 4  ;;  %s20_s10 = sshll.u32 %s378_s9, 4  ;;  %s53_s8 = int_to_ptr.vmem [resolvable:$true] %s52_s8  ;;  %s21_s10 = int_to_ptr.vmem [resolvable:$true] %s20_s10 }
  0x16   :  { %s256_s13 = scalar_lea.hbm %s493_s3, 16 }
  0x17   :  { %p257_p8 = scmp.ne.s32.totalorder %s493_s3, %s256_s13  ;;  %p260_p9 = scmp.lt.u32.totalorder %s256_s13, %s493_s3 }
  0x19   :  { %p262_p10 = pnand %p260_p9, %p257_p8 }
  0x1b   :  { %265 = shalt.err (!%p262_p10)
}
  0x1c   :  { %s266_s1 = scalar_lea.vmem %s53_s8, 16  ;;  %s270_s18 = scalar_lea.vmem %s53_s8, 32 }
  0x1d   :  { %p267_p11 = scmp.ne.s32.totalorder %s53_s8, %s266_s1  ;;  %p271_p12 = scmp.lt.s32.totalorder %s53_s8, %s53_s8 }
  0x1e   :  { %p272_p13 = scmp.lt.s32.totalorder %s270_s18, %s266_s1 }
  0x20   :  { %p273_p0 = por %p272_p13, %p271_p12 }
  0x22   :  { %p274_p1 = pnand %p273_p0, %p267_p11 }
  0x24   :  { %277 = shalt.err (!%p274_p1)
}
  0x25   :  { %55 = dma.hbm_to_vmem [thread:$0]  %s493_s3, 16, %s53_s8, [#allocation9]  }
  0x26   :  { %s278_s23 = scalar_lea.hbm %s490_s0, 64 }
  0x27   :  { %p279_p2 = scmp.ne.s32.totalorder %s490_s0, %s278_s23  ;;  %p282_p3 = scmp.lt.u32.totalorder %s278_s23, %s490_s0 }
  0x29   :  { %p284_p4 = pnand %p282_p3, %p279_p2 }
  0x2b   :  { %287 = shalt.err (!%p284_p4)
}
  0x2c   :  { %s288_s28 = scalar_lea.vmem %s21_s10, 64  ;;  %p293_p6 = scmp.lt.s32.totalorder %s21_s10, %s21_s10 }
  0x2d   :  { %p289_p5 = scmp.ne.s32.totalorder %s21_s10, %s288_s28  ;;  %p294_p7 = scmp.lt.s32.totalorder %s288_s28, %s288_s28 }
  0x2f   :  { %p295_p8 = por %p294_p7, %p293_p6 }
  0x31   :  { %p296_p9 = pnand %p295_p8, %p289_p5 }
  0x33   :  { %299 = shalt.err (!%p296_p9)
}
  0x34   :  { %23 = dma.hbm_to_vmem [thread:$0]  %s490_s0, 64, %s21_s10, [#allocation3]  }
  0x35   :  { %s379_s30 = smov [#allocation7]   ;;  %s380_s7 = smov [#allocation10]  }
  0x36   :  { %s42_s6 = sshll.u32 %s379_s30, 4  ;;  %s62_s8 = sshll.u32 %s380_s7, 4  ;;  %s43_s6 = int_to_ptr.vmem [resolvable:$true] %s42_s6  ;;  %s63_s8 = int_to_ptr.vmem [resolvable:$true] %s62_s8 }
  0x37   :  { %s300_s12 = scalar_lea.hbm %s492_s2, 16 }
  0x38   :  { %p301_p10 = scmp.ne.s32.totalorder %s492_s2, %s300_s12  ;;  %p304_p11 = scmp.lt.u32.totalorder %s300_s12, %s492_s2 }
  0x3a   :  { %p306_p12 = pnand %p304_p11, %p301_p10 }
  0x3c   :  { %309 = shalt.err (!%p306_p12)
}
  0x3d   :  { %s310_s0 = scalar_lea.vmem %s43_s6, 16  ;;  %s314_s10 = scalar_lea.vmem %s43_s6, 32 }
  0x3e   :  { %p311_p13 = scmp.ne.s32.totalorder %s43_s6, %s310_s0  ;;  %p315_p0 = scmp.lt.s32.totalorder %s43_s6, %s43_s6 }
  0x3f   :  { %p316_p1 = scmp.lt.s32.totalorder %s314_s10, %s310_s0 }
  0x41   :  { %p317_p2 = por %p316_p1, %p315_p0 }
  0x43   :  { %p318_p3 = pnand %p317_p2, %p311_p13 }
  0x45   :  { %321 = shalt.err (!%p318_p3)
}
  0x46   :  { %45 = dma.hbm_to_vmem [thread:$0]  %s492_s2, 16, %s43_s6, [#allocation6]  }
  0x47   :  { %s322_s20 = scalar_lea.hbm %s494_s4, 16 }
  0x48   :  { %p323_p4 = scmp.ne.s32.totalorder %s494_s4, %s322_s20  ;;  %p326_p5 = scmp.lt.u32.totalorder %s322_s20, %s494_s4 }
  0x4a   :  { %p328_p6 = pnand %p326_p5, %p323_p4 }
  0x4c   :  { %331 = shalt.err (!%p328_p6)
}
  0x4d   :  { %s332_s25 = scalar_lea.vmem %s63_s8, 16  ;;  %s336_s26 = scalar_lea.vmem %s63_s8, 32 }
  0x4e   :  { %p333_p7 = scmp.ne.s32.totalorder %s63_s8, %s332_s25  ;;  %p337_p8 = scmp.lt.s32.totalorder %s63_s8, %s63_s8 }
  0x4f   :  { %p338_p9 = scmp.lt.s32.totalorder %s336_s26, %s332_s25 }
  0x51   :  { %p339_p10 = por %p338_p9, %p337_p8 }
  0x53   :  { %p340_p11 = pnand %p339_p10, %p333_p7 }
  0x55   :  { %343 = shalt.err (!%p340_p11)
}
  0x56   :  { %65 = dma.hbm_to_vmem [thread:$0]  %s494_s4, 16, %s63_s8, [#allocation9]  }
  0x57   :  { %366 = dma.done.wait [#allocation3], 64  }
  0x58   :  { %367 = vsyncadd [#allocation3], 4294967232 }
  0x59   :  { %368 = dma.done.wait [#allocation6], 272  }
  0x5a   :  { %369 = vsyncadd [#allocation6], 4294967024 }
  0x5b   :  { %370 = dma.done.wait [#allocation9], 32  }
  0x5c   :  { %371 = vsyncadd [#allocation9], 4294967264  ;;  %vm84_vm0 = vcmask 261120   ;;  %v82_v0 = vld [vmem:[#allocation2] sm:$0xf]  ;;  %v228_v8 = vld [vmem:[#allocation5] sm:$0xff]  }
  0x5d   :  { %v83_v1 = vunpack.c.l.bf16 %v82_v0  ;;  %v381_v9 = vmov 0.0   ;;  %v229_v10 = vld [vmem:[#allocation5 + $0x8] sm:$0xff]   ;;  %vm382_vm1 = vmmov 0   ;;  %v201_v15 = vld [vmem:[#allocation8] ss:$0 sm:$0xff]  ;;  %s383_s4 = smov [#allocation11]  }
  0x5e   :  { %210 = vmatprep.subr.bf16.mxu0 %v381_v9  ;;  %214 = vmatprep.mubr.msk.bf16.mxu0 %vm382_vm1, %v381_v9  ;;  %v202_v17 = vld [vmem:[#allocation10] ss:$0 sm:$0xff]  ;;  %v203_v21 = vld [vmem:[#allocation7] ss:$0 sm:$0xff]  ;;  %s190_s28 = sshll.u32 %s383_s4, 4  ;;  %s191_s28 = int_to_ptr.vmem [resolvable:$true] %s190_s28 }
  0x5f   :  { %v85_v2 = vsel %vm84_vm0, %v83_v1, 0.0  ;;  %211 = vmatpush3.bf16.msra.mxu0 %v228_v8  ;;  %s344_s3 = scalar_lea.vmem %s191_s28, 128  ;;  %p349_p13 = scmp.lt.s32.totalorder %s191_s28, %s191_s28 }
  0x60   :  { %86 = vadd.xlane.f32.xlu0 %v85_v2  ;;  %212 = vmatprep.subr.bf16.mxu0 %v381_v9  ;;  %p345_p12 = scmp.ne.s32.totalorder %s191_s28, %s344_s3  ;;  %p350_p0 = scmp.lt.s32.totalorder %s344_s3, %s344_s3 }
  0x62   :  { %p351_p1 = por %p350_p0, %p349_p13 }
  0x63   :  { %213 = vmatpush3.bf16.msra.mxu0 %v229_v10 }
  0x64   :  { %p352_p2 = pnand %p351_p1, %p345_p12 }
  0xed   :  { %v87_v3 = vpop.xlane.xlu0 %86 }
  0xee   :  { %v89_v4 = vmul.f32 0.03125, %v87_v3 }
  0xf0   :  { %v90_v5 = vsub.f32 %v83_v1, %v89_v4 }
  0xf2   :  { %v91_v6 = vmul.f32 %v90_v5, %v90_v5 }
  0xf4   :  { %v92_v7 = vsel %vm84_vm0, %v91_v6, 0.0 }
  0xf5   :  { %93 = vadd.xlane.f32.xlu0 %v92_v7 }
 0x182   :  { %v94_v11 = vpop.xlane.xlu0 %93 }
 0x183   :  { %v95_v12 = vmul.f32 0.03125, %v94_v11 }
 0x185   :  { %v96_v13 = vadd.f32 1e-12, %v95_v12 }
 0x187   :  { %230 = vrsqrt.f32 %v96_v13 }
 0x191   :  { %v231_v14 = vpop.eup %230 }
 0x192   :  { %v98_v16 = vmul.f32 %v231_v14, %v90_v5 }
 0x194   :  { %v106_v18 = vmul.f32 %v201_v15, %v98_v16 }
 0x196   :  { %v114_v19 = vadd.f32 %v202_v17, %v106_v18 }
 0x198   :  { %v115_v20 = vpack.c.bf16 %v114_v19, %v114_v19 }
 0x19a   :  { %215 = vmatmul.mubr.msk.bf16.vlgmr.msra.gmra.mrb[0].mxu0 %vm84_vm0, %v115_v20 }
 0x26d   :  { %v176_v22 = vpop.f32.mrb[0].mxu0 }
 0x26e   :  { %v177_v23 = vadd.f32 %v203_v21, %v176_v22  ;;  %v216_v24 = vpop.f32.mrb[1].mxu0 }
 0x26f   :  { %v179_v25 = vpop.f32.mrb[2].mxu0 }
 0x270   :  { %232 = vtanh.f32 %v177_v23  ;;  %v217_v26 = vpop.f32.mrb[3].mxu0 }
 0x27a   :  { %v233_v27 = vpop.eup %232 }
 0x27b   :  { %183 = vst.msk [vmem:[#allocation11] sm:$0xff] %vm84_vm0, %v233_v27 }
 0x27c   :  { %355 = shalt.err (!%p352_p2)
}
 0x27d   :  { %s356_s6 = scalar_lea.hbm %s495_s5, 128 }
 0x27e   :  { %p357_p3 = scmp.ne.s32.totalorder %s495_s5, %s356_s6  ;;  %p360_p4 = scmp.lt.u32.totalorder %s356_s6, %s495_s5 }
 0x280   :  { %p362_p5 = pnand %p360_p4, %p357_p3 }
 0x282   :  { %365 = shalt.err (!%p362_p5)
}
 0x283   :  { %193 = dma.vmem_to_hbm [thread:$0]  %s191_s28, 128, %s495_s5, [#allocation4]  }
 0x284   :  { %372 = dma.done.wait [#allocation4], 128  }
 0x285   :  { %373 = vsyncadd [#allocation4], 4294967168 }
 0x286   :  { %197 = vsyncpa [#allocation3], 1 }
 0x287   :  { %198 = vsyncpa [#allocation6], 1 }
 0x288   :  { %199 = vsyncpa [#allocation9], 1 }
 0x289   :  { %200 = vsyncpa [#allocation4], 1 }

</bundles_post_ra>
